<compile_context>
chip_gen: v7x
topology: tpu7x:2x2x1
jax: 0.10.0
libtpu: 0.0.40
codegen_flags: <defaults>
</compile_context>

<pallas_src>
import functools

import jax
import jax.numpy as jnp
from jax.experimental import pallas as pl
from jax.experimental.pallas import tpu as pltpu


# ----------------------------- tiling helpers ------------------------------

_LANE = 128
_NODE_PAD = 512      # node dim padded to a multiple of the row tile
_ROW_TILE = 512      # node-row tile (parallel grid axis)
_RED_CAP = 2048      # cap on the node-reduction tile (last grid axis)


def _round_up(x, m):
    return ((x + m - 1) // m) * m


def _vmem_limit_bytes():
    """Generation-aware scoped-VMEM request (~75% of physical, capped)."""
    phys = 64 * 1024 * 1024          # conservative fallback (v7x per-TC)
    try:
        phys = int(pltpu.get_tpu_info().vmem_capacity_bytes)
    except Exception:
        pass
    return max(32 * 1024 * 1024, min(100 * 1024 * 1024, (phys * 3) // 4))


_VMEM_LIMIT = _vmem_limit_bytes()


def _feature_pad(dim, prefer_256=False):
    """v6e/v7x MXUs are 256 wide: pad to 256-multiples only once the real dim
    exceeds 128 (never inflate a <=128 dim — that would double zero-FLOPs)."""
    mult = 256 if (prefer_256 and dim > 128) else _LANE
    return _round_up(dim, mult)


def _pick_reduction_tile(n_pad):
    """Largest multiple of _NODE_PAD dividing n_pad, <= _RED_CAP (>= 512)."""
    t = min(_RED_CAP, n_pad)
    t -= t % _NODE_PAD
    while n_pad % t:
        t -= _NODE_PAD
    return t


def _pad2(a, rows, cols, dtype):
    a = a.astype(dtype)
    return jnp.pad(a, ((0, rows - a.shape[0]), (0, cols - a.shape[1])))


# ----------------------------- Pallas kernels ------------------------------

def _gcn_layer_kernel(a_ref, x_ref, w_ref, b_ref, o_ref, acc_ref):
    """One (tm, H) tile of relu((A @ X) @ W + b).

    Grid: (row tiles, node-reduction blocks).  A@X is accumulated in f32 VMEM
    scratch; the dense @W + bias + ReLU epilogue runs once per row tile.
    """
    kk = pl.program_id(1)

    @pl.when(kk == 0)
    def _init():
        acc_ref[...] = jnp.zeros_like(acc_ref)

    acc_ref[...] += jnp.dot(a_ref[...], x_ref[...],
                            preferred_element_type=jnp.float32)

    @pl.when(kk == pl.num_programs(1) - 1)
    def _finalize():
        y = jnp.dot(acc_ref[...].astype(w_ref.dtype), w_ref[...],
                    preferred_element_type=jnp.float32)
        y = jnp.maximum(y + b_ref[...].astype(jnp.float32), 0.0)
        o_ref[...] = y.astype(o_ref.dtype)


def _gcn_fc_tail_kernel(a_ref, x_ref, wg_ref, bg_ref,
                        w1_ref, b1_ref, w2_ref, b2_ref, w3_ref, b3_ref,
                        o_ref, acc_ref):
    """Last GCN layer with the whole FC tail fused into its epilogue:
    out = fc3(relu(fc2(relu(fc1(relu((A @ X) @ Wg + bg))))))."""
    kk = pl.program_id(1)

    @pl.when(kk == 0)
    def _init():
        acc_ref[...] = jnp.zeros_like(acc_ref)

    acc_ref[...] += jnp.dot(a_ref[...], x_ref[...],
                            preferred_element_type=jnp.float32)

    @pl.when(kk == pl.num_programs(1) - 1)
    def _finalize():
        y = jnp.dot(acc_ref[...].astype(wg_ref.dtype), wg_ref[...],
                    preferred_element_type=jnp.float32)
        y = jnp.maximum(y + bg_ref[...].astype(jnp.float32), 0.0)
        y = jnp.dot(y.astype(w1_ref.dtype), w1_ref[...],
                    preferred_element_type=jnp.float32)
        y = jnp.maximum(y + b1_ref[...].astype(jnp.float32), 0.0)
        y = jnp.dot(y.astype(w2_ref.dtype), w2_ref[...],
                    preferred_element_type=jnp.float32)
        y = jnp.maximum(y + b2_ref[...].astype(jnp.float32), 0.0)
        y = jnp.dot(y.astype(w3_ref.dtype), w3_ref[...],
                    preferred_element_type=jnp.float32)
        o_ref[...] = (y + b3_ref[...].astype(jnp.float32)).astype(o_ref.dtype)


def _whole_net_kernel(*refs, num_gcn_layers):
    """Entire network in one launch (everything VMEM-resident).

    refs = adj, x, (Wg_i, bg_i) * L, w1, b1, w2, b2, w3, b3, out.
    """
    adj_ref, x_ref = refs[0], refs[1]
    idx = 2
    gcn = []
    for _ in range(num_gcn_layers):
        gcn.append((refs[idx], refs[idx + 1]))
        idx += 2
    w1_ref, b1_ref, w2_ref, b2_ref, w3_ref, b3_ref = refs[idx:idx + 6]
    o_ref = refs[idx + 6]

    adj = adj_ref[...]
    y = x_ref[...]
    for (w_ref, b_ref) in gcn:
        t = jnp.dot(adj, y, preferred_element_type=jnp.float32)
        y = jnp.dot(t.astype(w_ref.dtype), w_ref[...],
                    preferred_element_type=jnp.float32)
        y = jnp.maximum(y + b_ref[...].astype(jnp.float32), 0.0)
        y = y.astype(x_ref.dtype)
    y = jnp.dot(y, w1_ref[...], preferred_element_type=jnp.float32)
    y = jnp.maximum(y + b1_ref[...].astype(jnp.float32), 0.0)
    y = jnp.dot(y.astype(w2_ref.dtype), w2_ref[...],
                preferred_element_type=jnp.float32)
    y = jnp.maximum(y + b2_ref[...].astype(jnp.float32), 0.0)
    y = jnp.dot(y.astype(w3_ref.dtype), w3_ref[...],
                preferred_element_type=jnp.float32)
    o_ref[...] = (y + b3_ref[...].astype(jnp.float32)).astype(o_ref.dtype)


# ----------------------------- pallas_call wrappers -------------------------

def gcn_layer(adj_p, x_p, w_p, b_p, *, out_dtype=jnp.bfloat16):
    """Tiled fused GCN layer: relu((A @ X) @ W + b)."""
    m = adj_p.shape[0]
    f = x_p.shape[1]
    h = w_p.shape[1]
    tm = min(_ROW_TILE, m)
    tk = _pick_reduction_tile(m)
    grid = (m // tm, m // tk)

    flops = 2 * m * m * f + 2 * m * f * h
    bytes_accessed = (adj_p.size * adj_p.dtype.itemsize
                      + (m // tm) * x_p.size * x_p.dtype.itemsize
                      + w_p.size * w_p.dtype.itemsize
                      + b_p.size * b_p.dtype.itemsize
                      + m * h * jnp.dtype(out_dtype).itemsize)

    return pl.pallas_call(
        _gcn_layer_kernel,
        out_shape=jax.ShapeDtypeStruct((m, h), out_dtype),
        grid_spec=pltpu.PrefetchScalarGridSpec(
            num_scalar_prefetch=0,
            grid=grid,
            in_specs=[
                pl.BlockSpec((tm, tk), lambda i, kk: (i, kk)),  # A row x node blk
                pl.BlockSpec((tk, f), lambda i, kk: (kk, 0)),   # X node block
                pl.BlockSpec((f, h), lambda i, kk: (0, 0)),     # W (resident)
                pl.BlockSpec((1, h), lambda i, kk: (0, 0)),     # b (resident)
            ],
            out_specs=pl.BlockSpec((tm, h), lambda i, kk: (i, 0)),
            scratch_shapes=[pltpu.VMEM((tm, f), jnp.float32)],
        ),
        compiler_params=pltpu.CompilerParams(
            dimension_semantics=("parallel", "arbitrary"),
            vmem_limit_bytes=_VMEM_LIMIT,
        ),
        cost_estimate=pl.CostEstimate(flops=flops, transcendentals=0,
                                      bytes_accessed=bytes_accessed),
    )(adj_p, x_p, w_p, b_p)


def gcn_fc_tail(adj_p, x_p, wg, bg, w1, b1, w2, b2, w3, b3, *,
                out_dtype=jnp.float32):
    """Tiled last GCN layer with the MLP tail fused into its epilogue."""
    m = adj_p.shape[0]
    f = x_p.shape[1]
    h = wg.shape[1]
    c = w3.shape[1]
    tm = min(_ROW_TILE, m)
    tk = _pick_reduction_tile(m)
    grid = (m // tm, m // tk)

    flops = 2 * m * m * f + 2 * m * f * h + 2 * m * (h * h + h * h + h * c)
    bytes_accessed = (adj_p.size * adj_p.dtype.itemsize
                      + (m // tm) * x_p.size * x_p.dtype.itemsize
                      + sum(a.size * a.dtype.itemsize
                            for a in (wg, bg, w1, b1, w2, b2, w3, b3))
                      + m * c * jnp.dtype(out_dtype).itemsize)

    return pl.pallas_call(
        _gcn_fc_tail_kernel,
        out_shape=jax.ShapeDtypeStruct((m, c), out_dtype),
        grid_spec=pltpu.PrefetchScalarGridSpec(
            num_scalar_prefetch=0,
            grid=grid,
            in_specs=[
                pl.BlockSpec((tm, tk), lambda i, kk: (i, kk)),  # A
                pl.BlockSpec((tk, f), lambda i, kk: (kk, 0)),   # X
                pl.BlockSpec((f, h), lambda i, kk: (0, 0)),     # Wg
                pl.BlockSpec((1, h), lambda i, kk: (0, 0)),     # bg
                pl.BlockSpec((h, h), lambda i, kk: (0, 0)),     # w1
                pl.BlockSpec((1, h), lambda i, kk: (0, 0)),     # b1
                pl.BlockSpec((h, h), lambda i, kk: (0, 0)),     # w2
                pl.BlockSpec((1, h), lambda i, kk: (0, 0)),     # b2
                pl.BlockSpec((h, c), lambda i, kk: (0, 0)),     # w3
                pl.BlockSpec((1, c), lambda i, kk: (0, 0)),     # b3
            ],
            out_specs=pl.BlockSpec((tm, c), lambda i, kk: (i, 0)),
            scratch_shapes=[pltpu.VMEM((tm, f), jnp.float32)],
        ),
        compiler_params=pltpu.CompilerParams(
            dimension_semantics=("parallel", "arbitrary"),
            vmem_limit_bytes=_VMEM_LIMIT,
        ),
        cost_estimate=pl.CostEstimate(flops=flops, transcendentals=0,
                                      bytes_accessed=bytes_accessed),
    )(adj_p, x_p, wg, bg, w1, b1, w2, b2, w3, b3)


def whole_net(adj_p, x_p, gcn_params, fc_params, *, out_dtype=jnp.float32):
    """Entire network in ONE pallas_call (used when it fits in VMEM)."""
    m, f = x_p.shape
    h = gcn_params[0][0].shape[1]
    c = fc_params[2][0].shape[1]

    args = [adj_p, x_p]
    in_specs = [pl.BlockSpec((m, m), lambda i: (0, 0)),
                pl.BlockSpec((m, f), lambda i: (0, 0))]
    for (w, b) in list(gcn_params) + list(fc_params):
        in_specs.append(pl.BlockSpec(w.shape, lambda i: (0, 0)))
        in_specs.append(pl.BlockSpec(b.shape, lambda i: (0, 0)))
        args += [w, b]

    flops = 0
    f_in = f
    for (w, _) in gcn_params:
        flops += 2 * m * m * f_in + 2 * m * f_in * w.shape[1]
        f_in = w.shape[1]
    flops += 2 * m * (h * h + h * h + h * c)
    bytes_accessed = (sum(a.size * a.dtype.itemsize for a in args)
                      + m * c * jnp.dtype(out_dtype).itemsize)

    return pl.pallas_call(
        functools.partial(_whole_net_kernel, num_gcn_layers=len(gcn_params)),
        out_shape=jax.ShapeDtypeStruct((m, c), out_dtype),
        grid_spec=pltpu.PrefetchScalarGridSpec(
            num_scalar_prefetch=0,
            grid=(1,),
            in_specs=in_specs,
            out_specs=pl.BlockSpec((m, c), lambda i: (0, 0)),
        ),
        compiler_params=pltpu.CompilerParams(
            dimension_semantics=("arbitrary",),
            vmem_limit_bytes=_VMEM_LIMIT,
        ),
        cost_estimate=pl.CostEstimate(flops=flops, transcendentals=0,
                                      bytes_accessed=bytes_accessed),
    )(*args)


def _whole_net_fits(n_pad, f_pad, h_pad, c_pad, num_gcn_layers):
    """Rough VMEM budget check for the single-call fully-fused path."""
    bf = 2
    need = 2 * n_pad * n_pad * bf                      # adj (double-buffered)
    need += 2 * n_pad * f_pad * bf                     # x
    need += 2 * n_pad * c_pad * 4                      # out (f32)
    need += 2 * (f_pad * h_pad + max(0, num_gcn_layers - 1) * h_pad * h_pad) * bf
    need += 2 * (2 * h_pad * h_pad + h_pad * c_pad) * bf
    need += 4 * n_pad * max(f_pad, h_pad, c_pad) * 4   # live f32 intermediates
    return need <= _VMEM_LIMIT // 2


# ----------------------------- model glue ----------------------------------

def gcn_normalized_adjacency(edge_index, num_nodes):
    """Dense D^-1/2 (A + I) D^-1/2, matching PyG gcn_norm semantics:
    duplicate edges scatter-ADD; self-loops added only where missing.
    TODO(synk): replace this dense f32 [N,N] build with a block-sparse
    (CSR-of-blocks) construction before scaling to real PPI (~45k nodes)."""
    src, dst = edge_index[0], edge_index[1]
    adj = jnp.zeros((num_nodes, num_nodes), jnp.float32)
    adj = adj.at[dst, src].add(1.0)                    # message src -> dst
    idx = jnp.arange(num_nodes)
    missing_loop = jnp.where(adj[idx, idx] > 0, 0.0, 1.0)
    adj = adj.at[idx, idx].add(missing_loop)           # add_remaining_self_loops
    deg = jnp.sum(adj, axis=1)
    dinv = jnp.where(deg > 0, jax.lax.rsqrt(deg), 0.0)
    return adj * dinv[:, None] * dinv[None, :]


def init_params(key, n_features, num_layers, num_hidden, num_classes):
    params = {"gcn": [], "fc": []}
    keys = jax.random.split(key, num_layers + 3)
    in_dim = n_features
    for i in range(num_layers):
        scale = 1.0 / jnp.sqrt(jnp.float32(in_dim))
        w = jax.random.uniform(keys[i], (in_dim, num_hidden), jnp.float32,
                               -scale, scale)
        b = jnp.zeros((1, num_hidden), jnp.float32)      # GCNConv bias init = 0
        params["gcn"].append((w, b))
        in_dim = num_hidden
    fc_dims = [(num_hidden, num_hidden), (num_hidden, num_hidden),
               (num_hidden, num_classes)]
    for j, (fi, fo) in enumerate(fc_dims):
        scale = 1.0 / jnp.sqrt(jnp.float32(fi))
        w = jax.random.uniform(keys[num_layers + j], (fi, fo), jnp.float32,
                               -scale, scale)
        b = jax.random.uniform(jax.random.fold_in(keys[num_layers + j], 1),
                               (1, fo), jnp.float32, -scale, scale)
        params["fc"].append((w, b))
    return params


def pad_params(params, f_pad, h_pad, c_pad):
    """Pad all dims to lane-dense shapes; weights bf16, biases f32."""
    out = {"gcn": [], "fc": []}
    in_pad = f_pad
    for (w, b) in params["gcn"]:
        out["gcn"].append((_pad2(w, in_pad, h_pad, jnp.bfloat16),
                           _pad2(b, 1, h_pad, jnp.float32)))
        in_pad = h_pad
    fc_pad_dims = [(h_pad, h_pad), (h_pad, h_pad), (h_pad, c_pad)]
    for (w, b), (ri, ci) in zip(params["fc"], fc_pad_dims):
        out["fc"].append((_pad2(w, ri, ci, jnp.bfloat16),
                          _pad2(b, 1, ci, jnp.float32)))
    return out


def net_forward_padded(params_p, x_p, adj_p, *, n_real, c_real,
                       fuse_whole_net=True):
    """Forward pass on padded arrays; returns [n_real, c_real] logits."""
    gcn = params_p["gcn"]
    fc = params_p["fc"]
    n_pad = adj_p.shape[0]
    f_pad = x_p.shape[1]
    h_pad = gcn[0][0].shape[1]
    c_pad = fc[2][0].shape[1]

    if fuse_whole_net and _whole_net_fits(n_pad, f_pad, h_pad, c_pad, len(gcn)):
        out_p = whole_net(adj_p, x_p, gcn, fc, out_dtype=jnp.float32)
    else:
        y = x_p
        for (w, b) in gcn[:-1]:
            y = gcn_layer(adj_p, y, w, b, out_dtype=jnp.bfloat16)
        wg, bg = gcn[-1]
        (w1, b1), (w2, b2), (w3, b3) = fc
        out_p = gcn_fc_tail(adj_p, y, wg, bg, w1, b1, w2, b2, w3, b3,
                            out_dtype=jnp.float32)
    return out_p[:n_real, :c_real]


def reference_forward(params, x, adj_hat):
    """Plain-JAX reference mirroring the kernel numerics and compute order
    (bf16 MXU operands, f32 accumulation, A@X then @W, bf16 activations)."""
    def dot32(a, b):
        return jnp.dot(a.astype(jnp.bfloat16), b.astype(jnp.bfloat16),
                       preferred_element_type=jnp.float32)
    y = x.astype(jnp.bfloat16)
    for (w, b) in params["gcn"]:
        t = dot32(adj_hat, y).astype(jnp.bfloat16)
        y = jnp.maximum(dot32(t, w) + b, 0.0).astype(jnp.bfloat16)
    (w1, b1), (w2, b2), (w3, b3) = params["fc"]
    y = jnp.maximum(dot32(y, w1) + b1, 0.0)
    y = jnp.maximum(dot32(y, w2) + b2, 0.0)
    return dot32(y, w3) + b3


# ----------------------------- main -----------------------------------------

if __name__ == "__main__":
    key = jax.random.PRNGKey(0)
    k_x, k_e, k_p = jax.random.split(key, 3)

    # Small synthetic graph consistent with the module's forward.
    num_nodes = 16
    n_features = 8
    num_layers = 2
    num_hidden = 32
    num_classes = 8
    num_edges = 48

    x = jax.random.normal(k_x, (num_nodes, n_features), jnp.float32)
    edge_index = jax.random.randint(k_e, (2, num_edges), 0, num_nodes,
                                    dtype=jnp.int32)

    adj_hat = gcn_normalized_adjacency(edge_index, num_nodes)
    params = init_params(k_p, n_features, num_layers, num_hidden, num_classes)

    # Pad: nodes to a multiple of the row tile, features/classes to 128,
    # hidden to 256 only if the real hidden exceeds 128 (it is 32 here).
    n_pad = _round_up(num_nodes, _NODE_PAD)
    f_pad = _feature_pad(n_features)
    h_pad = _feature_pad(num_hidden, prefer_256=True)
    c_pad = _feature_pad(num_classes)

    # NOTE: A_hat is streamed in bf16 for MXU throughput / HBM bytes; keep it
    # f32 (or int8/fp8 with explicit scales) if bit-closeness to PyG matters.
    x_p = _pad2(x, n_pad, f_pad, jnp.bfloat16)
    adj_p = _pad2(adj_hat, n_pad, n_pad, jnp.bfloat16)
    params_p = pad_params(params, f_pad, h_pad, c_pad)

    ref = reference_forward(params, x, adj_hat)

    # Path 1: fully-fused single pallas_call (the demo-scale fast path).
    fwd_fused = jax.jit(functools.partial(
        net_forward_padded, n_real=num_nodes, c_real=num_classes,
        fuse_whole_net=True))
    out_fused = fwd_fused(params_p, x_p, adj_p)
    jax.block_until_ready(out_fused)
    assert out_fused.shape == (num_nodes, num_classes)
    err_fused = float(jnp.max(jnp.abs(out_fused - ref)))
    assert jnp.allclose(out_fused, ref, atol=5e-2, rtol=5e-2), err_fused

    # Path 2: tiled per-layer fused kernels (the at-scale path) — verify too.
    fwd_tiled = jax.jit(functools.partial(
        net_forward_padded, n_real=num_nodes, c_real=num_classes,
        fuse_whole_net=False))
    out_tiled = fwd_tiled(params_p, x_p, adj_p)
    jax.block_until_ready(out_tiled)
    assert out_tiled.shape == (num_nodes, num_classes)
    err_tiled = float(jnp.max(jnp.abs(out_tiled - ref)))
    assert jnp.allclose(out_tiled, ref, atol=5e-2, rtol=5e-2), err_tiled

    print("KERNEL_OK")
</pallas_src>

<mosaic_0001>
module attributes {stable_mosaic.version = 11 : i64} {
  func.func @_whole_net_kernel(%arg0: i32, %arg1: memref<512x512xbf16, #tpu.memory_space<vmem>>, %arg2: memref<512x128xbf16, #tpu.memory_space<vmem>>, %arg3: memref<128x128xbf16, #tpu.memory_space<vmem>>, %arg4: memref<1x128xf32, #tpu.memory_space<vmem>>, %arg5: memref<128x128xbf16, #tpu.memory_space<vmem>>, %arg6: memref<1x128xf32, #tpu.memory_space<vmem>>, %arg7: memref<128x128xbf16, #tpu.memory_space<vmem>>, %arg8: memref<1x128xf32, #tpu.memory_space<vmem>>, %arg9: memref<128x128xbf16, #tpu.memory_space<vmem>>, %arg10: memref<1x128xf32, #tpu.memory_space<vmem>>, %arg11: memref<128x128xbf16, #tpu.memory_space<vmem>>, %arg12: memref<1x128xf32, #tpu.memory_space<vmem>>, %arg13: memref<512x128xf32, #tpu.memory_space<vmem>>) attributes {dimension_semantics = [#tpu.dimension_semantics<arbitrary>], iteration_bounds = array<i64: 1>, scalar_prefetch = 0 : i64, scratch_operands = 0 : i64, tpu.core_type = #tpu.core_type<tc>, window_params = [{pipeline_mode = #tpu.pipeline_mode<synchronous>, transform_indices = @transform_0, window_bounds = array<i64: 512, 512>}, {pipeline_mode = #tpu.pipeline_mode<synchronous>, transform_indices = @transform_1, window_bounds = array<i64: 512, 128>}, {pipeline_mode = #tpu.pipeline_mode<synchronous>, transform_indices = @transform_2, window_bounds = array<i64: 128, 128>}, {pipeline_mode = #tpu.pipeline_mode<synchronous>, transform_indices = @transform_3, window_bounds = array<i64: 1, 128>}, {pipeline_mode = #tpu.pipeline_mode<synchronous>, transform_indices = @transform_4, window_bounds = array<i64: 128, 128>}, {pipeline_mode = #tpu.pipeline_mode<synchronous>, transform_indices = @transform_5, window_bounds = array<i64: 1, 128>}, {pipeline_mode = #tpu.pipeline_mode<synchronous>, transform_indices = @transform_6, window_bounds = array<i64: 128, 128>}, {pipeline_mode = #tpu.pipeline_mode<synchronous>, transform_indices = @transform_7, window_bounds = array<i64: 1, 128>}, {pipeline_mode = #tpu.pipeline_mode<synchronous>, transform_indices = @transform_8, window_bounds = array<i64: 128, 128>}, {pipeline_mode = #tpu.pipeline_mode<synchronous>, transform_indices = @transform_9, window_bounds = array<i64: 1, 128>}, {pipeline_mode = #tpu.pipeline_mode<synchronous>, transform_indices = @transform_10, window_bounds = array<i64: 128, 128>}, {pipeline_mode = #tpu.pipeline_mode<synchronous>, transform_indices = @transform_11, window_bounds = array<i64: 1, 128>}, {pipeline_mode = #tpu.pipeline_mode<synchronous>, transform_indices = @transform_12, window_bounds = array<i64: 512, 128>}]} {
    %c0 = arith.constant 0 : index
    %c0_0 = arith.constant 0 : index
    %0 = vector.load %arg1[%c0, %c0_0] : memref<512x512xbf16, #tpu.memory_space<vmem>>, vector<512x512xbf16>
    %c0_1 = arith.constant 0 : index
    %c0_2 = arith.constant 0 : index
    %1 = vector.load %arg2[%c0_1, %c0_2] : memref<512x128xbf16, #tpu.memory_space<vmem>>, vector<512x128xbf16>
    %cst = arith.constant dense<0.000000e+00> : vector<512x128xf32>
    %2 = tpu.matmul %0, %1, %cst {dimension_numbers = #tpu.dot_dimension_numbers<[1], [0], [0], [1], [0, 0, 1, 1], [], []>} : vector<512x512xbf16>, vector<512x128xbf16>, vector<512x128xf32> -> vector<512x128xf32>
    %3 = arith.truncf %2 : vector<512x128xf32> to vector<512x128xbf16>
    %c0_3 = arith.constant 0 : index
    %c0_4 = arith.constant 0 : index
    %4 = vector.load %arg3[%c0_3, %c0_4] : memref<128x128xbf16, #tpu.memory_space<vmem>>, vector<128x128xbf16>
    %cst_5 = arith.constant dense<0.000000e+00> : vector<512x128xf32>
    %5 = tpu.matmul %3, %4, %cst_5 {dimension_numbers = #tpu.dot_dimension_numbers<[1], [0], [0], [1], [0, 0, 1, 1], [], []>} : vector<512x128xbf16>, vector<128x128xbf16>, vector<512x128xf32> -> vector<512x128xf32>
    %c0_6 = arith.constant 0 : index
    %c0_7 = arith.constant 0 : index
    %6 = vector.load %arg4[%c0_6, %c0_7] : memref<1x128xf32, #tpu.memory_space<vmem>>, vector<1x128xf32>
    %7 = vector.broadcast %6 : vector<1x128xf32> to vector<512x128xf32>
    %8 = arith.addf %5, %7 : vector<512x128xf32>
    %cst_8 = arith.constant 0.000000e+00 : f32
    %9 = vector.broadcast %cst_8 : f32 to vector<512x128xf32>
    %10 = arith.maximumf %8, %9 : vector<512x128xf32>
    %11 = arith.truncf %10 : vector<512x128xf32> to vector<512x128xbf16>
    %cst_9 = arith.constant dense<0.000000e+00> : vector<512x128xf32>
    %12 = tpu.matmul %0, %11, %cst_9 {dimension_numbers = #tpu.dot_dimension_numbers<[1], [0], [0], [1], [0, 0, 1, 1], [], []>} : vector<512x512xbf16>, vector<512x128xbf16>, vector<512x128xf32> -> vector<512x128xf32>
    %13 = arith.truncf %12 : vector<512x128xf32> to vector<512x128xbf16>
    %c0_10 = arith.constant 0 : index
    %c0_11 = arith.constant 0 : index
    %14 = vector.load %arg5[%c0_10, %c0_11] : memref<128x128xbf16, #tpu.memory_space<vmem>>, vector<128x128xbf16>
    %cst_12 = arith.constant dense<0.000000e+00> : vector<512x128xf32>
    %15 = tpu.matmul %13, %14, %cst_12 {dimension_numbers = #tpu.dot_dimension_numbers<[1], [0], [0], [1], [0, 0, 1, 1], [], []>} : vector<512x128xbf16>, vector<128x128xbf16>, vector<512x128xf32> -> vector<512x128xf32>
    %c0_13 = arith.constant 0 : index
    %c0_14 = arith.constant 0 : index
    %16 = vector.load %arg6[%c0_13, %c0_14] : memref<1x128xf32, #tpu.memory_space<vmem>>, vector<1x128xf32>
    %17 = vector.broadcast %16 : vector<1x128xf32> to vector<512x128xf32>
    %18 = arith.addf %15, %17 : vector<512x128xf32>
    %cst_15 = arith.constant 0.000000e+00 : f32
    %19 = vector.broadcast %cst_15 : f32 to vector<512x128xf32>
    %20 = arith.maximumf %18, %19 : vector<512x128xf32>
    %21 = arith.truncf %20 : vector<512x128xf32> to vector<512x128xbf16>
    %c0_16 = arith.constant 0 : index
    %c0_17 = arith.constant 0 : index
    %22 = vector.load %arg7[%c0_16, %c0_17] : memref<128x128xbf16, #tpu.memory_space<vmem>>, vector<128x128xbf16>
    %cst_18 = arith.constant dense<0.000000e+00> : vector<512x128xf32>
    %23 = tpu.matmul %21, %22, %cst_18 {dimension_numbers = #tpu.dot_dimension_numbers<[1], [0], [0], [1], [0, 0, 1, 1], [], []>} : vector<512x128xbf16>, vector<128x128xbf16>, vector<512x128xf32> -> vector<512x128xf32>
    %c0_19 = arith.constant 0 : index
    %c0_20 = arith.constant 0 : index
    %24 = vector.load %arg8[%c0_19, %c0_20] : memref<1x128xf32, #tpu.memory_space<vmem>>, vector<1x128xf32>
    %25 = vector.broadcast %24 : vector<1x128xf32> to vector<512x128xf32>
    %26 = arith.addf %23, %25 : vector<512x128xf32>
    %cst_21 = arith.constant 0.000000e+00 : f32
    %27 = vector.broadcast %cst_21 : f32 to vector<512x128xf32>
    %28 = arith.maximumf %26, %27 : vector<512x128xf32>
    %29 = arith.truncf %28 : vector<512x128xf32> to vector<512x128xbf16>
    %c0_22 = arith.constant 0 : index
    %c0_23 = arith.constant 0 : index
    %30 = vector.load %arg9[%c0_22, %c0_23] : memref<128x128xbf16, #tpu.memory_space<vmem>>, vector<128x128xbf16>
    %cst_24 = arith.constant dense<0.000000e+00> : vector<512x128xf32>
    %31 = tpu.matmul %29, %30, %cst_24 {dimension_numbers = #tpu.dot_dimension_numbers<[1], [0], [0], [1], [0, 0, 1, 1], [], []>} : vector<512x128xbf16>, vector<128x128xbf16>, vector<512x128xf32> -> vector<512x128xf32>
    %c0_25 = arith.constant 0 : index
    %c0_26 = arith.constant 0 : index
    %32 = vector.load %arg10[%c0_25, %c0_26] : memref<1x128xf32, #tpu.memory_space<vmem>>, vector<1x128xf32>
    %33 = vector.broadcast %32 : vector<1x128xf32> to vector<512x128xf32>
    %34 = arith.addf %31, %33 : vector<512x128xf32>
    %cst_27 = arith.constant 0.000000e+00 : f32
    %35 = vector.broadcast %cst_27 : f32 to vector<512x128xf32>
    %36 = arith.maximumf %34, %35 : vector<512x128xf32>
    %37 = arith.truncf %36 : vector<512x128xf32> to vector<512x128xbf16>
    %c0_28 = arith.constant 0 : index
    %c0_29 = arith.constant 0 : index
    %38 = vector.load %arg11[%c0_28, %c0_29] : memref<128x128xbf16, #tpu.memory_space<vmem>>, vector<128x128xbf16>
    %cst_30 = arith.constant dense<0.000000e+00> : vector<512x128xf32>
    %39 = tpu.matmul %37, %38, %cst_30 {dimension_numbers = #tpu.dot_dimension_numbers<[1], [0], [0], [1], [0, 0, 1, 1], [], []>} : vector<512x128xbf16>, vector<128x128xbf16>, vector<512x128xf32> -> vector<512x128xf32>
    %c0_31 = arith.constant 0 : index
    %c0_32 = arith.constant 0 : index
    %40 = vector.load %arg12[%c0_31, %c0_32] : memref<1x128xf32, #tpu.memory_space<vmem>>, vector<1x128xf32>
    %41 = vector.broadcast %40 : vector<1x128xf32> to vector<512x128xf32>
    %42 = arith.addf %39, %41 : vector<512x128xf32>
    %c0_33 = arith.constant 0 : index
    %c0_34 = arith.constant 0 : index
    %43 = vector.load %arg13[%c0_33, %c0_34] : memref<512x128xf32, #tpu.memory_space<vmem>>, vector<512x128xf32>
    tpu.vector_store %arg13[%c0_33, %c0_34], %42 {strides = array<i32>} : memref<512x128xf32, #tpu.memory_space<vmem>>, vector<512x128xf32>,
    return
  }
  func.func @transform_0(%arg0: i32) -> (i32, i32) {
    %c0_i32 = arith.constant 0 : i32
    %c0_i32_0 = arith.constant 0 : i32
    %c0_i32_1 = arith.constant 0 : i32
    return %c0_i32, %c0_i32_0 : i32, i32
  }
  func.func @transform_1(%arg0: i32) -> (i32, i32) {
    %c0_i32 = arith.constant 0 : i32
    %c0_i32_0 = arith.constant 0 : i32
    %c0_i32_1 = arith.constant 0 : i32
    return %c0_i32, %c0_i32_0 : i32, i32
  }
  func.func @transform_2(%arg0: i32) -> (i32, i32) {
    %c0_i32 = arith.constant 0 : i32
    %c0_i32_0 = arith.constant 0 : i32
    %c0_i32_1 = arith.constant 0 : i32
    return %c0_i32, %c0_i32_0 : i32, i32
  }
  func.func @transform_3(%arg0: i32) -> (i32, i32) {
    %c0_i32 = arith.constant 0 : i32
    %c0_i32_0 = arith.constant 0 : i32
    %c0_i32_1 = arith.constant 0 : i32
    return %c0_i32, %c0_i32_0 : i32, i32
  }
  func.func @transform_4(%arg0: i32) -> (i32, i32) {
    %c0_i32 = arith.constant 0 : i32
    %c0_i32_0 = arith.constant 0 : i32
    %c0_i32_1 = arith.constant 0 : i32
    return %c0_i32, %c0_i32_0 : i32, i32
  }
  func.func @transform_5(%arg0: i32) -> (i32, i32) {
    %c0_i32 = arith.constant 0 : i32
    %c0_i32_0 = arith.constant 0 : i32
    %c0_i32_1 = arith.constant 0 : i32
    return %c0_i32, %c0_i32_0 : i32, i32
  }
  func.func @transform_6(%arg0: i32) -> (i32, i32) {
    %c0_i32 = arith.constant 0 : i32
    %c0_i32_0 = arith.constant 0 : i32
    %c0_i32_1 = arith.constant 0 : i32
    return %c0_i32, %c0_i32_0 : i32, i32
  }
  func.func @transform_7(%arg0: i32) -> (i32, i32) {
    %c0_i32 = arith.constant 0 : i32
    %c0_i32_0 = arith.constant 0 : i32
    %c0_i32_1 = arith.constant 0 : i32
    return %c0_i32, %c0_i32_0 : i32, i32
  }
  func.func @transform_8(%arg0: i32) -> (i32, i32) {
    %c0_i32 = arith.constant 0 : i32
    %c0_i32_0 = arith.constant 0 : i32
    %c0_i32_1 = arith.constant 0 : i32
    return %c0_i32, %c0_i32_0 : i32, i32
  }
  func.func @transform_9(%arg0: i32) -> (i32, i32) {
    %c0_i32 = arith.constant 0 : i32
    %c0_i32_0 = arith.constant 0 : i32
    %c0_i32_1 = arith.constant 0 : i32
    return %c0_i32, %c0_i32_0 : i32, i32
  }
  func.func @transform_10(%arg0: i32) -> (i32, i32) {
    %c0_i32 = arith.constant 0 : i32
    %c0_i32_0 = arith.constant 0 : i32
    %c0_i32_1 = arith.constant 0 : i32
    return %c0_i32, %c0_i32_0 : i32, i32
  }
  func.func @transform_11(%arg0: i32) -> (i32, i32) {
    %c0_i32 = arith.constant 0 : i32
    %c0_i32_0 = arith.constant 0 : i32
    %c0_i32_1 = arith.constant 0 : i32
    return %c0_i32, %c0_i32_0 : i32, i32
  }
  func.func @transform_12(%arg0: i32) -> (i32, i32) {
    %c0_i32 = arith.constant 0 : i32
    %c0_i32_0 = arith.constant 0 : i32
    %c0_i32_1 = arith.constant 0 : i32
    return %c0_i32, %c0_i32_0 : i32, i32
  }
}

</mosaic_0001>

<bundles_post_ra>
// kernel: net_forward_padded.1
= control target key start
LH: loop header
LB: loop body
LE: loop exit
PB: predicated region body
PF: predicated region fallthrough
CT: control target
= control target key end

     0   :  { %17 = vsyncpa [#allocation3], 0  ;;  %s7067_s0 = inlined_call_operand.hbm [shape: bf16[512,512], index: 0, kind: input, shape index: {}]   ;;  %s7068_s1 = inlined_call_operand.hbm [shape: bf16[512,128], index: 1, kind: input, shape index: {}]   ;;  %s7069_s2 = inlined_call_operand.hbm [shape: bf16[128,128], index: 2, kind: input, shape index: {}]   ;;  %s7070_s3 = inlined_call_operand.vmem [shape: f32[1,128], index: 3, kind: input, shape index: {}]   ;;  %s7071_s4 = inlined_call_operand.hbm [shape: bf16[128,128], index: 4, kind: input, shape index: {}]   ;;  %s7072_s5 = inlined_call_operand.vmem [shape: f32[1,128], index: 5, kind: input, shape index: {}]   ;;  %s7073_s6 = inlined_call_operand.hbm [shape: bf16[128,128], index: 6, kind: input, shape index: {}]   ;;  %s7074_s7 = inlined_call_operand.vmem [shape: f32[1,128], index: 7, kind: input, shape index: {}]   ;;  %s7075_s8 = inlined_call_operand.hbm [shape: bf16[128,128], index: 8, kind: input, shape index: {}]   ;;  %s7076_s9 = inlined_call_operand.vmem [shape: f32[1,128], index: 9, kind: input, shape index: {}]   ;;  %s7077_s10 = inlined_call_operand.hbm [shape: bf16[128,128], index: 10, kind: input, shape index: {}]   ;;  %s7078_s11 = inlined_call_operand.vmem [shape: f32[1,128], index: 11, kind: input, shape index: {}]   ;;  %s7079_s12 = inlined_call_operand.vmem [shape: f32[512,128], index: 12, kind: output, shape index: {}]  }
   0x1   :  { %18 = vsyncpa [#allocation5], 0 }
   0x2   :  { %19 = vsyncpa [#allocation8], 0 }
   0x3   :  { %20 = vsyncpa [#allocation11], 0  ;;  %s6280_s21 = smov [#allocation4]   ;;  %s6118_s25 = scalar_lea.hbm %s7068_s1, 4096 }
   0x4   :  { %s38_s22 = sshll.u32 %s6280_s21, 4  ;;  %p6119_p0 = scmp.ne.s32.totalorder %s7068_s1, %s6118_s25  ;;  %s39_s22 = int_to_ptr.vmem [resolvable:$true] %s38_s22 }
   0x5   :  { %p6122_p1 = scmp.lt.u32.totalorder %s6118_s25, %s7068_s1 }
   0x7   :  { %p6124_p2 = pnand %p6122_p1, %p6119_p0 }
   0x9   :  { %6127 = shalt.err (!%p6124_p2)
}
   0xa   :  { %s6128_s30 = scalar_lea.vmem %s39_s22, 4096  ;;  %p6133_p4 = scmp.lt.s32.totalorder %s39_s22, %s39_s22 }
   0xb   :  { %p6129_p3 = scmp.ne.s32.totalorder %s39_s22, %s6128_s30  ;;  %p6134_p5 = scmp.lt.s32.totalorder %s6128_s30, %s6128_s30 }
   0xd   :  { %p6135_p6 = por %p6134_p5, %p6133_p4 }
   0xf   :  { %p6136_p7 = pnand %p6135_p6, %p6129_p3 }
  0x11   :  { %6139 = shalt.err (!%p6136_p7)
}
  0x12   :  { %s6281_s13 = smov 64   ;;  %s6282_s14 = smov 4  }
  0x13   :  { %44 = dma.hbm_to_vmem [thread:$0]  %s7068_s1, 4096, %s39_s22, [#allocation5], %s6281_s13, %s6281_s13, %s6282_s14  }
  0x14   :  { %s6283_s17 = smov [#allocation7]   ;;  %s6284_s19 = smov [#allocation10]  }
  0x15   :  { %s64_s18 = sshll.u32 %s6283_s17, 4  ;;  %s92_s20 = sshll.u32 %s6284_s19, 4  ;;  %s65_s18 = int_to_ptr.vmem [resolvable:$true] %s64_s18  ;;  %s93_s20 = int_to_ptr.vmem [resolvable:$true] %s92_s20 }
  0x16   :  { %s6140_s24 = scalar_lea.hbm %s7071_s4, 1024 }
  0x17   :  { %p6141_p8 = scmp.ne.s32.totalorder %s7071_s4, %s6140_s24  ;;  %p6144_p9 = scmp.lt.u32.totalorder %s6140_s24, %s7071_s4 }
  0x19   :  { %p6146_p10 = pnand %p6144_p9, %p6141_p8 }
  0x1b   :  { %6149 = shalt.err (!%p6146_p10)
}
  0x1c   :  { %s6150_s1 = scalar_lea.vmem %s65_s18, 1024  ;;  %p6155_p12 = scmp.lt.s32.totalorder %s65_s18, %s65_s18 }
  0x1d   :  { %p6151_p11 = scmp.ne.s32.totalorder %s65_s18, %s6150_s1  ;;  %p6156_p13 = scmp.lt.s32.totalorder %s6150_s1, %s6150_s1 }
  0x1f   :  { %p6157_p0 = por %p6156_p13, %p6155_p12 }
  0x21   :  { %p6158_p1 = pnand %p6157_p0, %p6151_p11 }
  0x23   :  { %6161 = shalt.err (!%p6158_p1)
}
  0x24   :  { %70 = dma.hbm_to_vmem [thread:$0]  %s7071_s4, 1024, %s65_s18, [#allocation8], %s6281_s13, %s6281_s13, %s6282_s14  }
  0x25   :  { %s6162_s16 = scalar_lea.hbm %s7075_s8, 1024 }
  0x26   :  { %p6163_p2 = scmp.ne.s32.totalorder %s7075_s8, %s6162_s16  ;;  %p6166_p3 = scmp.lt.u32.totalorder %s6162_s16, %s7075_s8 }
  0x28   :  { %p6168_p4 = pnand %p6166_p3, %p6163_p2 }
  0x2a   :  { %6171 = shalt.err (!%p6168_p4)
}
  0x2b   :  { %s6172_s24 = scalar_lea.vmem %s93_s20, 1024  ;;  %p6177_p6 = scmp.lt.s32.totalorder %s93_s20, %s93_s20 }
  0x2c   :  { %p6173_p5 = scmp.ne.s32.totalorder %s93_s20, %s6172_s24  ;;  %p6178_p7 = scmp.lt.s32.totalorder %s6172_s24, %s6172_s24 }
  0x2e   :  { %p6179_p8 = por %p6178_p7, %p6177_p6 }
  0x30   :  { %p6180_p9 = pnand %p6179_p8, %p6173_p5 }
  0x32   :  { %6183 = shalt.err (!%p6180_p9)
}
  0x33   :  { %98 = dma.hbm_to_vmem [thread:$0]  %s7075_s8, 1024, %s93_s20, [#allocation11], %s6281_s13, %s6281_s13, %s6282_s14  }
  0x34   :  { %s6285_s25 = smov [#allocation2]   ;;  %s6184_s1 = scalar_lea.hbm %s7067_s0, 16384 }
  0x35   :  { %s26_s26 = sshll.u32 %s6285_s25, 4  ;;  %p6185_p10 = scmp.ne.s32.totalorder %s7067_s0, %s6184_s1  ;;  %s27_s26 = int_to_ptr.vmem [resolvable:$true] %s26_s26 }
  0x36   :  { %p6188_p11 = scmp.lt.u32.totalorder %s6184_s1, %s7067_s0 }
  0x38   :  { %p6190_p12 = pnand %p6188_p11, %p6185_p10 }
  0x3a   :  { %6193 = shalt.err (!%p6190_p12)
}
  0x3b   :  { %s6194_s16 = scalar_lea.vmem %s27_s26, 16384  ;;  %p6199_p0 = scmp.lt.s32.totalorder %s27_s26, %s27_s26 }
  0x3c   :  { %p6195_p13 = scmp.ne.s32.totalorder %s27_s26, %s6194_s16  ;;  %p6200_p1 = scmp.lt.s32.totalorder %s6194_s16, %s6194_s16 }
  0x3e   :  { %p6201_p2 = por %p6200_p1, %p6199_p0 }
  0x40   :  { %p6202_p3 = pnand %p6201_p2, %p6195_p13 }
  0x42   :  { %6205 = shalt.err (!%p6202_p3)
}
  0x43   :  { %s6286_s8 = smov 256   ;;  %s6287_s20 = smov 16  }
  0x44   :  { %32 = dma.hbm_to_vmem [thread:$0]  %s7067_s0, 16384, %s27_s26, [#allocation3], %s6286_s8, %s6286_s8, %s6287_s20  }
  0x45   :  { %s6288_s21 = smov [#allocation6]   ;;  %s6289_s24 = smov [#allocation9]  }
  0x46   :  { %s50_s23 = sshll.u32 %s6288_s21, 4  ;;  %s78_s4 = sshll.u32 %s6289_s24, 4  ;;  %s51_s23 = int_to_ptr.vmem [resolvable:$true] %s50_s23  ;;  %s6414_s4 = int_to_ptr.vmem [resolvable:$true] %s78_s4 }
  0x47   :  { %s6206_s27 = scalar_lea.hbm %s7069_s2, 1024 }
  0x48   :  { %p6207_p4 = scmp.ne.s32.totalorder %s7069_s2, %s6206_s27  ;;  %p6210_p5 = scmp.lt.u32.totalorder %s6206_s27, %s7069_s2 }
  0x4a   :  { %p6212_p6 = pnand %p6210_p5, %p6207_p4 }
  0x4c   :  { %6215 = shalt.err (!%p6212_p6)
}
  0x4d   :  { %s6216_s0 = scalar_lea.vmem %s51_s23, 1024  ;;  %p6221_p8 = scmp.lt.s32.totalorder %s51_s23, %s51_s23 }
  0x4e   :  { %p6217_p7 = scmp.ne.s32.totalorder %s51_s23, %s6216_s0  ;;  %p6222_p9 = scmp.lt.s32.totalorder %s6216_s0, %s6216_s0 }
  0x50   :  { %p6223_p10 = por %p6222_p9, %p6221_p8 }
  0x52   :  { %p6224_p11 = pnand %p6223_p10, %p6217_p7 }
  0x54   :  { %6227 = shalt.err (!%p6224_p11)
}
  0x55   :  { %56 = dma.hbm_to_vmem [thread:$0]  %s7069_s2, 1024, %s51_s23, [#allocation5], %s6281_s13, %s6281_s13, %s6282_s14  }
  0x56   :  { %s6228_s8 = scalar_lea.hbm %s7073_s6, 1024 }
  0x57   :  { %p6229_p12 = scmp.ne.s32.totalorder %s7073_s6, %s6228_s8  ;;  %p6232_p13 = scmp.lt.u32.totalorder %s6228_s8, %s7073_s6 }
  0x59   :  { %p6234_p0 = pnand %p6232_p13, %p6229_p12 }
  0x5b   :  { %6237 = shalt.err (!%p6234_p0)
}
  0x5c   :  { %s6238_s24 = scalar_lea.vmem %s6414_s4, 1024  ;;  %p6243_p2 = scmp.lt.s32.totalorder %s6414_s4, %s6414_s4 }
  0x5d   :  { %p6239_p1 = scmp.ne.s32.totalorder %s6414_s4, %s6238_s24  ;;  %p6244_p3 = scmp.lt.s32.totalorder %s6238_s24, %s6238_s24 }
  0x5f   :  { %p6245_p4 = por %p6244_p3, %p6243_p2 }
  0x61   :  { %p6246_p5 = pnand %p6245_p4, %p6239_p1 }
  0x63   :  { %6249 = shalt.err (!%p6246_p5)
}
  0x64   :  { %84 = dma.hbm_to_vmem [thread:$0]  %s7073_s6, 1024, %s6414_s4, [#allocation8], %s6281_s13, %s6281_s13, %s6282_s14  }
  0x65   :  { %s6290_s18 = smov [#allocation12]   ;;  %s6250_s1 = scalar_lea.hbm %s7077_s10, 1024 }
  0x66   :  { %s106_s25 = sshll.u32 %s6290_s18, 4  ;;  %p6251_p6 = scmp.ne.s32.totalorder %s7077_s10, %s6250_s1  ;;  %s107_s25 = int_to_ptr.vmem [resolvable:$true] %s106_s25 }
  0x67   :  { %p6254_p7 = scmp.lt.u32.totalorder %s6250_s1, %s7077_s10 }
  0x69   :  { %p6256_p8 = pnand %p6254_p7, %p6251_p6 }
  0x6b   :  { %6259 = shalt.err (!%p6256_p8)
}
  0x6c   :  { %s6260_s30 = scalar_lea.vmem %s107_s25, 1024  ;;  %p6265_p10 = scmp.lt.s32.totalorder %s107_s25, %s107_s25 }
  0x6d   :  { %p6261_p9 = scmp.ne.s32.totalorder %s107_s25, %s6260_s30  ;;  %p6266_p11 = scmp.lt.s32.totalorder %s6260_s30, %s6260_s30 }
  0x6f   :  { %p6267_p12 = por %p6266_p11, %p6265_p10 }
  0x71   :  { %p6268_p13 = pnand %p6267_p12, %p6261_p9 }
  0x73   :  { %6271 = shalt.err (!%p6268_p13)
}
  0x74   :  { %112 = dma.hbm_to_vmem [thread:$0]  %s7077_s10, 1024, %s107_s25, [#allocation11], %s6281_s13, %s6281_s13, %s6282_s14  }
  0x75   :  { %6272 = dma.done.wait [#allocation3], 16384  }
  0x76   :  { %6273 = vsyncadd [#allocation3], 4294950912 }
  0x77   :  { %6274 = dma.done.wait [#allocation5], 5120  }
  0x78   :  { %6275 = vsyncadd [#allocation5], 4294962176 }
  0x79   :  { %6276 = dma.done.wait [#allocation8], 2048  }
  0x7a   :  { %6277 = vsyncadd [#allocation8], 4294965248 }
  0x7b   :  { %6278 = dma.done.wait [#allocation11], 2048  }
  0x7c   :  { %6279 = vsyncadd [#allocation11], 4294965248  ;;  %v6291_v0 = vmov 0   ;;  %v5726_v1 = vld [vmem:[#allocation4] sm:$0xff]   ;;  %v5727_v2 = vld [vmem:[#allocation4 + $0x8] sm:$0xff]  }
  0x7d   :  { %1161 = vmatprep.subr.bf16.mxu0 %v6291_v0  ;;  %v5728_v3 = vld [vmem:[#allocation4 + $0x10] sm:$0xff]   ;;  %v5729_v4 = vld [vmem:[#allocation4 + $0x18] sm:$0xff]   ;;  %v5730_v5 = vld [vmem:[#allocation4 + $0x20] sm:$0xff]  }
  0x7e   :  { %1162 = vmatpush1.bf16.msra.mxu0 %v5726_v1  ;;  %v5744_v6 = vld [vmem:[#allocation2 + $0x4] ss:$16 sps:$4 sm:$0xff]   ;;  %v5731_v7 = vld [vmem:[#allocation4 + $0x28] sm:$0xff]   ;;  %v5733_v9 = vld [vmem:[#allocation4 + $0x38] sm:$0xff]  }
  0x7f   :  { %1163 = vmatprep.subr.bf16.mxu0 %v6291_v0  ;;  %1193 = vmatprep.mubr.bf16.mxu0 %v5744_v6  ;;  %v5732_v8 = vld [vmem:[#allocation4 + $0x30] sm:$0xff]   ;;  %v5734_v10 = vld [vmem:[#allocation4 + $0x40] sm:$0xff]   ;;  %v5735_v11 = vld [vmem:[#allocation4 + $0x48] sm:$0xff]  }
  0x80   :  { %v5736_v12 = vld [vmem:[#allocation4 + $0x50] sm:$0xff]   ;;  %v5737_v13 = vld [vmem:[#allocation4 + $0x58] sm:$0xff]   ;;  %v5738_v14 = vld [vmem:[#allocation4 + $0x60] sm:$0xff]  }
  0x81   :  { %v5739_v15 = vld [vmem:[#allocation4 + $0x68] sm:$0xff]   ;;  %v5740_v16 = vld [vmem:[#allocation4 + $0x70] sm:$0xff]   ;;  %v5741_v17 = vld [vmem:[#allocation4 + $0x78] sm:$0xff]  }
  0x82   :  { %1164 = vmatpush1.bf16.msra.mxu0 %v5727_v2  ;;  %v5742_v18 = vld [vmem:[#allocation2] ss:$16 sps:$4 sm:$0xff]   ;;  %v5745_v19 = vld [vmem:[#allocation2 + $0x24] ss:$16 sps:$4 sm:$0xff]   ;;  %v5755_v21 = vld [vmem:[#allocation4 + $0x88] sm:$0xff]  }
  0x83   :  { %1165 = vmatprep.subr.bf16.mxu0 %v6291_v0  ;;  %v5748_v20 = vld [vmem:[#allocation4 + $0x80] sm:$0xff]   ;;  %v5762_v24 = vld [vmem:[#allocation4 + $0x90] sm:$0xff]   ;;  %v5769_v25 = vld [vmem:[#allocation4 + $0x98] sm:$0xff]  }
  0x84   :  { %v5747_v22 = vld [vmem:[#allocation2 + $0x20] ss:$16 sps:$4 sm:$0xff]   ;;  %v5749_v23 = vld [vmem:[#allocation2 + $0x44] ss:$16 sps:$4 sm:$0xff]   ;;  %v5783_v29 = vld [vmem:[#allocation4 + $0xa8] sm:$0xff]  }
  0x85   :  { %v5751_v26 = vld [vmem:[#allocation2 + $0x40] ss:$16 sps:$4 sm:$0xff]   ;;  %v5752_v27 = vld [vmem:[#allocation2 + $0x64] ss:$16 sps:$4 sm:$0xff]   ;;  %v5797_v33 = vld [vmem:[#allocation4 + $0xb8] sm:$0xff]  }
  0x86   :  { %1166 = vmatpush1.bf16.msra.mxu0 %v5728_v3  ;;  %v5776_v28 = vld [vmem:[#allocation4 + $0xa0] sm:$0xff]   ;;  %v5790_v32 = vld [vmem:[#allocation4 + $0xb0] sm:$0xff]   ;;  %v5811_v37 = vld [vmem:[#allocation4 + $0xc8] sm:$0xff]  }
  0x87   :  { %1167 = vmatprep.subr.bf16.mxu0 %v6291_v0  ;;  %v5754_v30 = vld [vmem:[#allocation2 + $0x60] ss:$16 sps:$4 sm:$0xff]   ;;  %v5756_v31 = vld [vmem:[#allocation2 + $0x84] ss:$16 sps:$4 sm:$0xff]   ;;  %v5825_v45 = vld [vmem:[#allocation4 + $0xd8] sm:$0xff]  }
  0x88   :  { %v5758_v34 = vld [vmem:[#allocation2 + $0x80] ss:$16 sps:$4 sm:$0xff]   ;;  %v5759_v35 = vld [vmem:[#allocation2 + $0xa4] ss:$16 sps:$4 sm:$0xff]   ;;  %v5839_v55 = vld [vmem:[#allocation4 + $0xe8] sm:$0xff]  }
  0x89   :  { %v5804_v36 = vld [vmem:[#allocation4 + $0xc0] sm:$0xff]   ;;  %v5818_v40 = vld [vmem:[#allocation4 + $0xd0] sm:$0xff]   ;;  %v5853_v2 = vld [vmem:[#allocation4 + $0xf8] sm:$0xff]  }
  0x8a   :  { %1168 = vmatpush1.bf16.msra.mxu0 %v5729_v4  ;;  %v5761_v38 = vld [vmem:[#allocation2 + $0xa0] ss:$16 sps:$4 sm:$0xff]   ;;  %v5763_v39 = vld [vmem:[#allocation2 + $0xc4] ss:$16 sps:$4 sm:$0xff]  }
  0x8b   :  { %1169 = vmatprep.subr.bf16.mxu0 %v6291_v0  ;;  %v5765_v41 = vld [vmem:[#allocation2 + $0xc0] ss:$16 sps:$4 sm:$0xff]   ;;  %v5766_v42 = vld [vmem:[#allocation2 + $0xe4] ss:$16 sps:$4 sm:$0xff]  }
  0x8c   :  { %v5768_v43 = vld [vmem:[#allocation2 + $0xe0] ss:$16 sps:$4 sm:$0xff]   ;;  %v5770_v44 = vld [vmem:[#allocation2 + $0x104] ss:$16 sps:$4 sm:$0xff]  }
  0x8d   :  { %v5772_v46 = vld [vmem:[#allocation2 + $0x100] ss:$16 sps:$4 sm:$0xff]   ;;  %v5773_v47 = vld [vmem:[#allocation2 + $0x124] ss:$16 sps:$4 sm:$0xff]  }
  0x8e   :  { %1170 = vmatpush1.bf16.msra.mxu0 %v5730_v5  ;;  %v5775_v48 = vld [vmem:[#allocation2 + $0x120] ss:$16 sps:$4 sm:$0xff]   ;;  %v5777_v49 = vld [vmem:[#allocation2 + $0x144] ss:$16 sps:$4 sm:$0xff]  }
  0x8f   :  { %1171 = vmatprep.subr.bf16.mxu0 %v6291_v0  ;;  %v5832_v50 = vld [vmem:[#allocation4 + $0xe0] sm:$0xff]   ;;  %v5846_v60 = vld [vmem:[#allocation4 + $0xf0] sm:$0xff]  }
  0x90   :  { %v5779_v51 = vld [vmem:[#allocation2 + $0x140] ss:$16 sps:$4 sm:$0xff]   ;;  %v5780_v52 = vld [vmem:[#allocation2 + $0x164] ss:$16 sps:$4 sm:$0xff]  }
  0x91   :  { %v5782_v53 = vld [vmem:[#allocation2 + $0x160] ss:$16 sps:$4 sm:$0xff]   ;;  %v5784_v54 = vld [vmem:[#allocation2 + $0x184] ss:$16 sps:$4 sm:$0xff]  }
  0x92   :  { %1172 = vmatpush1.bf16.msra.mxu0 %v5731_v7  ;;  %v5786_v56 = vld [vmem:[#allocation2 + $0x180] ss:$16 sps:$4 sm:$0xff]   ;;  %v5787_v57 = vld [vmem:[#allocation2 + $0x1a4] ss:$16 sps:$4 sm:$0xff]  }
  0x93   :  { %1173 = vmatprep.subr.bf16.mxu0 %v6291_v0  ;;  %v5789_v58 = vld [vmem:[#allocation2 + $0x1a0] ss:$16 sps:$4 sm:$0xff]   ;;  %v5791_v59 = vld [vmem:[#allocation2 + $0x1c4] ss:$16 sps:$4 sm:$0xff]  }
  0x94   :  { %v5793_v61 = vld [vmem:[#allocation2 + $0x1c0] ss:$16 sps:$4 sm:$0xff]   ;;  %v5794_v62 = vld [vmem:[#allocation2 + $0x1e4] ss:$16 sps:$4 sm:$0xff]  }
  0x95   :  { %v5796_v63 = vld [vmem:[#allocation2 + $0x1e0] ss:$16 sps:$4 sm:$0xff]   ;;  %v5798_v1 = vld [vmem:[#allocation2 + $0x204] ss:$16 sps:$4 sm:$0xff]  }
  0x96   :  { %1174 = vmatpush1.bf16.msra.mxu0 %v5732_v8  ;;  %v5800_v3 = vld [vmem:[#allocation2 + $0x200] ss:$16 sps:$4 sm:$0xff]   ;;  %v5801_v4 = vld [vmem:[#allocation2 + $0x224] ss:$16 sps:$4 sm:$0xff]  }
  0x97   :  { %1175 = vmatprep.subr.bf16.mxu0 %v6291_v0  ;;  %v5803_v5 = vld [vmem:[#allocation2 + $0x220] ss:$16 sps:$4 sm:$0xff]   ;;  %v5805_v6 = vld [vmem:[#allocation2 + $0x244] ss:$16 sps:$4 sm:$0xff]  }
  0x98   :  { %v5807_v7 = vld [vmem:[#allocation2 + $0x240] ss:$16 sps:$4 sm:$0xff]   ;;  %v5808_v8 = vld [vmem:[#allocation2 + $0x264] ss:$16 sps:$4 sm:$0xff]  }
  0x9a   :  { %1176 = vmatpush1.bf16.msra.mxu0 %v5733_v9  ;;  %v5810_v9 = vld [vmem:[#allocation2 + $0x260] ss:$16 sps:$4 sm:$0xff]  }
  0x9b   :  { %1177 = vmatprep.subr.bf16.mxu0 %v6291_v0 }
  0x9e   :  { %1178 = vmatpush1.bf16.msra.mxu0 %v5734_v10  ;;  %v5812_v10 = vld [vmem:[#allocation2 + $0x284] ss:$16 sps:$4 sm:$0xff]  }
  0x9f   :  { %1179 = vmatprep.subr.bf16.mxu0 %v6291_v0 }
  0xa2   :  { %1180 = vmatpush1.bf16.msra.mxu0 %v5735_v11  ;;  %v5814_v11 = vld [vmem:[#allocation2 + $0x280] ss:$16 sps:$4 sm:$0xff]  }
  0xa3   :  { %1181 = vmatprep.subr.bf16.mxu0 %v6291_v0 }
  0xa6   :  { %1182 = vmatpush1.bf16.msra.mxu0 %v5736_v12  ;;  %v5815_v12 = vld [vmem:[#allocation2 + $0x2a4] ss:$16 sps:$4 sm:$0xff]  }
  0xa7   :  { %1183 = vmatprep.subr.bf16.mxu0 %v6291_v0 }
  0xaa   :  { %1184 = vmatpush1.bf16.msra.mxu0 %v5737_v13  ;;  %v5869_v13 = vld [vmem:[#allocation6] sm:$0xff]  }
  0xab   :  { %1185 = vmatprep.subr.bf16.mxu0 %v6291_v0  ;;  %5442 = vmatprep.subr.bf16.mxu1 %v5869_v13 }
  0xac   :  { %5450 = vmatpush3.bf16.msra.mxu1 %v5869_v13 }
  0xae   :  { %1186 = vmatpush1.bf16.msra.mxu0 %v5738_v14  ;;  %v5817_v14 = vld [vmem:[#allocation2 + $0x2a0] ss:$16 sps:$4 sm:$0xff]  }
  0xaf   :  { %1187 = vmatprep.subr.bf16.mxu0 %v6291_v0 }
  0xb2   :  { %1188 = vmatpush1.bf16.msra.mxu0 %v5739_v15  ;;  %v5819_v15 = vld [vmem:[#allocation2 + $0x2c4] ss:$16 sps:$4 sm:$0xff]  }
  0xb3   :  { %1189 = vmatprep.subr.bf16.mxu0 %v6291_v0 }
  0xb6   :  { %1190 = vmatpush1.bf16.msra.mxu0 %v5740_v16  ;;  %v5821_v16 = vld [vmem:[#allocation2 + $0x2c0] ss:$16 sps:$4 sm:$0xff]  }
  0xb7   :  { %1191 = vmatprep.subr.bf16.mxu0 %v6291_v0 }
  0xba   :  { %1192 = vmatpush1.bf16.msra.mxu0 %v5741_v17  ;;  %v5822_v17 = vld [vmem:[#allocation2 + $0x2e4] ss:$16 sps:$4 sm:$0xff]  }
  0xbb   :  { %1450 = vmatprep.subr.bf16.mxu0 %v6291_v0 }
  0xbd   :  { %1194 = vmatmul.mubr.bf16.vlgmr.msra.gmra.mrb[0].mxu0 %v5742_v18  ;;  %v5824_v18 = vld [vmem:[#allocation2 + $0x2e0] ss:$16 sps:$4 sm:$0xff]  }
  0xbe   :  { %1201 = vmatprep.mubr.bf16.mxu0 %v5745_v19  ;;  %1451 = vmatpush1.bf16.msra.mxu0 %v5748_v20  ;;  %v5826_v19 = vld [vmem:[#allocation2 + $0x304] ss:$16 sps:$4 sm:$0xff]   ;;  %v5828_v20 = vld [vmem:[#allocation2 + $0x300] ss:$16 sps:$4 sm:$0xff]  }
  0xbf   :  { %1452 = vmatprep.subr.bf16.mxu0 %v6291_v0 }
  0xc2   :  { %1453 = vmatpush1.bf16.msra.mxu0 %v5755_v21  ;;  %v5829_v21 = vld [vmem:[#allocation2 + $0x324] ss:$16 sps:$4 sm:$0xff]  }
  0xc3   :  { %1454 = vmatprep.subr.bf16.mxu0 %v6291_v0 }
  0xc5   :  { %1202 = vmatmul.mubr.bf16.gmra.mrb[4].mxu0 %v5747_v22  ;;  %v5882_v22 = vld [vmem:[#allocation6 + $0x8] sm:$0xff]  }
  0xc6   :  { %1209 = vmatprep.mubr.bf16.mxu0 %v5749_v23  ;;  %1455 = vmatpush1.bf16.msra.mxu0 %v5762_v24  ;;  %v5831_v23 = vld [vmem:[#allocation2 + $0x320] ss:$16 sps:$4 sm:$0xff]   ;;  %v5833_v24 = vld [vmem:[#allocation2 + $0x344] ss:$16 sps:$4 sm:$0xff]  }
  0xc7   :  { %1456 = vmatprep.subr.bf16.mxu0 %v6291_v0  ;;  %5443 = vmatprep.subr.bf16.mxu1 %v5882_v22 }
  0xc8   :  { %5451 = vmatpush3.bf16.msra.mxu1 %v5882_v22 }
  0xca   :  { %1457 = vmatpush1.bf16.msra.mxu0 %v5769_v25  ;;  %v5835_v25 = vld [vmem:[#allocation2 + $0x340] ss:$16 sps:$4 sm:$0xff]  }
  0xcb   :  { %1458 = vmatprep.subr.bf16.mxu0 %v6291_v0 }
  0xcd   :  { %1210 = vmatmul.mubr.bf16.gmra.mrb[8].mxu0 %v5751_v26  ;;  %v5836_v26 = vld [vmem:[#allocation2 + $0x364] ss:$16 sps:$4 sm:$0xff]  }
  0xce   :  { %1217 = vmatprep.mubr.bf16.mxu0 %v5752_v27  ;;  %1459 = vmatpush1.bf16.msra.mxu0 %v5776_v28  ;;  %v5838_v27 = vld [vmem:[#allocation2 + $0x360] ss:$16 sps:$4 sm:$0xff]   ;;  %v5840_v28 = vld [vmem:[#allocation2 + $0x384] ss:$16 sps:$4 sm:$0xff]  }
  0xcf   :  { %1460 = vmatprep.subr.bf16.mxu0 %v6291_v0 }
  0xd2   :  { %1461 = vmatpush1.bf16.msra.mxu0 %v5783_v29  ;;  %v5842_v29 = vld [vmem:[#allocation2 + $0x380] ss:$16 sps:$4 sm:$0xff]  }
  0xd3   :  { %1462 = vmatprep.subr.bf16.mxu0 %v6291_v0 }
  0xd5   :  { %1218 = vmatmul.mubr.bf16.gmra.mrb[12].mxu0 %v5754_v30  ;;  %v5843_v30 = vld [vmem:[#allocation2 + $0x3a4] ss:$16 sps:$4 sm:$0xff]  }
  0xd6   :  { %1225 = vmatprep.mubr.bf16.mxu0 %v5756_v31  ;;  %1463 = vmatpush1.bf16.msra.mxu0 %v5790_v32  ;;  %v5895_v31 = vld [vmem:[#allocation6 + $0x10] sm:$0xff]  }
  0xd7   :  { %1464 = vmatprep.subr.bf16.mxu0 %v6291_v0  ;;  %5444 = vmatprep.subr.bf16.mxu1 %v5895_v31  ;;  %v5845_v32 = vld [vmem:[#allocation2 + $0x3a0] ss:$16 sps:$4 sm:$0xff]  }
  0xd8   :  { %5452 = vmatpush3.bf16.msra.mxu1 %v5895_v31 }
  0xda   :  { %1465 = vmatpush1.bf16.msra.mxu0 %v5797_v33  ;;  %v5847_v33 = vld [vmem:[#allocation2 + $0x3c4] ss:$16 sps:$4 sm:$0xff]  }
  0xdb   :  { %1466 = vmatprep.subr.bf16.mxu0 %v6291_v0 }
  0xdd   :  { %1226 = vmatmul.mubr.bf16.gmra.mrb[16].mxu0 %v5758_v34  ;;  %v5849_v34 = vld [vmem:[#allocation2 + $0x3c0] ss:$16 sps:$4 sm:$0xff]  }
  0xde   :  { %1233 = vmatprep.mubr.bf16.mxu0 %v5759_v35  ;;  %1467 = vmatpush1.bf16.msra.mxu0 %v5804_v36  ;;  %v5850_v35 = vld [vmem:[#allocation2 + $0x3e4] ss:$16 sps:$4 sm:$0xff]   ;;  %v5852_v36 = vld [vmem:[#allocation2 + $0x3e0] ss:$16 sps:$4 sm:$0xff]  }
  0xdf   :  { %1468 = vmatprep.subr.bf16.mxu0 %v6291_v0 }
  0xe2   :  { %1469 = vmatpush1.bf16.msra.mxu0 %v5811_v37  ;;  %v5856_v37 = vld [vmem:[#allocation2 + $0xc] ss:$16 sps:$4 sm:$0xff]  }
  0xe3   :  { %1470 = vmatprep.subr.bf16.mxu0 %v6291_v0 }
  0xe5   :  { %1234 = vmatmul.mubr.bf16.gmra.mrb[20].mxu0 %v5761_v38  ;;  %v5854_v38 = vld [vmem:[#allocation2 + $0x8] ss:$16 sps:$4 sm:$0xff]  }
  0xe6   :  { %1241 = vmatprep.mubr.bf16.mxu0 %v5763_v39  ;;  %1471 = vmatpush1.bf16.msra.mxu0 %v5818_v40  ;;  %v5857_v39 = vld [vmem:[#allocation2 + $0x2c] ss:$16 sps:$4 sm:$0xff]  }
  0xe7   :  { %1472 = vmatprep.subr.bf16.mxu0 %v6291_v0  ;;  %v5908_v40 = vld [vmem:[#allocation6 + $0x18] sm:$0xff]  }
  0xe8   :  { %5445 = vmatprep.subr.bf16.mxu1 %v5908_v40 }
  0xe9   :  { %5453 = vmatpush3.bf16.msra.mxu1 %v5908_v40 }
  0xea   :  { %1473 = vmatpush1.bf16.msra.mxu0 %v5825_v45  ;;  %v5865_v45 = vld [vmem:[#allocation2 + $0x68] ss:$16 sps:$4 sm:$0xff]  }
  0xeb   :  { %1474 = vmatprep.subr.bf16.mxu0 %v6291_v0 }
  0xed   :  { %1242 = vmatmul.mubr.bf16.gmra.mrb[24].mxu0 %v5765_v41  ;;  %v5859_v41 = vld [vmem:[#allocation2 + $0x28] ss:$16 sps:$4 sm:$0xff]  }
  0xee   :  { %1249 = vmatprep.mubr.bf16.mxu0 %v5766_v42  ;;  %1475 = vmatpush1.bf16.msra.mxu0 %v5832_v50  ;;  %v5860_v42 = vld [vmem:[#allocation2 + $0x4c] ss:$16 sps:$4 sm:$0xff]   ;;  %v5872_v50 = vld [vmem:[#allocation2 + $0xa8] ss:$16 sps:$4 sm:$0xff]  }
  0xef   :  { %1476 = vmatprep.subr.bf16.mxu0 %v6291_v0 }
  0xf2   :  { %1477 = vmatpush1.bf16.msra.mxu0 %v5839_v55  ;;  %v5879_v55 = vld [vmem:[#allocation2 + $0x10c] ss:$16 sps:$4 sm:$0xff]  }
  0xf3   :  { %1478 = vmatprep.subr.bf16.mxu0 %v6291_v0 }
  0xf5   :  { %1250 = vmatmul.mubr.bf16.gmra.mrb[28].mxu0 %v5768_v43  ;;  %v5862_v43 = vld [vmem:[#allocation2 + $0x48] ss:$16 sps:$4 sm:$0xff]  }
  0xf6   :  { %1257 = vmatprep.mubr.bf16.mxu0 %v5770_v44  ;;  %1479 = vmatpush1.bf16.msra.mxu0 %v5846_v60  ;;  %v5863_v44 = vld [vmem:[#allocation2 + $0x6c] ss:$16 sps:$4 sm:$0xff]  }
  0xf7   :  { %1480 = vmatprep.subr.bf16.mxu0 %v6291_v0  ;;  %v5886_v60 = vld [vmem:[#allocation2 + $0x14c] ss:$16 sps:$4 sm:$0xff]  }
  0xfa   :  { %1481 = vmatpush1.bf16.msra.mxu0 %v5853_v2  ;;  %v5894_v2 = vld [vmem:[#allocation2 + $0x188] ss:$16 sps:$4 sm:$0xff]  }
  0xfb   :  { %5042 = vmatprep.subr.bf16.mxu0 %v5869_v13 }
  0xfd   :  { %1258 = vmatmul.mubr.bf16.gmra.mrb[32].mxu0 %v5772_v46  ;;  %v5866_v46 = vld [vmem:[#allocation2 + $0x8c] ss:$16 sps:$4 sm:$0xff]  }
  0xfe   :  { %1265 = vmatprep.mubr.bf16.mxu0 %v5773_v47  ;;  %v5868_v47 = vld [vmem:[#allocation2 + $0x88] ss:$16 sps:$4 sm:$0xff]  }
 0x105   :  { %1266 = vmatmul.mubr.bf16.gmra.mrb[36].mxu0 %v5775_v48  ;;  %v5870_v48 = vld [vmem:[#allocation2 + $0xac] ss:$16 sps:$4 sm:$0xff]  }
 0x106   :  { %1273 = vmatprep.mubr.bf16.mxu0 %v5777_v49  ;;  %v5921_v49 = vld [vmem:[#allocation6 + $0x20] sm:$0xff]  }
 0x107   :  { %5446 = vmatprep.subr.bf16.mxu1 %v5921_v49 }
 0x108   :  { %5454 = vmatpush3.bf16.msra.mxu1 %v5921_v49 }
 0x10d   :  { %1274 = vmatmul.mubr.bf16.gmra.mrb[40].mxu0 %v5779_v51  ;;  %v5873_v51 = vld [vmem:[#allocation2 + $0xcc] ss:$16 sps:$4 sm:$0xff]  }
 0x10e   :  { %1281 = vmatprep.mubr.bf16.mxu0 %v5780_v52  ;;  %v5875_v52 = vld [vmem:[#allocation2 + $0xc8] ss:$16 sps:$4 sm:$0xff]  }
 0x115   :  { %1282 = vmatmul.mubr.bf16.gmra.mrb[44].mxu0 %v5782_v53  ;;  %v5876_v53 = vld [vmem:[#allocation2 + $0xec] ss:$16 sps:$4 sm:$0xff]  }
 0x116   :  { %1289 = vmatprep.mubr.bf16.mxu0 %v5784_v54  ;;  %v5878_v54 = vld [vmem:[#allocation2 + $0xe8] ss:$16 sps:$4 sm:$0xff]  }
 0x11d   :  { %1290 = vmatmul.mubr.bf16.gmra.mrb[48].mxu0 %v5786_v56  ;;  %v5881_v56 = vld [vmem:[#allocation2 + $0x108] ss:$16 sps:$4 sm:$0xff]  }
 0x11e   :  { %1297 = vmatprep.mubr.bf16.mxu0 %v5787_v57  ;;  %v5883_v57 = vld [vmem:[#allocation2 + $0x12c] ss:$16 sps:$4 sm:$0xff]  }
 0x125   :  { %1298 = vmatmul.mubr.bf16.gmra.mrb[52].mxu0 %v5789_v58  ;;  %v5934_v58 = vld [vmem:[#allocation6 + $0x28] sm:$0xff]  }
 0x126   :  { %1305 = vmatprep.mubr.bf16.mxu0 %v5791_v59  ;;  %5447 = vmatprep.subr.bf16.mxu1 %v5934_v58  ;;  %v5885_v59 = vld [vmem:[#allocation2 + $0x128] ss:$16 sps:$4 sm:$0xff]  }
 0x127   :  { %5455 = vmatpush3.bf16.msra.mxu1 %v5934_v58 }
 0x12d   :  { %1306 = vmatmul.mubr.bf16.gmra.mrb[56].mxu0 %v5793_v61  ;;  %v5888_v61 = vld [vmem:[#allocation2 + $0x148] ss:$16 sps:$4 sm:$0xff]  }
 0x12e   :  { %1313 = vmatprep.mubr.bf16.mxu0 %v5794_v62  ;;  %v5889_v62 = vld [vmem:[#allocation2 + $0x16c] ss:$16 sps:$4 sm:$0xff]  }
 0x135   :  { %1314 = vmatmul.mubr.bf16.gmra.mrb[60].mxu0 %v5796_v63  ;;  %v5891_v63 = vld [vmem:[#allocation2 + $0x168] ss:$16 sps:$4 sm:$0xff]  }
 0x136   :  { %1321 = vmatprep.mubr.bf16.mxu0 %v5798_v1  ;;  %v5892_v1 = vld [vmem:[#allocation2 + $0x18c] ss:$16 sps:$4 sm:$0xff]  }
 0x13d   :  { %1322 = vmatmul.mubr.bf16.gmra.mrb[64].mxu0 %v5800_v3  ;;  %v5896_v3 = vld [vmem:[#allocation2 + $0x1ac] ss:$16 sps:$4 sm:$0xff]  }
 0x13e   :  { %1329 = vmatprep.mubr.bf16.mxu0 %v5801_v4  ;;  %v5947_v4 = vld [vmem:[#allocation6 + $0x30] sm:$0xff]  }
 0x13f   :  { %5448 = vmatprep.subr.bf16.mxu1 %v5947_v4 }
 0x140   :  { %5456 = vmatpush3.bf16.msra.mxu1 %v5947_v4 }
 0x145   :  { %1330 = vmatmul.mubr.bf16.gmra.mrb[68].mxu0 %v5803_v5  ;;  %v5898_v5 = vld [vmem:[#allocation2 + $0x1a8] ss:$16 sps:$4 sm:$0xff]  }
 0x146   :  { %1337 = vmatprep.mubr.bf16.mxu0 %v5805_v6  ;;  %v5899_v6 = vld [vmem:[#allocation2 + $0x1cc] ss:$16 sps:$4 sm:$0xff]  }
 0x14d   :  { %1338 = vmatmul.mubr.bf16.gmra.mrb[72].mxu0 %v5807_v7  ;;  %v5901_v7 = vld [vmem:[#allocation2 + $0x1c8] ss:$16 sps:$4 sm:$0xff]  }
 0x14e   :  { %1345 = vmatprep.mubr.bf16.mxu0 %v5808_v8  ;;  %v5902_v8 = vld [vmem:[#allocation2 + $0x1ec] ss:$16 sps:$4 sm:$0xff]  }
 0x155   :  { %1346 = vmatmul.mubr.bf16.gmra.mrb[76].mxu0 %v5810_v9  ;;  %v5904_v9 = vld [vmem:[#allocation2 + $0x1e8] ss:$16 sps:$4 sm:$0xff]  }
 0x156   :  { %1353 = vmatprep.mubr.bf16.mxu0 %v5812_v10  ;;  %v5905_v10 = vld [vmem:[#allocation2 + $0x20c] ss:$16 sps:$4 sm:$0xff]  }
 0x15d   :  { %1354 = vmatmul.mubr.bf16.gmra.mrb[80].mxu0 %v5814_v11  ;;  %v5957_v11 = vld [vmem:[#allocation6 + $0x38] sm:$0xff]  }
 0x15e   :  { %1361 = vmatprep.mubr.bf16.mxu0 %v5815_v12  ;;  %v5907_v12 = vld [vmem:[#allocation2 + $0x208] ss:$16 sps:$4 sm:$0xff]   ;;  %5449 = vmatprep.subr.bf16.mxu1 %v5957_v11 }
 0x15f   :  { %5457 = vmatpush3.bf16.msra.mxu1 %v5957_v11 }
 0x160   :  { %2227 = vmatprep.subr.bf16.mxu1 %v6291_v0 }
 0x165   :  { %1362 = vmatmul.mubr.bf16.gmra.mrb[84].mxu0 %v5817_v14  ;;  %v5911_v14 = vld [vmem:[#allocation2 + $0x228] ss:$16 sps:$4 sm:$0xff]  }
 0x166   :  { %1369 = vmatprep.mubr.bf16.mxu0 %v5819_v15  ;;  %v5912_v15 = vld [vmem:[#allocation2 + $0x24c] ss:$16 sps:$4 sm:$0xff]  }
 0x16d   :  { %1370 = vmatmul.mubr.bf16.gmra.mrb[88].mxu0 %v5821_v16  ;;  %v5914_v16 = vld [vmem:[#allocation2 + $0x248] ss:$16 sps:$4 sm:$0xff]  }
 0x16e   :  { %1377 = vmatprep.mubr.bf16.mxu0 %v5822_v17  ;;  %v5915_v17 = vld [vmem:[#allocation2 + $0x26c] ss:$16 sps:$4 sm:$0xff]  }
 0x175   :  { %1378 = vmatmul.mubr.bf16.gmra.mrb[92].mxu0 %v5824_v18  ;;  %v5917_v18 = vld [vmem:[#allocation2 + $0x268] ss:$16 sps:$4 sm:$0xff]  }
 0x176   :  { %1385 = vmatprep.mubr.bf16.mxu0 %v5826_v19  ;;  %v5918_v19 = vld [vmem:[#allocation2 + $0x28c] ss:$16 sps:$4 sm:$0xff]  }
 0x17d   :  { %1386 = vmatmul.mubr.bf16.gmra.mrb[96].mxu0 %v5828_v20  ;;  %v5920_v20 = vld [vmem:[#allocation2 + $0x288] ss:$16 sps:$4 sm:$0xff]  }
 0x17e   :  { %1393 = vmatprep.mubr.bf16.mxu0 %v5829_v21  ;;  %v5922_v21 = vld [vmem:[#allocation2 + $0x2ac] ss:$16 sps:$4 sm:$0xff]  }
 0x185   :  { %1394 = vmatmul.mubr.bf16.gmra.mrb[100].mxu0 %v5831_v23  ;;  %v5925_v23 = vld [vmem:[#allocation2 + $0x2cc] ss:$16 sps:$4 sm:$0xff]  }
 0x186   :  { %1401 = vmatprep.mubr.bf16.mxu0 %v5833_v24  ;;  %v5927_v24 = vld [vmem:[#allocation2 + $0x2c8] ss:$16 sps:$4 sm:$0xff]  }
 0x18d   :  { %1402 = vmatmul.mubr.bf16.gmra.mrb[104].mxu0 %v5835_v25  ;;  %v5928_v25 = vld [vmem:[#allocation2 + $0x2ec] ss:$16 sps:$4 sm:$0xff]  }
 0x18e   :  { %1409 = vmatprep.mubr.bf16.mxu0 %v5836_v26  ;;  %v5930_v26 = vld [vmem:[#allocation2 + $0x2e8] ss:$16 sps:$4 sm:$0xff]  }
 0x195   :  { %1410 = vmatmul.mubr.bf16.gmra.mrb[108].mxu0 %v5838_v27  ;;  %v5931_v27 = vld [vmem:[#allocation2 + $0x30c] ss:$16 sps:$4 sm:$0xff]  }
 0x196   :  { %1417 = vmatprep.mubr.bf16.mxu0 %v5840_v28  ;;  %v5933_v28 = vld [vmem:[#allocation2 + $0x308] ss:$16 sps:$4 sm:$0xff]  }
 0x19d   :  { %1418 = vmatmul.mubr.bf16.gmra.mrb[112].mxu0 %v5842_v29  ;;  %v5935_v29 = vld [vmem:[#allocation2 + $0x32c] ss:$16 sps:$4 sm:$0xff]  }
 0x19e   :  { %1425 = vmatprep.mubr.bf16.mxu0 %v5843_v30  ;;  %v5937_v30 = vld [vmem:[#allocation2 + $0x328] ss:$16 sps:$4 sm:$0xff]  }
 0x1a5   :  { %1426 = vmatmul.mubr.bf16.gmra.mrb[116].mxu0 %v5845_v32  ;;  %v5940_v32 = vld [vmem:[#allocation2 + $0x348] ss:$16 sps:$4 sm:$0xff]  }
 0x1a6   :  { %1433 = vmatprep.mubr.bf16.mxu0 %v5847_v33  ;;  %v5941_v33 = vld [vmem:[#allocation2 + $0x36c] ss:$16 sps:$4 sm:$0xff]  }
 0x1ad   :  { %1434 = vmatmul.mubr.bf16.gmra.mrb[120].mxu0 %v5849_v34 }
 0x1ae   :  { %1441 = vmatprep.mubr.bf16.mxu0 %v5850_v35 }
 0x1b5   :  { %1442 = vmatmul.mubr.bf16.gmra.mrb[124].mxu0 %v5852_v36  ;;  %v5943_v36 = vld [vmem:[#allocation2 + $0x368] ss:$16 sps:$4 sm:$0xff]  }
 0x1b6   :  { %1482 = vmatprep.mubr.bf16.mxu0 %v5856_v37 }
 0x1bd   :  { %1483 = vmatmul.mubr.bf16.vlgmr.msra.gmra.mrb[0].mxu0 %v5854_v38  ;;  %v5944_v38 = vld [vmem:[#allocation2 + $0x38c] ss:$16 sps:$4 sm:$0xff]  }
 0x1be   :  { %1490 = vmatprep.mubr.bf16.mxu0 %v5857_v39  ;;  %5043 = vmatpush3.bf16.msra.mxu0 %v5869_v13  ;;  %v5909_v13 = vld [vmem:[#allocation2 + $0x22c] ss:$16 sps:$4 sm:$0xff]  }
 0x1bf   :  { %5044 = vmatprep.subr.bf16.mxu0 %v5882_v22 }
 0x1c2   :  { %5045 = vmatpush3.bf16.msra.mxu0 %v5882_v22  ;;  %v5924_v22 = vld [vmem:[#allocation2 + $0x2a8] ss:$16 sps:$4 sm:$0xff]  }
 0x1c3   :  { %5046 = vmatprep.subr.bf16.mxu0 %v5895_v31 }
 0x1c5   :  { %1491 = vmatmul.mubr.bf16.gmra.mrb[4].mxu0 %v5859_v41 }
 0x1c6   :  { %1498 = vmatprep.mubr.bf16.mxu0 %v5860_v42  ;;  %5047 = vmatpush3.bf16.msra.mxu0 %v5895_v31  ;;  %v5938_v31 = vld [vmem:[#allocation2 + $0x34c] ss:$16 sps:$4 sm:$0xff]  }
 0x1c7   :  { %5048 = vmatprep.subr.bf16.mxu0 %v5908_v40 }
 0x1ca   :  { %5049 = vmatpush3.bf16.msra.mxu0 %v5908_v40 }
 0x1cb   :  { %5050 = vmatprep.subr.bf16.mxu0 %v5921_v49 }
 0x1cd   :  { %1499 = vmatmul.mubr.bf16.gmra.mrb[8].mxu0 %v5862_v43  ;;  %v5946_v43 = vld [vmem:[#allocation2 + $0x388] ss:$16 sps:$4 sm:$0xff]  }
 0x1ce   :  { %1506 = vmatprep.mubr.bf16.mxu0 %v5863_v44  ;;  %5051 = vmatpush3.bf16.msra.mxu0 %v5921_v49 }
 0x1cf   :  { %5052 = vmatprep.subr.bf16.mxu0 %v5934_v58 }
 0x1d2   :  { %5053 = vmatpush3.bf16.msra.mxu0 %v5934_v58 }
 0x1d3   :  { %5054 = vmatprep.subr.bf16.mxu0 %v5947_v4 }
 0x1d5   :  { %1507 = vmatmul.mubr.bf16.gmra.mrb[12].mxu0 %v5865_v45  ;;  %v5948_v45 = vld [vmem:[#allocation2 + $0x3ac] ss:$16 sps:$4 sm:$0xff]  }
 0x1d6   :  { %1514 = vmatprep.mubr.bf16.mxu0 %v5866_v46  ;;  %5055 = vmatpush3.bf16.msra.mxu0 %v5947_v4 }
 0x1d7   :  { %5056 = vmatprep.subr.bf16.mxu0 %v5957_v11 }
 0x1da   :  { %5057 = vmatpush3.bf16.msra.mxu0 %v5957_v11 }
 0x1dd   :  { %1515 = vmatmul.mubr.bf16.gmra.mrb[16].mxu0 %v5868_v47 }
 0x1de   :  { %1522 = vmatprep.mubr.bf16.mxu0 %v5870_v48 }
 0x1e5   :  { %1523 = vmatmul.mubr.bf16.gmra.mrb[20].mxu0 %v5872_v50  ;;  %v5950_v50 = vld [vmem:[#allocation2 + $0x3a8] ss:$16 sps:$4 sm:$0xff]  }
 0x1e6   :  { %1530 = vmatprep.mubr.bf16.mxu0 %v5873_v51 }
 0x1ed   :  { %1531 = vmatmul.mubr.bf16.gmra.mrb[24].mxu0 %v5875_v52  ;;  %v5951_v52 = vld [vmem:[#allocation2 + $0x3cc] ss:$16 sps:$4 sm:$0xff]  }
 0x1ee   :  { %1538 = vmatprep.mubr.bf16.mxu0 %v5876_v53 }
 0x1f5   :  { %1539 = vmatmul.mubr.bf16.gmra.mrb[28].mxu0 %v5878_v54 }
 0x1f6   :  { %1546 = vmatprep.mubr.bf16.mxu0 %v5879_v55 }
 0x1fd   :  { %1547 = vmatmul.mubr.bf16.gmra.mrb[32].mxu0 %v5881_v56 }
 0x1fe   :  { %1554 = vmatprep.mubr.bf16.mxu0 %v5883_v57  ;;  %v5953_v57 = vld [vmem:[#allocation2 + $0x3c8] ss:$16 sps:$4 sm:$0xff]  }
 0x205   :  { %1555 = vmatmul.mubr.bf16.gmra.mrb[36].mxu0 %v5885_v59  ;;  %v5954_v59 = vld [vmem:[#allocation2 + $0x3ec] ss:$16 sps:$4 sm:$0xff]  }
 0x206   :  { %1562 = vmatprep.mubr.bf16.mxu0 %v5886_v60 }
 0x20d   :  { %1563 = vmatmul.mubr.bf16.gmra.mrb[40].mxu0 %v5888_v61 }
 0x20e   :  { %1570 = vmatprep.mubr.bf16.mxu0 %v5889_v62 }
 0x215   :  { %1571 = vmatmul.mubr.bf16.gmra.mrb[44].mxu0 %v5891_v63 }
 0x216   :  { %1578 = vmatprep.mubr.bf16.mxu0 %v5892_v1  ;;  %v5956_v1 = vld [vmem:[#allocation2 + $0x3e8] ss:$16 sps:$4 sm:$0xff]  }
 0x21d   :  { %1579 = vmatmul.mubr.bf16.gmra.mrb[48].mxu0 %v5894_v2 }
 0x21e   :  { %1586 = vmatprep.mubr.bf16.mxu0 %v5896_v3 }
 0x225   :  { %1587 = vmatmul.mubr.bf16.gmra.mrb[52].mxu0 %v5898_v5 }
 0x226   :  { %1594 = vmatprep.mubr.bf16.mxu0 %v5899_v6 }
 0x22d   :  { %1595 = vmatmul.mubr.bf16.gmra.mrb[56].mxu0 %v5901_v7 }
 0x22e   :  { %1602 = vmatprep.mubr.bf16.mxu0 %v5902_v8 }
 0x235   :  { %1603 = vmatmul.mubr.bf16.gmra.mrb[60].mxu0 %v5904_v9 }
 0x236   :  { %1610 = vmatprep.mubr.bf16.mxu0 %v5905_v10 }
 0x23d   :  { %1611 = vmatmul.mubr.bf16.gmra.mrb[64].mxu0 %v5907_v12 }
 0x23e   :  { %1618 = vmatprep.mubr.bf16.mxu0 %v5909_v13 }
 0x245   :  { %1619 = vmatmul.mubr.bf16.gmra.mrb[68].mxu0 %v5911_v14 }
 0x246   :  { %1626 = vmatprep.mubr.bf16.mxu0 %v5912_v15 }
 0x24d   :  { %1627 = vmatmul.mubr.bf16.gmra.mrb[72].mxu0 %v5914_v16 }
 0x24e   :  { %1634 = vmatprep.mubr.bf16.mxu0 %v5915_v17 }
 0x255   :  { %1635 = vmatmul.mubr.bf16.gmra.mrb[76].mxu0 %v5917_v18 }
 0x256   :  { %1642 = vmatprep.mubr.bf16.mxu0 %v5918_v19 }
 0x25d   :  { %1643 = vmatmul.mubr.bf16.gmra.mrb[80].mxu0 %v5920_v20 }
 0x25e   :  { %1650 = vmatprep.mubr.bf16.mxu0 %v5922_v21 }
 0x265   :  { %1651 = vmatmul.mubr.bf16.gmra.mrb[84].mxu0 %v5924_v22 }
 0x266   :  { %1658 = vmatprep.mubr.bf16.mxu0 %v5925_v23 }
 0x26d   :  { %1659 = vmatmul.mubr.bf16.gmra.mrb[88].mxu0 %v5927_v24 }
 0x26e   :  { %1666 = vmatprep.mubr.bf16.mxu0 %v5928_v25 }
 0x275   :  { %1667 = vmatmul.mubr.bf16.gmra.mrb[92].mxu0 %v5930_v26 }
 0x276   :  { %1674 = vmatprep.mubr.bf16.mxu0 %v5931_v27 }
 0x27d   :  { %1675 = vmatmul.mubr.bf16.gmra.mrb[96].mxu0 %v5933_v28 }
 0x27e   :  { %1682 = vmatprep.mubr.bf16.mxu0 %v5935_v29 }
 0x285   :  { %1683 = vmatmul.mubr.bf16.gmra.mrb[100].mxu0 %v5937_v30 }
 0x286   :  { %1690 = vmatprep.mubr.bf16.mxu0 %v5938_v31 }
 0x28d   :  { %1691 = vmatmul.mubr.bf16.gmra.mrb[104].mxu0 %v5940_v32 }
 0x28e   :  { %1698 = vmatprep.mubr.bf16.mxu0 %v5941_v33 }
 0x290   :  { %v1484_v34 = vpop.f32.mrb[0].mxu0 }
 0x291   :  { %v1486_v35 = vpop.f32.mrb[1].mxu0 }
 0x292   :  { %v1487_v37 = vpop.f32.mrb[2].mxu0 }
 0x293   :  { %v1739_v39 = vpack.c.bf16 %v1487_v37, %v1484_v34  ;;  %v1489_v40 = vpop.f32.mrb[3].mxu0 }
 0x295   :  { %1699 = vmatmul.mubr.bf16.gmra.mrb[108].mxu0 %v5943_v36 }
 0x296   :  { %1706 = vmatprep.mubr.bf16.mxu0 %v5944_v38 }
 0x298   :  { %v1492_v41 = vpop.f32.mrb[4].mxu0 }
 0x299   :  { %v1494_v42 = vpop.f32.mrb[5].mxu0 }
 0x29a   :  { %v1495_v44 = vpop.f32.mrb[6].mxu0 }
 0x29b   :  { %v1740_v46 = vpack.c.bf16 %v1495_v44, %v1492_v41  ;;  %v1497_v47 = vpop.f32.mrb[7].mxu0 }
 0x29d   :  { %1707 = vmatmul.mubr.bf16.gmra.mrb[112].mxu0 %v5946_v43 }
 0x29e   :  { %1714 = vmatprep.mubr.bf16.mxu0 %v5948_v45 }
 0x2a0   :  { %v1500_v48 = vpop.f32.mrb[8].mxu0 }
 0x2a1   :  { %v1502_v49 = vpop.f32.mrb[9].mxu0 }
 0x2a2   :  { %v1503_v51 = vpop.f32.mrb[10].mxu0 }
 0x2a3   :  { %v1741_v53 = vpack.c.bf16 %v1503_v51, %v1500_v48  ;;  %v1505_v54 = vpop.f32.mrb[11].mxu0 }
 0x2a5   :  { %1715 = vmatmul.mubr.bf16.gmra.mrb[116].mxu0 %v5950_v50 }
 0x2a6   :  { %1722 = vmatprep.mubr.bf16.mxu0 %v5951_v52 }
 0x2a8   :  { %v1508_v55 = vpop.f32.mrb[12].mxu0 }
 0x2a9   :  { %v1510_v56 = vpop.f32.mrb[13].mxu0 }
 0x2aa   :  { %v1511_v58 = vpop.f32.mrb[14].mxu0 }
 0x2ab   :  { %v1742_v60 = vpack.c.bf16 %v1511_v58, %v1508_v55  ;;  %v1513_v61 = vpop.f32.mrb[15].mxu0 }
 0x2ad   :  { %1723 = vmatmul.mubr.bf16.gmra.mrb[120].mxu0 %v5953_v57 }
 0x2ae   :  { %1730 = vmatprep.mubr.bf16.mxu0 %v5954_v59 }
 0x2b0   :  { %v1516_v62 = vpop.f32.mrb[16].mxu0 }
 0x2b1   :  { %v1518_v63 = vpop.f32.mrb[17].mxu0 }
 0x2b2   :  { %v1519_v2 = vpop.f32.mrb[18].mxu0 }
 0x2b3   :  { %v1743_v3 = vpack.c.bf16 %v1519_v2, %v1516_v62  ;;  %v1521_v4 = vpop.f32.mrb[19].mxu0 }
 0x2b5   :  { %1731 = vmatmul.mubr.bf16.gmra.mrb[124].mxu0 %v5956_v1 }
 0x2b6   :  { %5058 = vmatprep.mubr.bf16.mxu0 %v1739_v39 }
 0x2b8   :  { %v1524_v5 = vpop.f32.mrb[20].mxu0 }
 0x2b9   :  { %v1526_v6 = vpop.f32.mrb[21].mxu0 }
 0x2ba   :  { %v1527_v7 = vpop.f32.mrb[22].mxu0 }
 0x2bb   :  { %v1744_v8 = vpack.c.bf16 %v1527_v7, %v1524_v5  ;;  %v1529_v9 = vpop.f32.mrb[23].mxu0 }
 0x2bd   :  { %5059 = vmatmul.mubr.bf16.vlgmr.msra.gmra.mrb[128].mxu0 %v1740_v46 }
 0x2be   :  { %5062 = vmatprep.mubr.bf16.mxu0 %v1741_v53 }
 0x2c0   :  { %v1532_v10 = vpop.f32.mrb[24].mxu0 }
 0x2c1   :  { %v1534_v11 = vpop.f32.mrb[25].mxu0 }
 0x2c2   :  { %v1535_v12 = vpop.f32.mrb[26].mxu0 }
 0x2c3   :  { %v1745_v13 = vpack.c.bf16 %v1535_v12, %v1532_v10  ;;  %v1537_v14 = vpop.f32.mrb[27].mxu0 }
 0x2c5   :  { %5063 = vmatmul.mubr.bf16.gmra.mrb[132].mxu0 %v1742_v60 }
 0x2c6   :  { %5066 = vmatprep.mubr.bf16.mxu0 %v1743_v3 }
 0x2c8   :  { %v1540_v15 = vpop.f32.mrb[28].mxu0 }
 0x2c9   :  { %v1542_v16 = vpop.f32.mrb[29].mxu0 }
 0x2ca   :  { %v1543_v17 = vpop.f32.mrb[30].mxu0 }
 0x2cb   :  { %v1746_v18 = vpack.c.bf16 %v1543_v17, %v1540_v15  ;;  %v1545_v19 = vpop.f32.mrb[31].mxu0 }
 0x2cd   :  { %5067 = vmatmul.mubr.bf16.gmra.mrb[136].mxu0 %v1744_v8 }
 0x2ce   :  { %5070 = vmatprep.mubr.bf16.mxu0 %v1745_v13 }
 0x2d0   :  { %v1548_v20 = vpop.f32.mrb[32].mxu0 }
 0x2d1   :  { %v1550_v21 = vpop.f32.mrb[33].mxu0 }
 0x2d2   :  { %v1551_v22 = vpop.f32.mrb[34].mxu0 }
 0x2d3   :  { %v1747_v23 = vpack.c.bf16 %v1551_v22, %v1548_v20  ;;  %v1553_v24 = vpop.f32.mrb[35].mxu0 }
 0x2d5   :  { %5071 = vmatmul.mubr.bf16.gmra.mrb[140].mxu0 %v1746_v18 }
 0x2d6   :  { %5074 = vmatprep.mubr.bf16.mxu0 %v1747_v23 }
 0x2d8   :  { %v1556_v25 = vpop.f32.mrb[36].mxu0 }
 0x2d9   :  { %v1558_v26 = vpop.f32.mrb[37].mxu0 }
 0x2da   :  { %v1559_v27 = vpop.f32.mrb[38].mxu0 }
 0x2db   :  { %v1748_v28 = vpack.c.bf16 %v1559_v27, %v1556_v25  ;;  %v1561_v29 = vpop.f32.mrb[39].mxu0 }
 0x2dd   :  { %5075 = vmatmul.mubr.bf16.gmra.mrb[144].mxu0 %v1748_v28 }
 0x2e0   :  { %v1564_v30 = vpop.f32.mrb[40].mxu0 }
 0x2e1   :  { %v1566_v31 = vpop.f32.mrb[41].mxu0 }
 0x2e2   :  { %v1567_v32 = vpop.f32.mrb[42].mxu0 }
 0x2e3   :  { %v1749_v33 = vpack.c.bf16 %v1567_v32, %v1564_v30  ;;  %v1569_v34 = vpop.f32.mrb[43].mxu0 }
 0x2e5   :  { %5078 = vmatprep.mubr.bf16.mxu0 %v1749_v33 }
 0x2e8   :  { %v1572_v35 = vpop.f32.mrb[44].mxu0 }
 0x2e9   :  { %v1574_v36 = vpop.f32.mrb[45].mxu0 }
 0x2ea   :  { %v1575_v37 = vpop.f32.mrb[46].mxu0 }
 0x2eb   :  { %v1750_v38 = vpack.c.bf16 %v1575_v37, %v1572_v35  ;;  %v1577_v39 = vpop.f32.mrb[47].mxu0 }
 0x2ed   :  { %5079 = vmatmul.mubr.bf16.gmra.mrb[148].mxu0 %v1750_v38 }
 0x2f0   :  { %v1580_v40 = vpop.f32.mrb[48].mxu0 }
 0x2f1   :  { %v1582_v41 = vpop.f32.mrb[49].mxu0 }
 0x2f2   :  { %v1583_v42 = vpop.f32.mrb[50].mxu0 }
 0x2f3   :  { %v1585_v43 = vpop.f32.mrb[51].mxu0  ;;  %v1751_v44 = vpack.c.bf16 %v1583_v42, %v1580_v40 }
 0x2f5   :  { %5082 = vmatprep.mubr.bf16.mxu1 %v1751_v44 }
 0x2f8   :  { %v1588_v45 = vpop.f32.mrb[52].mxu0 }
 0x2f9   :  { %v1590_v46 = vpop.f32.mrb[53].mxu0 }
 0x2fa   :  { %v1591_v47 = vpop.f32.mrb[54].mxu0 }
 0x2fb   :  { %v1752_v48 = vpack.c.bf16 %v1591_v47, %v1588_v45  ;;  %v1593_v49 = vpop.f32.mrb[55].mxu0 }
 0x2fd   :  { %5083 = vmatmul.mubr.bf16.vlgmr.msra.gmra.mrb[0].mxu1 %v1752_v48 }
 0x300   :  { %v1596_v50 = vpop.f32.mrb[56].mxu0 }
 0x301   :  { %v1598_v51 = vpop.f32.mrb[57].mxu0 }
 0x302   :  { %v1599_v52 = vpop.f32.mrb[58].mxu0 }
 0x303   :  { %v1753_v53 = vpack.c.bf16 %v1599_v52, %v1596_v50  ;;  %v1601_v54 = vpop.f32.mrb[59].mxu0 }
 0x305   :  { %5086 = vmatprep.mubr.bf16.mxu1 %v1753_v53 }
 0x308   :  { %v1604_v55 = vpop.f32.mrb[60].mxu0 }
 0x309   :  { %v1606_v56 = vpop.f32.mrb[61].mxu0 }
 0x30a   :  { %v1607_v57 = vpop.f32.mrb[62].mxu0 }
 0x30b   :  { %v1754_v58 = vpack.c.bf16 %v1607_v57, %v1604_v55  ;;  %v1609_v59 = vpop.f32.mrb[63].mxu0 }
 0x30d   :  { %5087 = vmatmul.mubr.bf16.gmra.mrb[4].mxu1 %v1754_v58 }
 0x310   :  { %v1612_v60 = vpop.f32.mrb[64].mxu0 }
 0x311   :  { %v1614_v61 = vpop.f32.mrb[65].mxu0 }
 0x312   :  { %v1615_v62 = vpop.f32.mrb[66].mxu0 }
 0x313   :  { %v1755_v63 = vpack.c.bf16 %v1615_v62, %v1612_v60  ;;  %v1617_v1 = vpop.f32.mrb[67].mxu0 }
 0x315   :  { %5090 = vmatprep.mubr.bf16.mxu1 %v1755_v63 }
 0x318   :  { %v1620_v2 = vpop.f32.mrb[68].mxu0 }
 0x319   :  { %v1622_v3 = vpop.f32.mrb[69].mxu0 }
 0x31a   :  { %v1623_v4 = vpop.f32.mrb[70].mxu0 }
 0x31b   :  { %v1756_v5 = vpack.c.bf16 %v1623_v4, %v1620_v2  ;;  %v1625_v6 = vpop.f32.mrb[71].mxu0 }
 0x31d   :  { %5091 = vmatmul.mubr.bf16.gmra.mrb[8].mxu1 %v1756_v5 }
 0x320   :  { %v1628_v7 = vpop.f32.mrb[72].mxu0 }
 0x321   :  { %v1630_v8 = vpop.f32.mrb[73].mxu0 }
 0x322   :  { %v1631_v9 = vpop.f32.mrb[74].mxu0 }
 0x323   :  { %v1757_v10 = vpack.c.bf16 %v1631_v9, %v1628_v7  ;;  %v1633_v11 = vpop.f32.mrb[75].mxu0 }
 0x325   :  { %5094 = vmatprep.mubr.bf16.mxu1 %v1757_v10 }
 0x328   :  { %v1636_v12 = vpop.f32.mrb[76].mxu0 }
 0x329   :  { %v1638_v13 = vpop.f32.mrb[77].mxu0 }
 0x32a   :  { %v1639_v14 = vpop.f32.mrb[78].mxu0 }
 0x32b   :  { %v1758_v15 = vpack.c.bf16 %v1639_v14, %v1636_v12  ;;  %v1641_v16 = vpop.f32.mrb[79].mxu0  ;;  %v6502_v14 = vld [vmem:[%s7070_s3] ss:$0 sm:$0xff] }
 0x32d   :  { %5095 = vmatmul.mubr.bf16.gmra.mrb[12].mxu1 %v1758_v15  ;;  %v5990_v15 = vld [vmem:[#allocation2 + $0x4] ss:$16 sps:$4 sm:$0xff]  }
 0x330   :  { %v1644_v17 = vpop.f32.mrb[80].mxu0 }
 0x331   :  { %v1646_v18 = vpop.f32.mrb[81].mxu0 }
 0x332   :  { %v1647_v19 = vpop.f32.mrb[82].mxu0 }
 0x333   :  { %v1759_v20 = vpack.c.bf16 %v1647_v19, %v1644_v17  ;;  %v1649_v21 = vpop.f32.mrb[83].mxu0 }
 0x335   :  { %5098 = vmatprep.mubr.bf16.mxu1 %v1759_v20 }
 0x338   :  { %v1652_v22 = vpop.f32.mrb[84].mxu0 }
 0x339   :  { %v1654_v23 = vpop.f32.mrb[85].mxu0 }
 0x33a   :  { %v1655_v24 = vpop.f32.mrb[86].mxu0 }
 0x33b   :  { %v1760_v25 = vpack.c.bf16 %v1655_v24, %v1652_v22  ;;  %v1657_v26 = vpop.f32.mrb[87].mxu0 }
 0x33d   :  { %5099 = vmatmul.mubr.bf16.gmra.mrb[16].mxu1 %v1760_v25 }
 0x340   :  { %v1660_v27 = vpop.f32.mrb[88].mxu0 }
 0x341   :  { %v1662_v28 = vpop.f32.mrb[89].mxu0 }
 0x342   :  { %v1663_v29 = vpop.f32.mrb[90].mxu0 }
 0x343   :  { %v1761_v30 = vpack.c.bf16 %v1663_v29, %v1660_v27  ;;  %v1665_v31 = vpop.f32.mrb[91].mxu0 }
 0x345   :  { %5102 = vmatprep.mubr.bf16.mxu1 %v1761_v30 }
 0x348   :  { %v1668_v32 = vpop.f32.mrb[92].mxu0 }
 0x349   :  { %v1670_v33 = vpop.f32.mrb[93].mxu0 }
 0x34a   :  { %v1671_v34 = vpop.f32.mrb[94].mxu0 }
 0x34b   :  { %v1762_v35 = vpack.c.bf16 %v1671_v34, %v1668_v32  ;;  %v1673_v36 = vpop.f32.mrb[95].mxu0 }
 0x34d   :  { %5103 = vmatmul.mubr.bf16.gmra.mrb[20].mxu1 %v1762_v35 }
 0x350   :  { %v1676_v37 = vpop.f32.mrb[96].mxu0 }
 0x351   :  { %v1678_v38 = vpop.f32.mrb[97].mxu0 }
 0x352   :  { %v1679_v39 = vpop.f32.mrb[98].mxu0 }
 0x353   :  { %v1763_v40 = vpack.c.bf16 %v1679_v39, %v1676_v37  ;;  %v1681_v41 = vpop.f32.mrb[99].mxu0 }
 0x355   :  { %5106 = vmatprep.mubr.bf16.mxu1 %v1763_v40 }
 0x358   :  { %v1684_v42 = vpop.f32.mrb[100].mxu0 }
 0x359   :  { %v1686_v43 = vpop.f32.mrb[101].mxu0 }
 0x35a   :  { %v1687_v44 = vpop.f32.mrb[102].mxu0 }
 0x35b   :  { %v1764_v45 = vpack.c.bf16 %v1687_v44, %v1684_v42  ;;  %v1689_v46 = vpop.f32.mrb[103].mxu0 }
 0x35d   :  { %5107 = vmatmul.mubr.bf16.gmra.mrb[24].mxu1 %v1764_v45 }
 0x360   :  { %v1692_v47 = vpop.f32.mrb[104].mxu0 }
 0x361   :  { %v1694_v48 = vpop.f32.mrb[105].mxu0 }
 0x362   :  { %v1695_v49 = vpop.f32.mrb[106].mxu0 }
 0x363   :  { %v1765_v50 = vpack.c.bf16 %v1695_v49, %v1692_v47  ;;  %v1697_v51 = vpop.f32.mrb[107].mxu0 }
 0x365   :  { %5110 = vmatprep.mubr.bf16.mxu1 %v1765_v50 }
 0x368   :  { %v1700_v52 = vpop.f32.mrb[108].mxu0 }
 0x369   :  { %v1702_v53 = vpop.f32.mrb[109].mxu0 }
 0x36a   :  { %v1703_v54 = vpop.f32.mrb[110].mxu0 }
 0x36b   :  { %v1766_v55 = vpack.c.bf16 %v1703_v54, %v1700_v52  ;;  %v1705_v56 = vpop.f32.mrb[111].mxu0 }
 0x36d   :  { %5111 = vmatmul.mubr.bf16.gmra.mrb[28].mxu1 %v1766_v55 }
 0x370   :  { %v1708_v57 = vpop.f32.mrb[112].mxu0 }
 0x371   :  { %v1710_v58 = vpop.f32.mrb[113].mxu0 }
 0x372   :  { %v1711_v59 = vpop.f32.mrb[114].mxu0 }
 0x373   :  { %v1767_v60 = vpack.c.bf16 %v1711_v59, %v1708_v57  ;;  %v1713_v61 = vpop.f32.mrb[115].mxu0 }
 0x375   :  { %5114 = vmatprep.mubr.bf16.mxu1 %v1767_v60 }
 0x378   :  { %v1716_v62 = vpop.f32.mrb[116].mxu0 }
 0x379   :  { %v1718_v63 = vpop.f32.mrb[117].mxu0 }
 0x37a   :  { %v1719_v1 = vpop.f32.mrb[118].mxu0 }
 0x37b   :  { %v1768_v2 = vpack.c.bf16 %v1719_v1, %v1716_v62  ;;  %v1721_v3 = vpop.f32.mrb[119].mxu0 }
 0x37d   :  { %5115 = vmatmul.mubr.bf16.gmra.mrb[32].mxu1 %v1768_v2 }
 0x380   :  { %v1724_v4 = vpop.f32.mrb[120].mxu0 }
 0x381   :  { %v1726_v5 = vpop.f32.mrb[121].mxu0 }
 0x382   :  { %v1727_v6 = vpop.f32.mrb[122].mxu0 }
 0x383   :  { %v1769_v7 = vpack.c.bf16 %v1727_v6, %v1724_v4  ;;  %v1729_v8 = vpop.f32.mrb[123].mxu0 }
 0x385   :  { %5118 = vmatprep.mubr.bf16.mxu1 %v1769_v7 }
 0x388   :  { %v1732_v9 = vpop.f32.mrb[124].mxu0 }
 0x389   :  { %v1734_v10 = vpop.f32.mrb[125].mxu0 }
 0x38a   :  { %v1735_v11 = vpop.f32.mrb[126].mxu0 }
 0x38b   :  { %v1770_v12 = vpack.c.bf16 %v1735_v11, %v1732_v9  ;;  %v1737_v13 = vpop.f32.mrb[127].mxu0 }
 0x38d   :  { %5119 = vmatmul.mubr.bf16.gmra.mrb[36].mxu1 %v1770_v12 }
 0x38e   :  { %2259 = vmatprep.mubr.bf16.mxu1 %v5990_v15 }
 0x390   :  { %v5060_v16 = vpop.f32.mrb[128].mxu0 }
 0x391   :  { %v1885_v17 = vadd.f32 %v5060_v16, %v6502_v14  ;;  %v1876_v18 = vpop.f32.mrb[129].mxu0 }
 0x392   :  { %v1877_v19 = vadd.f32 %v6502_v14, %v1876_v18  ;;  %v5061_v20 = vpop.f32.mrb[130].mxu0 }
 0x393   :  { %v1888_v21 = vadd.f32 %v5061_v20, %v6502_v14  ;;  %v1879_v22 = vpop.f32.mrb[131].mxu0  ;;  %v2133_v24 = vmax.f32 %v1885_v17, 0.0 }
 0x394   :  { %v1880_v23 = vadd.f32 %v6502_v14, %v1879_v22  ;;  %v2131_v26 = vmax.f32 %v1877_v19, 0.0 }
 0x395   :  { %v2134_v25 = vmax.f32 %v1888_v21, 0.0 }
 0x396   :  { %v2132_v27 = vmax.f32 %v1880_v23, 0.0 }
 0x397   :  { %v2196_v28 = vpack.c.bf16 %v2134_v25, %v2133_v24 }
 0x398   :  { %v2195_v29 = vpack.c.bf16 %v2132_v27, %v2131_v26  ;;  %v5064_v30 = vpop.f32.mrb[132].mxu0 }
 0x399   :  { %v1901_v31 = vadd.f32 %v5064_v30, %v6502_v14  ;;  %v1892_v32 = vpop.f32.mrb[133].mxu0 }
 0x39a   :  { %v1893_v33 = vadd.f32 %v6502_v14, %v1892_v32  ;;  %v5065_v34 = vpop.f32.mrb[134].mxu0  ;;  %2228 = vmatpush1.bf16.msra.mxu1 %v2195_v29 }
 0x39b   :  { %v1904_v35 = vadd.f32 %v5065_v34, %v6502_v14  ;;  %v1895_v36 = vpop.f32.mrb[135].mxu0  ;;  %2229 = vmatprep.subr.bf16.mxu1 %v6291_v0  ;;  %v2137_v38 = vmax.f32 %v1901_v31, 0.0 }
 0x39c   :  { %v1896_v37 = vadd.f32 %v6502_v14, %v1895_v36  ;;  %v2135_v40 = vmax.f32 %v1893_v33, 0.0 }
 0x39d   :  { %v2138_v39 = vmax.f32 %v1904_v35, 0.0 }
 0x39e   :  { %v2136_v41 = vmax.f32 %v1896_v37, 0.0  ;;  %2230 = vmatpush1.bf16.msra.mxu1 %v2196_v28 }
 0x39f   :  { %v2198_v42 = vpack.c.bf16 %v2138_v39, %v2137_v38  ;;  %2231 = vmatprep.subr.bf16.mxu1 %v6291_v0 }
 0x3a0   :  { %v2197_v43 = vpack.c.bf16 %v2136_v41, %v2135_v40  ;;  %v5068_v44 = vpop.f32.mrb[136].mxu0 }
 0x3a1   :  { %v1917_v45 = vadd.f32 %v5068_v44, %v6502_v14  ;;  %v1908_v46 = vpop.f32.mrb[137].mxu0 }
 0x3a2   :  { %v1909_v47 = vadd.f32 %v6502_v14, %v1908_v46  ;;  %v5069_v48 = vpop.f32.mrb[138].mxu0  ;;  %2232 = vmatpush1.bf16.msra.mxu1 %v2197_v43 }
 0x3a3   :  { %v1920_v49 = vadd.f32 %v5069_v48, %v6502_v14  ;;  %v1911_v50 = vpop.f32.mrb[139].mxu0  ;;  %2233 = vmatprep.subr.bf16.mxu1 %v6291_v0  ;;  %v2141_v52 = vmax.f32 %v1917_v45, 0.0 }
 0x3a4   :  { %v1912_v51 = vadd.f32 %v6502_v14, %v1911_v50  ;;  %v2139_v54 = vmax.f32 %v1909_v47, 0.0 }
 0x3a5   :  { %v2142_v53 = vmax.f32 %v1920_v49, 0.0 }
 0x3a6   :  { %v2140_v55 = vmax.f32 %v1912_v51, 0.0  ;;  %2234 = vmatpush1.bf16.msra.mxu1 %v2198_v42 }
 0x3a7   :  { %v2200_v56 = vpack.c.bf16 %v2142_v53, %v2141_v52  ;;  %2235 = vmatprep.subr.bf16.mxu1 %v6291_v0 }
 0x3a8   :  { %v2199_v57 = vpack.c.bf16 %v2140_v55, %v2139_v54  ;;  %v5072_v58 = vpop.f32.mrb[140].mxu0 }
 0x3a9   :  { %v1933_v59 = vadd.f32 %v5072_v58, %v6502_v14  ;;  %v1924_v60 = vpop.f32.mrb[141].mxu0 }
 0x3aa   :  { %v1925_v61 = vadd.f32 %v6502_v14, %v1924_v60  ;;  %v5073_v62 = vpop.f32.mrb[142].mxu0  ;;  %2236 = vmatpush1.bf16.msra.mxu1 %v2199_v57 }
 0x3ab   :  { %v1936_v63 = vadd.f32 %v5073_v62, %v6502_v14  ;;  %v1927_v1 = vpop.f32.mrb[143].mxu0  ;;  %2237 = vmatprep.subr.bf16.mxu1 %v6291_v0  ;;  %v2145_v3 = vmax.f32 %v1933_v59, 0.0 }
 0x3ac   :  { %v1928_v2 = vadd.f32 %v6502_v14, %v1927_v1  ;;  %v2143_v5 = vmax.f32 %v1925_v61, 0.0 }
 0x3ad   :  { %v2146_v4 = vmax.f32 %v1936_v63, 0.0 }
 0x3ae   :  { %v2144_v6 = vmax.f32 %v1928_v2, 0.0  ;;  %2238 = vmatpush1.bf16.msra.mxu1 %v2200_v56 }
 0x3af   :  { %v2202_v7 = vpack.c.bf16 %v2146_v4, %v2145_v3  ;;  %2239 = vmatprep.subr.bf16.mxu1 %v6291_v0 }
 0x3b0   :  { %v2201_v8 = vpack.c.bf16 %v2144_v6, %v2143_v5  ;;  %v5076_v9 = vpop.f32.mrb[144].mxu0  ;;  %v5991_v6 = vld [vmem:[#allocation2] ss:$16 sps:$4 sm:$0xff]  }
 0x3b1   :  { %v1949_v10 = vadd.f32 %v5076_v9, %v6502_v14  ;;  %v1940_v11 = vpop.f32.mrb[145].mxu0  ;;  %v5992_v9 = vld [vmem:[#allocation2 + $0x24] ss:$16 sps:$4 sm:$0xff]  }
 0x3b2   :  { %v1941_v12 = vadd.f32 %v6502_v14, %v1940_v11  ;;  %v5077_v13 = vpop.f32.mrb[146].mxu0  ;;  %2240 = vmatpush1.bf16.msra.mxu1 %v2201_v8 }
 0x3b3   :  { %v1952_v15 = vadd.f32 %v5077_v13, %v6502_v14  ;;  %v1943_v16 = vpop.f32.mrb[147].mxu0  ;;  %2241 = vmatprep.subr.bf16.mxu1 %v6291_v0  ;;  %v2149_v18 = vmax.f32 %v1949_v10, 0.0 }
 0x3b4   :  { %v1944_v17 = vadd.f32 %v6502_v14, %v1943_v16  ;;  %v2147_v20 = vmax.f32 %v1941_v12, 0.0 }
 0x3b5   :  { %v2150_v19 = vmax.f32 %v1952_v15, 0.0 }
 0x3b6   :  { %v2148_v21 = vmax.f32 %v1944_v17, 0.0  ;;  %2242 = vmatpush1.bf16.msra.mxu1 %v2202_v7 }
 0x3b7   :  { %v2204_v22 = vpack.c.bf16 %v2150_v19, %v2149_v18  ;;  %2243 = vmatprep.subr.bf16.mxu1 %v6291_v0 }
 0x3b8   :  { %v2203_v23 = vpack.c.bf16 %v2148_v21, %v2147_v20  ;;  %v5993_v20 = vld [vmem:[#allocation2 + $0x20] ss:$16 sps:$4 sm:$0xff]   ;;  %v5994_v21 = vld [vmem:[#allocation2 + $0x44] ss:$16 sps:$4 sm:$0xff]  }
 0x3ba   :  { %2244 = vmatpush1.bf16.msra.mxu1 %v2203_v23 }
 0x3bb   :  { %2245 = vmatprep.subr.bf16.mxu1 %v6291_v0 }
 0x3be   :  { %2246 = vmatpush1.bf16.msra.mxu1 %v2204_v22 }
 0x3bf   :  { %2247 = vmatprep.subr.bf16.mxu1 %v6291_v0 }
 0x3c0   :  { %v5080_v24 = vpop.f32.mrb[148].mxu0 }
 0x3c1   :  { %v1965_v25 = vadd.f32 %v5080_v24, %v6502_v14  ;;  %v1956_v26 = vpop.f32.mrb[149].mxu0 }
 0x3c2   :  { %v1957_v27 = vadd.f32 %v6502_v14, %v1956_v26  ;;  %v5081_v28 = vpop.f32.mrb[150].mxu0 }
 0x3c3   :  { %v1968_v29 = vadd.f32 %v5081_v28, %v6502_v14  ;;  %v1959_v30 = vpop.f32.mrb[151].mxu0  ;;  %v2153_v32 = vmax.f32 %v1965_v25, 0.0  ;;  %v5995_v25 = vld [vmem:[#allocation2 + $0x40] ss:$16 sps:$4 sm:$0xff]   ;;  %v5996_v28 = vld [vmem:[#allocation2 + $0x64] ss:$16 sps:$4 sm:$0xff]  }
 0x3c4   :  { %v1960_v31 = vadd.f32 %v6502_v14, %v1959_v30  ;;  %v2151_v34 = vmax.f32 %v1957_v27, 0.0 }
 0x3c5   :  { %v2154_v33 = vmax.f32 %v1968_v29, 0.0 }
 0x3c6   :  { %v2152_v35 = vmax.f32 %v1960_v31, 0.0 }
 0x3c7   :  { %v2206_v36 = vpack.c.bf16 %v2154_v33, %v2153_v32 }
 0x3c8   :  { %v2205_v37 = vpack.c.bf16 %v2152_v35, %v2151_v34 }
 0x3ca   :  { %2248 = vmatpush1.bf16.msra.mxu1 %v2205_v37 }
 0x3cb   :  { %2249 = vmatprep.subr.bf16.mxu1 %v6291_v0 }
 0x3ce   :  { %2250 = vmatpush1.bf16.msra.mxu1 %v2206_v36 }
 0x3cf   :  { %2251 = vmatprep.subr.bf16.mxu1 %v6291_v0 }
 0x3d0   :  { %v5084_v38 = vpop.f32.mrb[0].mxu1 }
 0x3d1   :  { %v1981_v39 = vadd.f32 %v5084_v38, %v6502_v14  ;;  %v1972_v40 = vpop.f32.mrb[1].mxu1  ;;  %v5997_v38 = vld [vmem:[#allocation2 + $0x60] ss:$16 sps:$4 sm:$0xff]  }
 0x3d2   :  { %v1973_v41 = vadd.f32 %v6502_v14, %v1972_v40  ;;  %v5085_v42 = vpop.f32.mrb[2].mxu1 }
 0x3d3   :  { %v1984_v43 = vadd.f32 %v5085_v42, %v6502_v14  ;;  %v1975_v44 = vpop.f32.mrb[3].mxu1  ;;  %v2157_v46 = vmax.f32 %v1981_v39, 0.0  ;;  %v5998_v39 = vld [vmem:[#allocation2 + $0x84] ss:$16 sps:$4 sm:$0xff]  }
 0x3d4   :  { %v1976_v45 = vadd.f32 %v6502_v14, %v1975_v44  ;;  %v2155_v48 = vmax.f32 %v1973_v41, 0.0 }
 0x3d5   :  { %v2158_v47 = vmax.f32 %v1984_v43, 0.0  ;;  %v5999_v43 = vld [vmem:[#allocation2 + $0x80] ss:$16 sps:$4 sm:$0xff]  }
 0x3d6   :  { %v2156_v49 = vmax.f32 %v1976_v45, 0.0 }
 0x3d7   :  { %v2208_v50 = vpack.c.bf16 %v2158_v47, %v2157_v46  ;;  %v6000_v46 = vld [vmem:[#allocation2 + $0xa4] ss:$16 sps:$4 sm:$0xff]  }
 0x3d8   :  { %v2207_v51 = vpack.c.bf16 %v2156_v49, %v2155_v48 }
 0x3da   :  { %2252 = vmatpush1.bf16.msra.mxu1 %v2207_v51 }
 0x3db   :  { %2253 = vmatprep.subr.bf16.mxu1 %v6291_v0 }
 0x3de   :  { %2254 = vmatpush1.bf16.msra.mxu1 %v2208_v50 }
 0x3df   :  { %2255 = vmatprep.subr.bf16.mxu1 %v6291_v0 }
 0x3e0   :  { %v5088_v52 = vpop.f32.mrb[4].mxu1 }
 0x3e1   :  { %v1997_v53 = vadd.f32 %v5088_v52, %v6502_v14  ;;  %v1988_v54 = vpop.f32.mrb[5].mxu1 }
 0x3e2   :  { %v1989_v55 = vadd.f32 %v6502_v14, %v1988_v54  ;;  %v5089_v56 = vpop.f32.mrb[6].mxu1 }
 0x3e3   :  { %v2000_v57 = vadd.f32 %v5089_v56, %v6502_v14  ;;  %v1991_v58 = vpop.f32.mrb[7].mxu1  ;;  %v2161_v60 = vmax.f32 %v1997_v53, 0.0  ;;  %v6001_v56 = vld [vmem:[#allocation2 + $0xa0] ss:$16 sps:$4 sm:$0xff]  }
 0x3e4   :  { %v1992_v59 = vadd.f32 %v6502_v14, %v1991_v58  ;;  %v2159_v62 = vmax.f32 %v1989_v55, 0.0 }
 0x3e5   :  { %v2162_v61 = vmax.f32 %v2000_v57, 0.0  ;;  %v6002_v57 = vld [vmem:[#allocation2 + $0xc4] ss:$16 sps:$4 sm:$0xff]  }
 0x3e6   :  { %v2160_v63 = vmax.f32 %v1992_v59, 0.0 }
 0x3e7   :  { %v2210_v1 = vpack.c.bf16 %v2162_v61, %v2161_v60  ;;  %v6003_v61 = vld [vmem:[#allocation2 + $0xc0] ss:$16 sps:$4 sm:$0xff]  }
 0x3e8   :  { %v2209_v2 = vpack.c.bf16 %v2160_v63, %v2159_v62 }
 0x3ea   :  { %2256 = vmatpush1.bf16.msra.mxu1 %v2209_v2 }
 0x3eb   :  { %2257 = vmatprep.subr.bf16.mxu1 %v6291_v0 }
 0x3ee   :  { %2258 = vmatpush1.bf16.msra.mxu1 %v2210_v1  ;;  %v6004_v1 = vld [vmem:[#allocation2 + $0xe4] ss:$16 sps:$4 sm:$0xff]  }
 0x3ef   :  { %2516 = vmatprep.subr.bf16.mxu1 %v6291_v0 }
 0x3f0   :  { %v5092_v3 = vpop.f32.mrb[8].mxu1 }
 0x3f1   :  { %v2013_v4 = vadd.f32 %v5092_v3, %v6502_v14  ;;  %v2004_v5 = vpop.f32.mrb[9].mxu1  ;;  %2260 = vmatmul.mubr.bf16.vlgmr.msra.gmra.mrb[40].mxu1 %v5991_v6 }
 0x3f2   :  { %v2005_v7 = vadd.f32 %v6502_v14, %v2004_v5  ;;  %v5093_v8 = vpop.f32.mrb[10].mxu1  ;;  %2267 = vmatprep.mubr.bf16.mxu1 %v5992_v9 }
 0x3f3   :  { %v2016_v10 = vadd.f32 %v5093_v8, %v6502_v14  ;;  %v2007_v11 = vpop.f32.mrb[11].mxu1  ;;  %v2165_v13 = vmax.f32 %v2013_v4, 0.0 }
 0x3f4   :  { %v2008_v12 = vadd.f32 %v6502_v14, %v2007_v11  ;;  %v2163_v16 = vmax.f32 %v2005_v7, 0.0  ;;  %v6005_v11 = vld [vmem:[#allocation2 + $0xe0] ss:$16 sps:$4 sm:$0xff]  }
 0x3f5   :  { %v2166_v15 = vmax.f32 %v2016_v10, 0.0 }
 0x3f6   :  { %v2164_v17 = vmax.f32 %v2008_v12, 0.0  ;;  %v6006_v12 = vld [vmem:[#allocation2 + $0x104] ss:$16 sps:$4 sm:$0xff]  }
 0x3f7   :  { %v2212_v18 = vpack.c.bf16 %v2166_v15, %v2165_v13 }
 0x3f8   :  { %v2211_v19 = vpack.c.bf16 %v2164_v17, %v2163_v16  ;;  %v6007_v17 = vld [vmem:[#allocation2 + $0x100] ss:$16 sps:$4 sm:$0xff]  }
 0x3f9   :  { %2268 = vmatmul.mubr.bf16.gmra.mrb[44].mxu1 %v5993_v20  ;;  %v6008_v20 = vld [vmem:[#allocation2 + $0x124] ss:$16 sps:$4 sm:$0xff]  }
 0x3fa   :  { %2517 = vmatpush1.bf16.msra.mxu1 %v2211_v19  ;;  %2275 = vmatprep.mubr.bf16.mxu1 %v5994_v21 }
 0x3fb   :  { %2518 = vmatprep.subr.bf16.mxu1 %v6291_v0 }
 0x3fe   :  { %2519 = vmatpush1.bf16.msra.mxu1 %v2212_v18 }
 0x3ff   :  { %2520 = vmatprep.subr.bf16.mxu1 %v6291_v0 }
 0x400   :  { %v5096_v22 = vpop.f32.mrb[12].mxu1 }
 0x401   :  { %v2029_v23 = vadd.f32 %v5096_v22, %v6502_v14  ;;  %v2020_v24 = vpop.f32.mrb[13].mxu1  ;;  %2276 = vmatmul.mubr.bf16.gmra.mrb[48].mxu1 %v5995_v25 }
 0x402   :  { %v2021_v26 = vadd.f32 %v6502_v14, %v2020_v24  ;;  %v5097_v27 = vpop.f32.mrb[14].mxu1  ;;  %2283 = vmatprep.mubr.bf16.mxu1 %v5996_v28 }
 0x403   :  { %v2032_v29 = vadd.f32 %v5097_v27, %v6502_v14  ;;  %v2023_v30 = vpop.f32.mrb[15].mxu1  ;;  %v2169_v32 = vmax.f32 %v2029_v23, 0.0 }
 0x404   :  { %v2024_v31 = vadd.f32 %v6502_v14, %v2023_v30  ;;  %v2167_v34 = vmax.f32 %v2021_v26, 0.0  ;;  %v6009_v30 = vld [vmem:[#allocation2 + $0x120] ss:$16 sps:$4 sm:$0xff]  }
 0x405   :  { %v2170_v33 = vmax.f32 %v2032_v29, 0.0 }
 0x406   :  { %v2168_v35 = vmax.f32 %v2024_v31, 0.0  ;;  %v6010_v31 = vld [vmem:[#allocation2 + $0x144] ss:$16 sps:$4 sm:$0xff]  }
 0x407   :  { %v2214_v36 = vpack.c.bf16 %v2170_v33, %v2169_v32 }
 0x408   :  { %v2213_v37 = vpack.c.bf16 %v2168_v35, %v2167_v34  ;;  %v6011_v35 = vld [vmem:[#allocation2 + $0x140] ss:$16 sps:$4 sm:$0xff]  }
 0x409   :  { %2284 = vmatmul.mubr.bf16.gmra.mrb[52].mxu1 %v5997_v38  ;;  %v6012_v38 = vld [vmem:[#allocation2 + $0x164] ss:$16 sps:$4 sm:$0xff]  }
 0x40a   :  { %2521 = vmatpush1.bf16.msra.mxu1 %v2213_v37  ;;  %2291 = vmatprep.mubr.bf16.mxu1 %v5998_v39 }
 0x40b   :  { %2522 = vmatprep.subr.bf16.mxu1 %v6291_v0 }
 0x40e   :  { %2523 = vmatpush1.bf16.msra.mxu1 %v2214_v36 }
 0x40f   :  { %2524 = vmatprep.subr.bf16.mxu1 %v6291_v0 }
 0x410   :  { %v5100_v40 = vpop.f32.mrb[16].mxu1 }
 0x411   :  { %v2045_v41 = vadd.f32 %v5100_v40, %v6502_v14  ;;  %v2036_v42 = vpop.f32.mrb[17].mxu1  ;;  %2292 = vmatmul.mubr.bf16.gmra.mrb[56].mxu1 %v5999_v43 }
 0x412   :  { %v2037_v44 = vadd.f32 %v6502_v14, %v2036_v42  ;;  %v5101_v45 = vpop.f32.mrb[18].mxu1  ;;  %2299 = vmatprep.mubr.bf16.mxu1 %v6000_v46 }
 0x413   :  { %v2048_v47 = vadd.f32 %v5101_v45, %v6502_v14  ;;  %v2039_v48 = vpop.f32.mrb[19].mxu1  ;;  %v2173_v50 = vmax.f32 %v2045_v41, 0.0 }
 0x414   :  { %v2040_v49 = vadd.f32 %v6502_v14, %v2039_v48  ;;  %v2171_v52 = vmax.f32 %v2037_v44, 0.0  ;;  %v6013_v48 = vld [vmem:[#allocation2 + $0x160] ss:$16 sps:$4 sm:$0xff]  }
 0x415   :  { %v2174_v51 = vmax.f32 %v2048_v47, 0.0 }
 0x416   :  { %v2172_v53 = vmax.f32 %v2040_v49, 0.0  ;;  %v6014_v49 = vld [vmem:[#allocation2 + $0x184] ss:$16 sps:$4 sm:$0xff]  }
 0x417   :  { %v2216_v54 = vpack.c.bf16 %v2174_v51, %v2173_v50 }
 0x418   :  { %v2215_v55 = vpack.c.bf16 %v2172_v53, %v2171_v52  ;;  %v6015_v53 = vld [vmem:[#allocation2 + $0x180] ss:$16 sps:$4 sm:$0xff]  }
 0x419   :  { %2300 = vmatmul.mubr.bf16.gmra.mrb[60].mxu1 %v6001_v56  ;;  %v6016_v56 = vld [vmem:[#allocation2 + $0x1a4] ss:$16 sps:$4 sm:$0xff]  }
 0x41a   :  { %2525 = vmatpush1.bf16.msra.mxu1 %v2215_v55  ;;  %2307 = vmatprep.mubr.bf16.mxu1 %v6002_v57 }
 0x41b   :  { %2526 = vmatprep.subr.bf16.mxu1 %v6291_v0 }
 0x41e   :  { %2527 = vmatpush1.bf16.msra.mxu1 %v2216_v54 }
 0x41f   :  { %2528 = vmatprep.subr.bf16.mxu1 %v6291_v0 }
 0x420   :  { %v5104_v58 = vpop.f32.mrb[20].mxu1 }
 0x421   :  { %v2061_v59 = vadd.f32 %v5104_v58, %v6502_v14  ;;  %v2052_v60 = vpop.f32.mrb[21].mxu1  ;;  %2308 = vmatmul.mubr.bf16.gmra.mrb[64].mxu1 %v6003_v61 }
 0x422   :  { %v2053_v62 = vadd.f32 %v6502_v14, %v2052_v60  ;;  %v5105_v63 = vpop.f32.mrb[22].mxu1  ;;  %2315 = vmatprep.mubr.bf16.mxu1 %v6004_v1 }
 0x423   :  { %v2064_v2 = vadd.f32 %v5105_v63, %v6502_v14  ;;  %v2055_v3 = vpop.f32.mrb[23].mxu1  ;;  %v2177_v5 = vmax.f32 %v2061_v59, 0.0 }
 0x424   :  { %v2056_v4 = vadd.f32 %v6502_v14, %v2055_v3  ;;  %v2175_v7 = vmax.f32 %v2053_v62, 0.0  ;;  %v6017_v3 = vld [vmem:[#allocation2 + $0x1a0] ss:$16 sps:$4 sm:$0xff]  }
 0x425   :  { %v2178_v6 = vmax.f32 %v2064_v2, 0.0 }
 0x426   :  { %v2176_v8 = vmax.f32 %v2056_v4, 0.0  ;;  %v6018_v4 = vld [vmem:[#allocation2 + $0x1c4] ss:$16 sps:$4 sm:$0xff]  }
 0x427   :  { %v2218_v9 = vpack.c.bf16 %v2178_v6, %v2177_v5 }
 0x428   :  { %v2217_v10 = vpack.c.bf16 %v2176_v8, %v2175_v7  ;;  %v6019_v8 = vld [vmem:[#allocation2 + $0x1c0] ss:$16 sps:$4 sm:$0xff]  }
 0x429   :  { %2316 = vmatmul.mubr.bf16.gmra.mrb[68].mxu1 %v6005_v11  ;;  %v6020_v11 = vld [vmem:[#allocation2 + $0x1e4] ss:$16 sps:$4 sm:$0xff]  }
 0x42a   :  { %2529 = vmatpush1.bf16.msra.mxu1 %v2217_v10  ;;  %2323 = vmatprep.mubr.bf16.mxu1 %v6006_v12 }
 0x42b   :  { %2530 = vmatprep.subr.bf16.mxu1 %v6291_v0 }
 0x42e   :  { %2531 = vmatpush1.bf16.msra.mxu1 %v2218_v9 }
 0x42f   :  { %2532 = vmatprep.subr.bf16.mxu1 %v6291_v0 }
 0x430   :  { %v5108_v13 = vpop.f32.mrb[24].mxu1 }
 0x431   :  { %v2077_v15 = vadd.f32 %v5108_v13, %v6502_v14  ;;  %v2068_v16 = vpop.f32.mrb[25].mxu1  ;;  %2324 = vmatmul.mubr.bf16.gmra.mrb[72].mxu1 %v6007_v17 }
 0x432   :  { %v2069_v18 = vadd.f32 %v6502_v14, %v2068_v16  ;;  %v5109_v19 = vpop.f32.mrb[26].mxu1  ;;  %2331 = vmatprep.mubr.bf16.mxu1 %v6008_v20 }
 0x433   :  { %v2080_v21 = vadd.f32 %v5109_v19, %v6502_v14  ;;  %v2071_v22 = vpop.f32.mrb[27].mxu1  ;;  %v2181_v24 = vmax.f32 %v2077_v15, 0.0 }
 0x434   :  { %v2072_v23 = vadd.f32 %v6502_v14, %v2071_v22  ;;  %v2179_v26 = vmax.f32 %v2069_v18, 0.0  ;;  %v6021_v22 = vld [vmem:[#allocation2 + $0x1e0] ss:$16 sps:$4 sm:$0xff]  }
 0x435   :  { %v2182_v25 = vmax.f32 %v2080_v21, 0.0 }
 0x436   :  { %v2180_v27 = vmax.f32 %v2072_v23, 0.0  ;;  %v6022_v23 = vld [vmem:[#allocation2 + $0x204] ss:$16 sps:$4 sm:$0xff]  }
 0x437   :  { %v2220_v28 = vpack.c.bf16 %v2182_v25, %v2181_v24  ;;  %v6023_v24 = vld [vmem:[#allocation2 + $0x200] ss:$16 sps:$4 sm:$0xff]   ;;  %v6024_v25 = vld [vmem:[#allocation2 + $0x224] ss:$16 sps:$4 sm:$0xff]  }
 0x438   :  { %v2219_v29 = vpack.c.bf16 %v2180_v27, %v2179_v26  ;;  %v6025_v26 = vld [vmem:[#allocation2 + $0x220] ss:$16 sps:$4 sm:$0xff]  }
 0x439   :  { %2332 = vmatmul.mubr.bf16.gmra.mrb[76].mxu1 %v6009_v30  ;;  %v6027_v27 = vld [vmem:[#allocation2 + $0x240] ss:$16 sps:$4 sm:$0xff]   ;;  %v6030_v30 = vld [vmem:[#allocation2 + $0x284] ss:$16 sps:$4 sm:$0xff]  }
 0x43a   :  { %2533 = vmatpush1.bf16.msra.mxu1 %v2219_v29  ;;  %2339 = vmatprep.mubr.bf16.mxu1 %v6010_v31  ;;  %v6029_v29 = vld [vmem:[#allocation2 + $0x260] ss:$16 sps:$4 sm:$0xff]  }
 0x43b   :  { %2534 = vmatprep.subr.bf16.mxu1 %v6291_v0  ;;  %v6031_v31 = vld [vmem:[#allocation2 + $0x280] ss:$16 sps:$4 sm:$0xff]  }
 0x43e   :  { %2535 = vmatpush1.bf16.msra.mxu1 %v2220_v28  ;;  %v6028_v28 = vld [vmem:[#allocation2 + $0x264] ss:$16 sps:$4 sm:$0xff]  }
 0x43f   :  { %2536 = vmatprep.subr.bf16.mxu1 %v6291_v0 }
 0x440   :  { %v5112_v32 = vpop.f32.mrb[28].mxu1 }
 0x441   :  { %v2093_v33 = vadd.f32 %v5112_v32, %v6502_v14  ;;  %v2084_v34 = vpop.f32.mrb[29].mxu1  ;;  %2340 = vmatmul.mubr.bf16.gmra.mrb[80].mxu1 %v6011_v35  ;;  %v6033_v32 = vld [vmem:[#allocation2 + $0x2a0] ss:$16 sps:$4 sm:$0xff]   ;;  %v6036_v35 = vld [vmem:[#allocation2 + $0x2e4] ss:$16 sps:$4 sm:$0xff]  }
 0x442   :  { %v2085_v36 = vadd.f32 %v6502_v14, %v2084_v34  ;;  %v5113_v37 = vpop.f32.mrb[30].mxu1  ;;  %2347 = vmatprep.mubr.bf16.mxu1 %v6012_v38  ;;  %v6035_v34 = vld [vmem:[#allocation2 + $0x2c0] ss:$16 sps:$4 sm:$0xff]  }
 0x443   :  { %v2096_v39 = vadd.f32 %v5113_v37, %v6502_v14  ;;  %v2087_v40 = vpop.f32.mrb[31].mxu1  ;;  %v2185_v42 = vmax.f32 %v2093_v33, 0.0  ;;  %v6034_v33 = vld [vmem:[#allocation2 + $0x2c4] ss:$16 sps:$4 sm:$0xff]   ;;  %v6039_v38 = vld [vmem:[#allocation2 + $0x300] ss:$16 sps:$4 sm:$0xff]  }
 0x444   :  { %v2088_v41 = vadd.f32 %v6502_v14, %v2087_v40  ;;  %v2183_v44 = vmax.f32 %v2085_v36, 0.0  ;;  %v6037_v36 = vld [vmem:[#allocation2 + $0x2e0] ss:$16 sps:$4 sm:$0xff]   ;;  %v6038_v37 = vld [vmem:[#allocation2 + $0x304] ss:$16 sps:$4 sm:$0xff]  }
 0x445   :  { %v2186_v43 = vmax.f32 %v2096_v39, 0.0  ;;  %v6040_v39 = vld [vmem:[#allocation2 + $0x324] ss:$16 sps:$4 sm:$0xff]   ;;  %v6041_v40 = vld [vmem:[#allocation2 + $0x320] ss:$16 sps:$4 sm:$0xff]  }
 0x446   :  { %v2184_v45 = vmax.f32 %v2088_v41, 0.0  ;;  %v6042_v41 = vld [vmem:[#allocation2 + $0x344] ss:$16 sps:$4 sm:$0xff]  }
 0x447   :  { %v2222_v46 = vpack.c.bf16 %v2186_v43, %v2185_v42  ;;  %v6043_v42 = vld [vmem:[#allocation2 + $0x340] ss:$16 sps:$4 sm:$0xff]   ;;  %v6044_v43 = vld [vmem:[#allocation2 + $0x364] ss:$16 sps:$4 sm:$0xff]  }
 0x448   :  { %v2221_v47 = vpack.c.bf16 %v2184_v45, %v2183_v44  ;;  %v6045_v44 = vld [vmem:[#allocation2 + $0x360] ss:$16 sps:$4 sm:$0xff]   ;;  %v6046_v45 = vld [vmem:[#allocation2 + $0x384] ss:$16 sps:$4 sm:$0xff]  }
 0x449   :  { %2348 = vmatmul.mubr.bf16.gmra.mrb[84].mxu1 %v6013_v48  ;;  %v6049_v48 = vld [vmem:[#allocation2 + $0x3a0] ss:$16 sps:$4 sm:$0xff]  }
 0x44a   :  { %2537 = vmatpush1.bf16.msra.mxu1 %v2221_v47  ;;  %2355 = vmatprep.mubr.bf16.mxu1 %v6014_v49  ;;  %v6048_v47 = vld [vmem:[#allocation2 + $0x3a4] ss:$16 sps:$4 sm:$0xff]  }
 0x44b   :  { %2538 = vmatprep.subr.bf16.mxu1 %v6291_v0  ;;  %v6050_v49 = vld [vmem:[#allocation2 + $0x3c4] ss:$16 sps:$4 sm:$0xff]  }
 0x44e   :  { %2539 = vmatpush1.bf16.msra.mxu1 %v2222_v46  ;;  %v6047_v46 = vld [vmem:[#allocation2 + $0x380] ss:$16 sps:$4 sm:$0xff]  }
 0x44f   :  { %2540 = vmatprep.subr.bf16.mxu1 %v6291_v0 }
 0x450   :  { %v5116_v50 = vpop.f32.mrb[32].mxu1 }
 0x451   :  { %v2109_v51 = vadd.f32 %v5116_v50, %v6502_v14  ;;  %v2100_v52 = vpop.f32.mrb[33].mxu1  ;;  %2356 = vmatmul.mubr.bf16.gmra.mrb[88].mxu1 %v6015_v53  ;;  %v6051_v50 = vld [vmem:[#allocation2 + $0x3c0] ss:$16 sps:$4 sm:$0xff]   ;;  %v6054_v53 = vld [vmem:[#allocation2 + $0xc] ss:$16 sps:$4 sm:$0xff]  }
 0x452   :  { %v2101_v54 = vadd.f32 %v6502_v14, %v2100_v52  ;;  %v5117_v55 = vpop.f32.mrb[34].mxu1  ;;  %2363 = vmatprep.mubr.bf16.mxu1 %v6016_v56  ;;  %v6053_v52 = vld [vmem:[#allocation2 + $0x3e0] ss:$16 sps:$4 sm:$0xff]   ;;  %v6057_v56 = vld [vmem:[#allocation2 + $0x28] ss:$16 sps:$4 sm:$0xff]  }
 0x453   :  { %v2112_v57 = vadd.f32 %v5117_v55, %v6502_v14  ;;  %v2103_v58 = vpop.f32.mrb[35].mxu1  ;;  %v2189_v60 = vmax.f32 %v2109_v51, 0.0  ;;  %v6052_v51 = vld [vmem:[#allocation2 + $0x3e4] ss:$16 sps:$4 sm:$0xff]   ;;  %v6056_v55 = vld [vmem:[#allocation2 + $0x2c] ss:$16 sps:$4 sm:$0xff]  }
 0x454   :  { %v2104_v59 = vadd.f32 %v6502_v14, %v2103_v58  ;;  %v2187_v62 = vmax.f32 %v2101_v54, 0.0  ;;  %v6055_v54 = vld [vmem:[#allocation2 + $0x8] ss:$16 sps:$4 sm:$0xff]  }
 0x455   :  { %v2190_v61 = vmax.f32 %v2112_v57, 0.0  ;;  %v6058_v57 = vld [vmem:[#allocation2 + $0x4c] ss:$16 sps:$4 sm:$0xff]   ;;  %v6059_v58 = vld [vmem:[#allocation2 + $0x48] ss:$16 sps:$4 sm:$0xff]  }
 0x456   :  { %v2188_v63 = vmax.f32 %v2104_v59, 0.0  ;;  %v6060_v59 = vld [vmem:[#allocation2 + $0x6c] ss:$16 sps:$4 sm:$0xff]  }
 0x457   :  { %v2224_v1 = vpack.c.bf16 %v2190_v61, %v2189_v60  ;;  %v6061_v60 = vld [vmem:[#allocation2 + $0x68] ss:$16 sps:$4 sm:$0xff]   ;;  %v6062_v61 = vld [vmem:[#allocation2 + $0x8c] ss:$16 sps:$4 sm:$0xff]  }
 0x458   :  { %v2223_v2 = vpack.c.bf16 %v2188_v63, %v2187_v62  ;;  %v6063_v62 = vld [vmem:[#allocation2 + $0x88] ss:$16 sps:$4 sm:$0xff]   ;;  %v6064_v63 = vld [vmem:[#allocation2 + $0xac] ss:$16 sps:$4 sm:$0xff]  }
 0x459   :  { %2364 = vmatmul.mubr.bf16.gmra.mrb[92].mxu1 %v6017_v3  ;;  %v6067_v3 = vld [vmem:[#allocation2 + $0xc8] ss:$16 sps:$4 sm:$0xff]  }
 0x45a   :  { %2541 = vmatpush1.bf16.msra.mxu1 %v2223_v2  ;;  %2371 = vmatprep.mubr.bf16.mxu1 %v6018_v4  ;;  %v6066_v2 = vld [vmem:[#allocation2 + $0xcc] ss:$16 sps:$4 sm:$0xff]  }
 0x45b   :  { %2542 = vmatprep.subr.bf16.mxu1 %v6291_v0  ;;  %v6068_v4 = vld [vmem:[#allocation2 + $0xec] ss:$16 sps:$4 sm:$0xff]  }
 0x45e   :  { %2543 = vmatpush1.bf16.msra.mxu1 %v2224_v1  ;;  %v6065_v1 = vld [vmem:[#allocation2 + $0xa8] ss:$16 sps:$4 sm:$0xff]  }
 0x45f   :  { %2544 = vmatprep.subr.bf16.mxu1 %v6291_v0 }
 0x460   :  { %v5120_v5 = vpop.f32.mrb[36].mxu1 }
 0x461   :  { %v2125_v6 = vadd.f32 %v5120_v5, %v6502_v14  ;;  %v2116_v7 = vpop.f32.mrb[37].mxu1  ;;  %2372 = vmatmul.mubr.bf16.gmra.mrb[96].mxu1 %v6019_v8  ;;  %v6069_v5 = vld [vmem:[#allocation2 + $0xe8] ss:$16 sps:$4 sm:$0xff]  }
 0x462   :  { %v2117_v9 = vadd.f32 %v6502_v14, %v2116_v7  ;;  %v5121_v10 = vpop.f32.mrb[38].mxu1  ;;  %2379 = vmatprep.mubr.bf16.mxu1 %v6020_v11  ;;  %v5958_v7 = vld [vmem:[#allocation7] sm:$0xff]   ;;  %v6071_v8 = vld [vmem:[#allocation2 + $0x108] ss:$16 sps:$4 sm:$0xff]   ;;  %v5960_v11 = vld [vmem:[#allocation7 + $0x10] sm:$0xff]  }
 0x463   :  { %v2128_v12 = vadd.f32 %v5121_v10, %v6502_v14  ;;  %v2119_v13 = vpop.f32.mrb[39].mxu1  ;;  %v2193_v16 = vmax.f32 %v2125_v6, 0.0  ;;  %v6070_v6 = vld [vmem:[#allocation2 + $0x10c] ss:$16 sps:$4 sm:$0xff]   ;;  %5122 = vmatprep.subr.bf16.mxu0 %v5958_v7 }
 0x464   :  { %v2120_v15 = vadd.f32 %v6502_v14, %v2119_v13  ;;  %v2191_v18 = vmax.f32 %v2117_v9, 0.0  ;;  %v6026_v14 = vld [vmem:[#allocation2 + $0x244] ss:$16 sps:$4 sm:$0xff]   ;;  %v5959_v9 = vld [vmem:[#allocation7 + $0x8] sm:$0xff]   ;;  %5123 = vmatpush3.bf16.msra.mxu0 %v5958_v7  ;;  %v5961_v13 = vld [vmem:[#allocation7 + $0x18] sm:$0xff]  }
 0x465   :  { %v2194_v17 = vmax.f32 %v2128_v12, 0.0  ;;  %v6072_v10 = vld [vmem:[#allocation2 + $0x12c] ss:$16 sps:$4 sm:$0xff]   ;;  %5124 = vmatprep.subr.bf16.mxu0 %v5959_v9  ;;  %v6073_v12 = vld [vmem:[#allocation2 + $0x128] ss:$16 sps:$4 sm:$0xff]  }
 0x466   :  { %v2192_v19 = vmax.f32 %v2120_v15, 0.0  ;;  %v6074_v15 = vld [vmem:[#allocation2 + $0x14c] ss:$16 sps:$4 sm:$0xff]  }
 0x467   :  { %v2226_v20 = vpack.c.bf16 %v2194_v17, %v2193_v16  ;;  %v5962_v16 = vld [vmem:[#allocation7 + $0x20] sm:$0xff]   ;;  %v6075_v17 = vld [vmem:[#allocation2 + $0x148] ss:$16 sps:$4 sm:$0xff]  }
 0x468   :  { %v2225_v21 = vpack.c.bf16 %v2192_v19, %v2191_v18  ;;  %5125 = vmatpush3.bf16.msra.mxu0 %v5959_v9  ;;  %v6076_v18 = vld [vmem:[#allocation2 + $0x16c] ss:$16 sps:$4 sm:$0xff]  }
 0x469   :  { %2380 = vmatmul.mubr.bf16.gmra.mrb[100].mxu1 %v6021_v22  ;;  %5126 = vmatprep.subr.bf16.mxu0 %v5960_v11  ;;  %v5963_v19 = vld [vmem:[#allocation7 + $0x28] sm:$0xff]  }
 0x46a   :  { %2545 = vmatpush1.bf16.msra.mxu1 %v2225_v21  ;;  %2387 = vmatprep.mubr.bf16.mxu1 %v6022_v23  ;;  %v6077_v21 = vld [vmem:[#allocation2 + $0x168] ss:$16 sps:$4 sm:$0xff]   ;;  %v6078_v22 = vld [vmem:[#allocation2 + $0x18c] ss:$16 sps:$4 sm:$0xff]  }
 0x46b   :  { %2546 = vmatprep.subr.bf16.mxu1 %v6291_v0  ;;  %v6032_v0 = vld [vmem:[#allocation2 + $0x2a4] ss:$16 sps:$4 sm:$0xff]   ;;  %v5965_v23 = vld [vmem:[#allocation7 + $0x38] sm:$0xff]  }
 0x46c   :  { %5127 = vmatpush3.bf16.msra.mxu0 %v5960_v11  ;;  %v6114_v11 = vld [vmem:[#allocation2 + $0x3cc] ss:$16 sps:$4 sm:$0xff]  }
 0x46d   :  { %5128 = vmatprep.subr.bf16.mxu0 %v5961_v13 }
 0x46e   :  { %2547 = vmatpush1.bf16.msra.mxu1 %v2226_v20  ;;  %v5964_v20 = vld [vmem:[#allocation7 + $0x30] sm:$0xff]  }
 0x470   :  { %5129 = vmatpush3.bf16.msra.mxu0 %v5961_v13 }
 0x471   :  { %2388 = vmatmul.mubr.bf16.gmra.mrb[104].mxu1 %v6023_v24  ;;  %5130 = vmatprep.subr.bf16.mxu0 %v5962_v16  ;;  %v6079_v24 = vld [vmem:[#allocation2 + $0x188] ss:$16 sps:$4 sm:$0xff]  }
 0x472   :  { %2395 = vmatprep.mubr.bf16.mxu1 %v6024_v25  ;;  %v6080_v25 = vld [vmem:[#allocation2 + $0x1ac] ss:$16 sps:$4 sm:$0xff]  }
 0x474   :  { %5131 = vmatpush3.bf16.msra.mxu0 %v5962_v16 }
 0x475   :  { %5132 = vmatprep.subr.bf16.mxu0 %v5963_v19 }
 0x478   :  { %5133 = vmatpush3.bf16.msra.mxu0 %v5963_v19  ;;  %v6116_v19 = vld [vmem:[#allocation2 + $0x3ec] ss:$16 sps:$4 sm:$0xff]  }
 0x479   :  { %2396 = vmatmul.mubr.bf16.gmra.mrb[108].mxu1 %v6025_v26  ;;  %5134 = vmatprep.subr.bf16.mxu0 %v5964_v20  ;;  %v6081_v26 = vld [vmem:[#allocation2 + $0x1a8] ss:$16 sps:$4 sm:$0xff]  }
 0x47a   :  { %2403 = vmatprep.mubr.bf16.mxu1 %v6026_v14  ;;  %v6082_v14 = vld [vmem:[#allocation2 + $0x1cc] ss:$16 sps:$4 sm:$0xff]  }
 0x47c   :  { %5135 = vmatpush3.bf16.msra.mxu0 %v5964_v20 }
 0x47d   :  { %5136 = vmatprep.subr.bf16.mxu0 %v5965_v23 }
 0x480   :  { %5137 = vmatpush3.bf16.msra.mxu0 %v5965_v23 }
 0x481   :  { %2404 = vmatmul.mubr.bf16.gmra.mrb[112].mxu1 %v6027_v27  ;;  %v6083_v27 = vld [vmem:[#allocation2 + $0x1c8] ss:$16 sps:$4 sm:$0xff]  }
 0x482   :  { %2411 = vmatprep.mubr.bf16.mxu1 %v6028_v28  ;;  %v6084_v28 = vld [vmem:[#allocation2 + $0x1ec] ss:$16 sps:$4 sm:$0xff]  }
 0x489   :  { %2412 = vmatmul.mubr.bf16.gmra.mrb[116].mxu1 %v6029_v29  ;;  %v6085_v29 = vld [vmem:[#allocation2 + $0x1e8] ss:$16 sps:$4 sm:$0xff]  }
 0x48a   :  { %2419 = vmatprep.mubr.bf16.mxu1 %v6030_v30  ;;  %v6086_v30 = vld [vmem:[#allocation2 + $0x20c] ss:$16 sps:$4 sm:$0xff]  }
 0x491   :  { %2420 = vmatmul.mubr.bf16.gmra.mrb[120].mxu1 %v6031_v31  ;;  %v6087_v31 = vld [vmem:[#allocation2 + $0x208] ss:$16 sps:$4 sm:$0xff]  }
 0x492   :  { %2427 = vmatprep.mubr.bf16.mxu1 %v6032_v0  ;;  %v6088_v0 = vld [vmem:[#allocation2 + $0x22c] ss:$16 sps:$4 sm:$0xff]  }
 0x499   :  { %2428 = vmatmul.mubr.bf16.gmra.mrb[124].mxu1 %v6033_v32  ;;  %v6089_v32 = vld [vmem:[#allocation2 + $0x228] ss:$16 sps:$4 sm:$0xff]  }
 0x49a   :  { %2435 = vmatprep.mubr.bf16.mxu1 %v6034_v33  ;;  %v6090_v33 = vld [vmem:[#allocation2 + $0x24c] ss:$16 sps:$4 sm:$0xff]  }
 0x4a1   :  { %2436 = vmatmul.mubr.bf16.gmra.mrb[128].mxu1 %v6035_v34  ;;  %v6091_v34 = vld [vmem:[#allocation2 + $0x248] ss:$16 sps:$4 sm:$0xff]  }
 0x4a2   :  { %2443 = vmatprep.mubr.bf16.mxu1 %v6036_v35  ;;  %v6092_v35 = vld [vmem:[#allocation2 + $0x26c] ss:$16 sps:$4 sm:$0xff]  }
 0x4a9   :  { %2444 = vmatmul.mubr.bf16.gmra.mrb[132].mxu1 %v6037_v36  ;;  %v6093_v36 = vld [vmem:[#allocation2 + $0x268] ss:$16 sps:$4 sm:$0xff]  }
 0x4aa   :  { %2451 = vmatprep.mubr.bf16.mxu1 %v6038_v37  ;;  %v6094_v37 = vld [vmem:[#allocation2 + $0x28c] ss:$16 sps:$4 sm:$0xff]  }
 0x4b1   :  { %2452 = vmatmul.mubr.bf16.gmra.mrb[136].mxu1 %v6039_v38  ;;  %v6095_v38 = vld [vmem:[#allocation2 + $0x288] ss:$16 sps:$4 sm:$0xff]  }
 0x4b2   :  { %2459 = vmatprep.mubr.bf16.mxu1 %v6040_v39  ;;  %v6096_v39 = vld [vmem:[#allocation2 + $0x2ac] ss:$16 sps:$4 sm:$0xff]  }
 0x4b9   :  { %2460 = vmatmul.mubr.bf16.gmra.mrb[140].mxu1 %v6041_v40  ;;  %v6097_v40 = vld [vmem:[#allocation2 + $0x2a8] ss:$16 sps:$4 sm:$0xff]  }
 0x4ba   :  { %2467 = vmatprep.mubr.bf16.mxu1 %v6042_v41  ;;  %v6098_v41 = vld [vmem:[#allocation2 + $0x2cc] ss:$16 sps:$4 sm:$0xff]  }
 0x4c1   :  { %2468 = vmatmul.mubr.bf16.gmra.mrb[144].mxu1 %v6043_v42  ;;  %v6099_v42 = vld [vmem:[#allocation2 + $0x2c8] ss:$16 sps:$4 sm:$0xff]  }
 0x4c2   :  { %2475 = vmatprep.mubr.bf16.mxu1 %v6044_v43  ;;  %v6100_v43 = vld [vmem:[#allocation2 + $0x2ec] ss:$16 sps:$4 sm:$0xff]  }
 0x4c9   :  { %2476 = vmatmul.mubr.bf16.gmra.mrb[148].mxu1 %v6045_v44  ;;  %v6101_v44 = vld [vmem:[#allocation2 + $0x2e8] ss:$16 sps:$4 sm:$0xff]  }
 0x4ca   :  { %2483 = vmatprep.mubr.bf16.mxu1 %v6046_v45  ;;  %v6102_v45 = vld [vmem:[#allocation2 + $0x30c] ss:$16 sps:$4 sm:$0xff]  }
 0x4d1   :  { %2484 = vmatmul.mubr.bf16.gmra.mrb[152].mxu1 %v6047_v46  ;;  %v5966_v46 = vld [vmem:[#allocation9] sm:$0xff]  }
 0x4d2   :  { %2491 = vmatprep.mubr.bf16.mxu1 %v6048_v47  ;;  %v6103_v47 = vld [vmem:[#allocation2 + $0x308] ss:$16 sps:$4 sm:$0xff]   ;;  %5202 = vmatprep.subr.bf16.mxu1 %v5966_v46 }
 0x4d9   :  { %2492 = vmatmul.mubr.bf16.gmra.mrb[156].mxu1 %v6049_v48  ;;  %v6104_v48 = vld [vmem:[#allocation2 + $0x32c] ss:$16 sps:$4 sm:$0xff]  }
 0x4da   :  { %2499 = vmatprep.mubr.bf16.mxu1 %v6050_v49  ;;  %v6105_v49 = vld [vmem:[#allocation2 + $0x328] ss:$16 sps:$4 sm:$0xff]  }
 0x4e1   :  { %2500 = vmatmul.mubr.bf16.gmra.mrb[160].mxu1 %v6051_v50  ;;  %v6106_v50 = vld [vmem:[#allocation2 + $0x34c] ss:$16 sps:$4 sm:$0xff]  }
 0x4e2   :  { %2507 = vmatprep.mubr.bf16.mxu1 %v6052_v51  ;;  %v6107_v51 = vld [vmem:[#allocation2 + $0x348] ss:$16 sps:$4 sm:$0xff]  }
 0x4e9   :  { %2508 = vmatmul.mubr.bf16.gmra.mrb[164].mxu1 %v6053_v52  ;;  %v6108_v52 = vld [vmem:[#allocation2 + $0x36c] ss:$16 sps:$4 sm:$0xff]  }
 0x4ea   :  { %2548 = vmatprep.mubr.bf16.mxu1 %v6054_v53 }
 0x4f1   :  { %2549 = vmatmul.mubr.bf16.vlgmr.msra.gmra.mrb[40].mxu1 %v6055_v54 }
 0x4f2   :  { %2556 = vmatprep.mubr.bf16.mxu1 %v6056_v55  ;;  %5203 = vmatpush3.bf16.msra.mxu1 %v5966_v46 }
 0x4f9   :  { %2557 = vmatmul.mubr.bf16.gmra.mrb[44].mxu1 %v6057_v56 }
 0x4fa   :  { %2564 = vmatprep.mubr.bf16.mxu1 %v6058_v57 }
 0x501   :  { %2565 = vmatmul.mubr.bf16.gmra.mrb[48].mxu1 %v6059_v58  ;;  %v6109_v58 = vld [vmem:[#allocation2 + $0x368] ss:$16 sps:$4 sm:$0xff]  }
 0x502   :  { %2572 = vmatprep.mubr.bf16.mxu1 %v6060_v59  ;;  %v6110_v59 = vld [vmem:[#allocation2 + $0x38c] ss:$16 sps:$4 sm:$0xff]  }
 0x509   :  { %2573 = vmatmul.mubr.bf16.gmra.mrb[52].mxu1 %v6061_v60 }
 0x50a   :  { %2580 = vmatprep.mubr.bf16.mxu1 %v6062_v61 }
 0x511   :  { %2581 = vmatmul.mubr.bf16.gmra.mrb[56].mxu1 %v6063_v62 }
 0x512   :  { %2588 = vmatprep.mubr.bf16.mxu1 %v6064_v63 }
 0x519   :  { %2589 = vmatmul.mubr.bf16.gmra.mrb[60].mxu1 %v6065_v1 }
 0x51a   :  { %2596 = vmatprep.mubr.bf16.mxu1 %v6066_v2  ;;  %v5967_v2 = vld [vmem:[#allocation9 + $0x8] sm:$0xff]  }
 0x51b   :  { %5204 = vmatprep.subr.bf16.mxu1 %v5967_v2 }
 0x51c   :  { %5205 = vmatpush3.bf16.msra.mxu1 %v5967_v2  ;;  %v5972_v2 = vld [vmem:[#allocation9 + $0x30] sm:$0xff]  }
 0x521   :  { %2597 = vmatmul.mubr.bf16.gmra.mrb[64].mxu1 %v6067_v3  ;;  %v6111_v3 = vld [vmem:[#allocation2 + $0x388] ss:$16 sps:$4 sm:$0xff]  }
 0x522   :  { %2604 = vmatprep.mubr.bf16.mxu1 %v6068_v4  ;;  %v6112_v4 = vld [vmem:[#allocation2 + $0x3ac] ss:$16 sps:$4 sm:$0xff]  }
 0x529   :  { %2605 = vmatmul.mubr.bf16.gmra.mrb[68].mxu1 %v6069_v5 }
 0x52a   :  { %2612 = vmatprep.mubr.bf16.mxu1 %v6070_v6 }
 0x531   :  { %2613 = vmatmul.mubr.bf16.gmra.mrb[72].mxu1 %v6071_v8 }
 0x532   :  { %2620 = vmatprep.mubr.bf16.mxu1 %v6072_v10  ;;  %v6113_v10 = vld [vmem:[#allocation2 + $0x3a8] ss:$16 sps:$4 sm:$0xff]  }
 0x539   :  { %2621 = vmatmul.mubr.bf16.gmra.mrb[76].mxu1 %v6073_v12 }
 0x53a   :  { %2628 = vmatprep.mubr.bf16.mxu1 %v6074_v15 }
 0x541   :  { %2629 = vmatmul.mubr.bf16.gmra.mrb[80].mxu1 %v6075_v17 }
 0x542   :  { %2636 = vmatprep.mubr.bf16.mxu1 %v6076_v18  ;;  %v6115_v18 = vld [vmem:[#allocation2 + $0x3c8] ss:$16 sps:$4 sm:$0xff]  }
 0x549   :  { %2637 = vmatmul.mubr.bf16.gmra.mrb[84].mxu1 %v6077_v21 }
 0x54a   :  { %2644 = vmatprep.mubr.bf16.mxu1 %v6078_v22 }
 0x551   :  { %2645 = vmatmul.mubr.bf16.gmra.mrb[88].mxu1 %v6079_v24 }
 0x552   :  { %2652 = vmatprep.mubr.bf16.mxu1 %v6080_v25  ;;  %v6117_v25 = vld [vmem:[#allocation2 + $0x3e8] ss:$16 sps:$4 sm:$0xff]  }
 0x559   :  { %2653 = vmatmul.mubr.bf16.gmra.mrb[92].mxu1 %v6081_v26 }
 0x55a   :  { %2660 = vmatprep.mubr.bf16.mxu1 %v6082_v14 }
 0x561   :  { %2661 = vmatmul.mubr.bf16.gmra.mrb[96].mxu1 %v6083_v27 }
 0x562   :  { %2668 = vmatprep.mubr.bf16.mxu1 %v6084_v28 }
 0x569   :  { %2669 = vmatmul.mubr.bf16.gmra.mrb[100].mxu1 %v6085_v29 }
 0x56a   :  { %2676 = vmatprep.mubr.bf16.mxu1 %v6086_v30  ;;  %v5968_v30 = vld [vmem:[#allocation9 + $0x10] sm:$0xff]  }
 0x56b   :  { %5206 = vmatprep.subr.bf16.mxu1 %v5968_v30 }
 0x56c   :  { %5207 = vmatpush3.bf16.msra.mxu1 %v5968_v30 }
 0x571   :  { %2677 = vmatmul.mubr.bf16.gmra.mrb[104].mxu1 %v6087_v31 }
 0x572   :  { %2684 = vmatprep.mubr.bf16.mxu1 %v6088_v0 }
 0x579   :  { %2685 = vmatmul.mubr.bf16.gmra.mrb[108].mxu1 %v6089_v32 }
 0x57a   :  { %2692 = vmatprep.mubr.bf16.mxu1 %v6090_v33 }
 0x581   :  { %2693 = vmatmul.mubr.bf16.gmra.mrb[112].mxu1 %v6091_v34 }
 0x582   :  { %2700 = vmatprep.mubr.bf16.mxu1 %v6092_v35 }
 0x589   :  { %2701 = vmatmul.mubr.bf16.gmra.mrb[116].mxu1 %v6093_v36 }
 0x58a   :  { %2708 = vmatprep.mubr.bf16.mxu1 %v6094_v37 }
 0x591   :  { %2709 = vmatmul.mubr.bf16.gmra.mrb[120].mxu1 %v6095_v38 }
 0x592   :  { %2716 = vmatprep.mubr.bf16.mxu1 %v6096_v39 }
 0x599   :  { %2717 = vmatmul.mubr.bf16.gmra.mrb[124].mxu1 %v6097_v40 }
 0x59a   :  { %2724 = vmatprep.mubr.bf16.mxu1 %v6098_v41 }
 0x5a1   :  { %2725 = vmatmul.mubr.bf16.gmra.mrb[128].mxu1 %v6099_v42 }
 0x5a2   :  { %2732 = vmatprep.mubr.bf16.mxu1 %v6100_v43 }
 0x5a9   :  { %2733 = vmatmul.mubr.bf16.gmra.mrb[132].mxu1 %v6101_v44 }
 0x5aa   :  { %2740 = vmatprep.mubr.bf16.mxu1 %v6102_v45 }
 0x5b1   :  { %2741 = vmatmul.mubr.bf16.gmra.mrb[136].mxu1 %v6103_v47 }
 0x5b2   :  { %2748 = vmatprep.mubr.bf16.mxu1 %v6104_v48 }
 0x5b9   :  { %2749 = vmatmul.mubr.bf16.gmra.mrb[140].mxu1 %v6105_v49 }
 0x5ba   :  { %2756 = vmatprep.mubr.bf16.mxu1 %v6106_v50  ;;  %v5969_v50 = vld [vmem:[#allocation9 + $0x18] sm:$0xff]  }
 0x5bb   :  { %5208 = vmatprep.subr.bf16.mxu1 %v5969_v50 }
 0x5bc   :  { %5209 = vmatpush3.bf16.msra.mxu1 %v5969_v50 }
 0x5c1   :  { %2757 = vmatmul.mubr.bf16.gmra.mrb[144].mxu1 %v6107_v51 }
 0x5c2   :  { %2764 = vmatprep.mubr.bf16.mxu1 %v6108_v52 }
 0x5c4   :  { %v2550_v53 = vpop.f32.mrb[40].mxu1 }
 0x5c5   :  { %v2552_v54 = vpop.f32.mrb[41].mxu1 }
 0x5c6   :  { %v2553_v55 = vpop.f32.mrb[42].mxu1 }
 0x5c7   :  { %v2805_v56 = vpack.c.bf16 %v2553_v55, %v2550_v53  ;;  %v2555_v57 = vpop.f32.mrb[43].mxu1 }
 0x5c9   :  { %2765 = vmatmul.mubr.bf16.gmra.mrb[148].mxu1 %v6109_v58  ;;  %5138 = vmatprep.mubr.bf16.mxu0 %v2805_v56  ;;  %v5970_v58 = vld [vmem:[#allocation9 + $0x20] sm:$0xff]  }
 0x5ca   :  { %2772 = vmatprep.mubr.bf16.mxu1 %v6110_v59  ;;  %5210 = vmatprep.subr.bf16.mxu1 %v5970_v58 }
 0x5cb   :  { %5211 = vmatpush3.bf16.msra.mxu1 %v5970_v58 }
 0x5cc   :  { %v2558_v60 = vpop.f32.mrb[44].mxu1 }
 0x5cd   :  { %v2560_v61 = vpop.f32.mrb[45].mxu1 }
 0x5ce   :  { %v2561_v62 = vpop.f32.mrb[46].mxu1 }
 0x5cf   :  { %v2806_v63 = vpack.c.bf16 %v2561_v62, %v2558_v60  ;;  %v2563_v1 = vpop.f32.mrb[47].mxu1  ;;  %v5971_v62 = vld [vmem:[#allocation9 + $0x28] sm:$0xff]  }
 0x5d0   :  { %5212 = vmatprep.subr.bf16.mxu1 %v5971_v62 }
 0x5d1   :  { %2773 = vmatmul.mubr.bf16.gmra.mrb[152].mxu1 %v6111_v3  ;;  %5139 = vmatmul.mubr.bf16.vlgmr.msra.gmra.mrb[152].mxu0 %v2806_v63 }
 0x5d2   :  { %2780 = vmatprep.mubr.bf16.mxu1 %v6112_v4  ;;  %5213 = vmatpush3.bf16.msra.mxu1 %v5971_v62 }
 0x5d3   :  { %5214 = vmatprep.subr.bf16.mxu1 %v5972_v2 }
 0x5d4   :  { %v2566_v5 = vpop.f32.mrb[48].mxu1 }
 0x5d5   :  { %v2568_v6 = vpop.f32.mrb[49].mxu1 }
 0x5d6   :  { %v2569_v7 = vpop.f32.mrb[50].mxu1  ;;  %5215 = vmatpush3.bf16.msra.mxu1 %v5972_v2  ;;  %v5973_v6 = vld [vmem:[#allocation9 + $0x38] sm:$0xff]  }
 0x5d7   :  { %v2807_v8 = vpack.c.bf16 %v2569_v7, %v2566_v5  ;;  %v2571_v9 = vpop.f32.mrb[51].mxu1  ;;  %5216 = vmatprep.subr.bf16.mxu1 %v5973_v6 }
 0x5d9   :  { %2781 = vmatmul.mubr.bf16.gmra.mrb[156].mxu1 %v6113_v10  ;;  %5142 = vmatprep.mubr.bf16.mxu0 %v2807_v8 }
 0x5da   :  { %2788 = vmatprep.mubr.bf16.mxu1 %v6114_v11  ;;  %5217 = vmatpush3.bf16.msra.mxu1 %v5973_v6 }
 0x5dc   :  { %v2574_v12 = vpop.f32.mrb[52].mxu1 }
 0x5dd   :  { %v2576_v13 = vpop.f32.mrb[53].mxu1 }
 0x5de   :  { %v2577_v15 = vpop.f32.mrb[54].mxu1 }
 0x5df   :  { %v2808_v16 = vpack.c.bf16 %v2577_v15, %v2574_v12  ;;  %v2579_v17 = vpop.f32.mrb[55].mxu1 }
 0x5e1   :  { %2789 = vmatmul.mubr.bf16.gmra.mrb[160].mxu1 %v6115_v18  ;;  %5143 = vmatmul.mubr.bf16.gmra.mrb[156].mxu0 %v2808_v16 }
 0x5e2   :  { %2796 = vmatprep.mubr.bf16.mxu1 %v6116_v19 }
 0x5e4   :  { %v2582_v20 = vpop.f32.mrb[56].mxu1 }
 0x5e5   :  { %v2584_v21 = vpop.f32.mrb[57].mxu1 }
 0x5e6   :  { %v2585_v22 = vpop.f32.mrb[58].mxu1 }
 0x5e7   :  { %v2809_v23 = vpack.c.bf16 %v2585_v22, %v2582_v20  ;;  %v2587_v24 = vpop.f32.mrb[59].mxu1 }
 0x5e9   :  { %2797 = vmatmul.mubr.bf16.gmra.mrb[164].mxu1 %v6117_v25  ;;  %5146 = vmatprep.mubr.bf16.mxu0 %v2809_v23 }
 0x5ec   :  { %v2590_v26 = vpop.f32.mrb[60].mxu1 }
 0x5ed   :  { %v2592_v14 = vpop.f32.mrb[61].mxu1 }
 0x5ee   :  { %v2593_v27 = vpop.f32.mrb[62].mxu1 }
 0x5ef   :  { %v2810_v28 = vpack.c.bf16 %v2593_v27, %v2590_v26  ;;  %v2595_v29 = vpop.f32.mrb[63].mxu1 }
 0x5f1   :  { %5147 = vmatmul.mubr.bf16.gmra.mrb[160].mxu0 %v2810_v28 }
 0x5f4   :  { %v2598_v31 = vpop.f32.mrb[64].mxu1 }
 0x5f5   :  { %v2600_v0 = vpop.f32.mrb[65].mxu1 }
 0x5f6   :  { %v2601_v32 = vpop.f32.mrb[66].mxu1 }
 0x5f7   :  { %v2811_v33 = vpack.c.bf16 %v2601_v32, %v2598_v31  ;;  %v2603_v34 = vpop.f32.mrb[67].mxu1 }
 0x5f9   :  { %5150 = vmatprep.mubr.bf16.mxu0 %v2811_v33 }
 0x5fc   :  { %v2606_v35 = vpop.f32.mrb[68].mxu1 }
 0x5fd   :  { %v2608_v36 = vpop.f32.mrb[69].mxu1 }
 0x5fe   :  { %v2609_v37 = vpop.f32.mrb[70].mxu1 }
 0x5ff   :  { %v2812_v38 = vpack.c.bf16 %v2609_v37, %v2606_v35  ;;  %v2611_v39 = vpop.f32.mrb[71].mxu1 }
 0x601   :  { %5151 = vmatmul.mubr.bf16.gmra.mrb[164].mxu0 %v2812_v38 }
 0x604   :  { %v2614_v40 = vpop.f32.mrb[72].mxu1 }
 0x605   :  { %v2616_v41 = vpop.f32.mrb[73].mxu1 }
 0x606   :  { %v2617_v42 = vpop.f32.mrb[74].mxu1 }
 0x607   :  { %v2813_v43 = vpack.c.bf16 %v2617_v42, %v2614_v40  ;;  %v2619_v44 = vpop.f32.mrb[75].mxu1 }
 0x609   :  { %5154 = vmatprep.mubr.bf16.mxu0 %v2813_v43 }
 0x60c   :  { %v2622_v45 = vpop.f32.mrb[76].mxu1 }
 0x60d   :  { %v2624_v46 = vpop.f32.mrb[77].mxu1 }
 0x60e   :  { %v2625_v47 = vpop.f32.mrb[78].mxu1 }
 0x60f   :  { %v2814_v48 = vpack.c.bf16 %v2625_v47, %v2622_v45  ;;  %v2627_v49 = vpop.f32.mrb[79].mxu1 }
 0x611   :  { %5155 = vmatmul.mubr.bf16.gmra.mrb[168].mxu0 %v2814_v48 }
 0x614   :  { %v2630_v51 = vpop.f32.mrb[80].mxu1 }
 0x615   :  { %v2632_v52 = vpop.f32.mrb[81].mxu1 }
 0x616   :  { %v2633_v53 = vpop.f32.mrb[82].mxu1 }
 0x617   :  { %v2815_v54 = vpack.c.bf16 %v2633_v53, %v2630_v51  ;;  %v2635_v55 = vpop.f32.mrb[83].mxu1 }
 0x619   :  { %5158 = vmatprep.mubr.bf16.mxu0 %v2815_v54 }
 0x61c   :  { %v2638_v56 = vpop.f32.mrb[84].mxu1 }
 0x61d   :  { %v2640_v57 = vpop.f32.mrb[85].mxu1 }
 0x61e   :  { %v2641_v59 = vpop.f32.mrb[86].mxu1 }
 0x61f   :  { %v2816_v60 = vpack.c.bf16 %v2641_v59, %v2638_v56  ;;  %v2643_v61 = vpop.f32.mrb[87].mxu1 }
 0x621   :  { %5159 = vmatmul.mubr.bf16.gmra.mrb[172].mxu0 %v2816_v60 }
 0x624   :  { %v2646_v63 = vpop.f32.mrb[88].mxu1 }
 0x625   :  { %v2648_v1 = vpop.f32.mrb[89].mxu1 }
 0x626   :  { %v2649_v3 = vpop.f32.mrb[90].mxu1 }
 0x627   :  { %v2817_v4 = vpack.c.bf16 %v2649_v3, %v2646_v63  ;;  %v2651_v5 = vpop.f32.mrb[91].mxu1 }
 0x629   :  { %5162 = vmatprep.mubr.bf16.mxu0 %v2817_v4 }
 0x62c   :  { %v2654_v7 = vpop.f32.mrb[92].mxu1 }
 0x62d   :  { %v2656_v8 = vpop.f32.mrb[93].mxu1 }
 0x62e   :  { %v2657_v9 = vpop.f32.mrb[94].mxu1 }
 0x62f   :  { %v2818_v10 = vpack.c.bf16 %v2657_v9, %v2654_v7  ;;  %v2659_v11 = vpop.f32.mrb[95].mxu1 }
 0x631   :  { %5163 = vmatmul.mubr.bf16.gmra.mrb[176].mxu0 %v2818_v10 }
 0x634   :  { %v2662_v12 = vpop.f32.mrb[96].mxu1 }
 0x635   :  { %v2664_v13 = vpop.f32.mrb[97].mxu1 }
 0x636   :  { %v2665_v15 = vpop.f32.mrb[98].mxu1 }
 0x637   :  { %v2819_v16 = vpack.c.bf16 %v2665_v15, %v2662_v12  ;;  %v2667_v17 = vpop.f32.mrb[99].mxu1 }
 0x639   :  { %5166 = vmatprep.mubr.bf16.mxu0 %v2819_v16 }
 0x63c   :  { %v2670_v18 = vpop.f32.mrb[100].mxu1 }
 0x63d   :  { %v2672_v19 = vpop.f32.mrb[101].mxu1 }
 0x63e   :  { %v2673_v20 = vpop.f32.mrb[102].mxu1  ;;  %v6602_v19 = vld [vmem:[%s7072_s5] ss:$0 sm:$0xff] }
 0x63f   :  { %v2820_v21 = vpack.c.bf16 %v2673_v20, %v2670_v18  ;;  %v2675_v22 = vpop.f32.mrb[103].mxu1 }
 0x641   :  { %5167 = vmatmul.mubr.bf16.gmra.mrb[180].mxu0 %v2820_v21 }
 0x644   :  { %v2678_v23 = vpop.f32.mrb[104].mxu1 }
 0x645   :  { %v2680_v24 = vpop.f32.mrb[105].mxu1 }
 0x646   :  { %v2681_v25 = vpop.f32.mrb[106].mxu1 }
 0x647   :  { %v2821_v26 = vpack.c.bf16 %v2681_v25, %v2678_v23  ;;  %v2683_v14 = vpop.f32.mrb[107].mxu1 }
 0x649   :  { %5170 = vmatprep.mubr.bf16.mxu0 %v2821_v26 }
 0x64c   :  { %v2686_v27 = vpop.f32.mrb[108].mxu1 }
 0x64d   :  { %v2688_v28 = vpop.f32.mrb[109].mxu1 }
 0x64e   :  { %v2689_v29 = vpop.f32.mrb[110].mxu1 }
 0x64f   :  { %v2822_v30 = vpack.c.bf16 %v2689_v29, %v2686_v27  ;;  %v2691_v31 = vpop.f32.mrb[111].mxu1 }
 0x651   :  { %5171 = vmatmul.mubr.bf16.gmra.mrb[184].mxu0 %v2822_v30 }
 0x654   :  { %v2694_v0 = vpop.f32.mrb[112].mxu1 }
 0x655   :  { %v2696_v32 = vpop.f32.mrb[113].mxu1 }
 0x656   :  { %v2697_v33 = vpop.f32.mrb[114].mxu1 }
 0x657   :  { %v2823_v34 = vpack.c.bf16 %v2697_v33, %v2694_v0  ;;  %v2699_v35 = vpop.f32.mrb[115].mxu1 }
 0x659   :  { %5174 = vmatprep.mubr.bf16.mxu0 %v2823_v34 }
 0x65c   :  { %v2702_v36 = vpop.f32.mrb[116].mxu1 }
 0x65d   :  { %v2704_v37 = vpop.f32.mrb[117].mxu1 }
 0x65e   :  { %v2705_v38 = vpop.f32.mrb[118].mxu1 }
 0x65f   :  { %v2824_v39 = vpack.c.bf16 %v2705_v38, %v2702_v36  ;;  %v2707_v40 = vpop.f32.mrb[119].mxu1 }
 0x661   :  { %5175 = vmatmul.mubr.bf16.gmra.mrb[188].mxu0 %v2824_v39 }
 0x664   :  { %v2710_v41 = vpop.f32.mrb[120].mxu1 }
 0x665   :  { %v2712_v42 = vpop.f32.mrb[121].mxu1 }
 0x666   :  { %v2713_v43 = vpop.f32.mrb[122].mxu1 }
 0x667   :  { %v2825_v44 = vpack.c.bf16 %v2713_v43, %v2710_v41  ;;  %v2715_v45 = vpop.f32.mrb[123].mxu1 }
 0x669   :  { %5178 = vmatprep.mubr.bf16.mxu0 %v2825_v44 }
 0x66c   :  { %v2718_v46 = vpop.f32.mrb[124].mxu1 }
 0x66d   :  { %v2720_v47 = vpop.f32.mrb[125].mxu1 }
 0x66e   :  { %v2721_v48 = vpop.f32.mrb[126].mxu1 }
 0x66f   :  { %v2826_v49 = vpack.c.bf16 %v2721_v48, %v2718_v46  ;;  %v2723_v50 = vpop.f32.mrb[127].mxu1 }
 0x671   :  { %5179 = vmatmul.mubr.bf16.gmra.mrb[192].mxu0 %v2826_v49 }
 0x674   :  { %v2726_v51 = vpop.f32.mrb[128].mxu1 }
 0x675   :  { %v2728_v52 = vpop.f32.mrb[129].mxu1 }
 0x676   :  { %v2729_v53 = vpop.f32.mrb[130].mxu1 }
 0x677   :  { %v2827_v54 = vpack.c.bf16 %v2729_v53, %v2726_v51  ;;  %v2731_v55 = vpop.f32.mrb[131].mxu1 }
 0x679   :  { %5182 = vmatprep.mubr.bf16.mxu0 %v2827_v54 }
 0x67c   :  { %v2734_v56 = vpop.f32.mrb[132].mxu1 }
 0x67d   :  { %v2736_v57 = vpop.f32.mrb[133].mxu1 }
 0x67e   :  { %v2737_v58 = vpop.f32.mrb[134].mxu1 }
 0x67f   :  { %v2828_v59 = vpack.c.bf16 %v2737_v58, %v2734_v56  ;;  %v2739_v60 = vpop.f32.mrb[135].mxu1 }
 0x681   :  { %5183 = vmatmul.mubr.bf16.gmra.mrb[196].mxu0 %v2828_v59 }
 0x684   :  { %v2742_v61 = vpop.f32.mrb[136].mxu1 }
 0x685   :  { %v2744_v62 = vpop.f32.mrb[137].mxu1 }
 0x686   :  { %v2745_v63 = vpop.f32.mrb[138].mxu1 }
 0x687   :  { %v2829_v1 = vpack.c.bf16 %v2745_v63, %v2742_v61  ;;  %v2747_v2 = vpop.f32.mrb[139].mxu1 }
 0x689   :  { %5186 = vmatprep.mubr.bf16.mxu0 %v2829_v1 }
 0x68c   :  { %v2750_v3 = vpop.f32.mrb[140].mxu1 }
 0x68d   :  { %v2752_v4 = vpop.f32.mrb[141].mxu1 }
 0x68e   :  { %v2753_v5 = vpop.f32.mrb[142].mxu1 }
 0x68f   :  { %v2830_v6 = vpack.c.bf16 %v2753_v5, %v2750_v3  ;;  %v2755_v7 = vpop.f32.mrb[143].mxu1 }
 0x691   :  { %5187 = vmatmul.mubr.bf16.gmra.mrb[200].mxu0 %v2830_v6 }
 0x694   :  { %v2758_v8 = vpop.f32.mrb[144].mxu1 }
 0x695   :  { %v2760_v9 = vpop.f32.mrb[145].mxu1 }
 0x696   :  { %v2761_v10 = vpop.f32.mrb[146].mxu1 }
 0x697   :  { %v2831_v11 = vpack.c.bf16 %v2761_v10, %v2758_v8  ;;  %v2763_v12 = vpop.f32.mrb[147].mxu1 }
 0x699   :  { %5190 = vmatprep.mubr.bf16.mxu0 %v2831_v11 }
 0x69c   :  { %v2766_v13 = vpop.f32.mrb[148].mxu1 }
 0x69d   :  { %v2768_v15 = vpop.f32.mrb[149].mxu1 }
 0x69e   :  { %v2769_v16 = vpop.f32.mrb[150].mxu1 }
 0x69f   :  { %v2832_v17 = vpack.c.bf16 %v2769_v16, %v2766_v13  ;;  %v2771_v18 = vpop.f32.mrb[151].mxu1 }
 0x6a1   :  { %5191 = vmatmul.mubr.bf16.gmra.mrb[204].mxu0 %v2832_v17 }
 0x6a4   :  { %v2774_v20 = vpop.f32.mrb[152].mxu1  ;;  %v5140_v21 = vpop.f32.mrb[152].mxu0 }
 0x6a5   :  { %v2951_v22 = vadd.f32 %v5140_v21, %v6602_v19  ;;  %v2776_v23 = vpop.f32.mrb[153].mxu1  ;;  %v2942_v24 = vpop.f32.mrb[153].mxu0 }
 0x6a6   :  { %v2943_v25 = vadd.f32 %v6602_v19, %v2942_v24  ;;  %v2777_v26 = vpop.f32.mrb[154].mxu1  ;;  %v5141_v14 = vpop.f32.mrb[154].mxu0 }
 0x6a7   :  { %v2833_v27 = vpack.c.bf16 %v2777_v26, %v2774_v20  ;;  %v2954_v28 = vadd.f32 %v5141_v14, %v6602_v19  ;;  %v2779_v29 = vpop.f32.mrb[155].mxu1  ;;  %v2945_v30 = vpop.f32.mrb[155].mxu0  ;;  %v3199_v0 = vmax.f32 %v2951_v22, 0.0 }
 0x6a8   :  { %v2946_v31 = vadd.f32 %v6602_v19, %v2945_v30  ;;  %v3197_v33 = vmax.f32 %v2943_v25, 0.0 }
 0x6a9   :  { %v3200_v32 = vmax.f32 %v2954_v28, 0.0  ;;  %5194 = vmatprep.mubr.bf16.mxu0 %v2833_v27 }
 0x6aa   :  { %v3198_v34 = vmax.f32 %v2946_v31, 0.0 }
 0x6ab   :  { %v3262_v35 = vpack.c.bf16 %v3200_v32, %v3199_v0 }
 0x6ac   :  { %v3261_v36 = vpack.c.bf16 %v3198_v34, %v3197_v33  ;;  %v2782_v37 = vpop.f32.mrb[156].mxu1 }
 0x6ad   :  { %v2784_v38 = vpop.f32.mrb[157].mxu1 }
 0x6ae   :  { %v2785_v39 = vpop.f32.mrb[158].mxu1  ;;  %5218 = vmatprep.mubr.bf16.mxu1 %v3261_v36 }
 0x6af   :  { %v2834_v40 = vpack.c.bf16 %v2785_v39, %v2782_v37  ;;  %v2787_v41 = vpop.f32.mrb[159].mxu1  ;;  %5219 = vmatmul.mubr.bf16.vlgmr.msra.gmra.mrb[168].mxu1 %v3262_v35 }
 0x6b1   :  { %5195 = vmatmul.mubr.bf16.gmra.mrb[208].mxu0 %v2834_v40 }
 0x6b4   :  { %v2790_v42 = vpop.f32.mrb[160].mxu1  ;;  %v5144_v43 = vpop.f32.mrb[156].mxu0 }
 0x6b5   :  { %v2967_v44 = vadd.f32 %v5144_v43, %v6602_v19  ;;  %v2792_v45 = vpop.f32.mrb[161].mxu1  ;;  %v2958_v46 = vpop.f32.mrb[157].mxu0 }
 0x6b6   :  { %v2959_v47 = vadd.f32 %v6602_v19, %v2958_v46  ;;  %v2793_v48 = vpop.f32.mrb[162].mxu1  ;;  %v5145_v49 = vpop.f32.mrb[158].mxu0  ;;  %v5975_v46 = vld [vmem:[#allocation10 + $0x8] sm:$0xff]  }
 0x6b7   :  { %v2835_v50 = vpack.c.bf16 %v2793_v48, %v2790_v42  ;;  %v2970_v51 = vadd.f32 %v5145_v49, %v6602_v19  ;;  %v2795_v52 = vpop.f32.mrb[163].mxu1  ;;  %v2961_v53 = vpop.f32.mrb[159].mxu0  ;;  %v3203_v55 = vmax.f32 %v2967_v44, 0.0  ;;  %v5974_v44 = vld [vmem:[#allocation10] sm:$0xff]  }
 0x6b8   :  { %v2962_v54 = vadd.f32 %v6602_v19, %v2961_v53  ;;  %v3201_v57 = vmax.f32 %v2959_v47, 0.0  ;;  %5282 = vmatprep.subr.bf16.mxu0 %v5974_v44  ;;  %v5976_v47 = vld [vmem:[#allocation10 + $0x10] sm:$0xff]  }
 0x6b9   :  { %v3204_v56 = vmax.f32 %v2970_v51, 0.0  ;;  %5198 = vmatprep.mubr.bf16.mxu0 %v2835_v50  ;;  %5283 = vmatpush3.bf16.msra.mxu0 %v5974_v44 }
 0x6ba   :  { %v3202_v58 = vmax.f32 %v2962_v54, 0.0  ;;  %5284 = vmatprep.subr.bf16.mxu0 %v5975_v46 }
 0x6bb   :  { %v3264_v59 = vpack.c.bf16 %v3204_v56, %v3203_v55  ;;  %v5977_v55 = vld [vmem:[#allocation10 + $0x18] sm:$0xff]  }
 0x6bc   :  { %v3263_v60 = vpack.c.bf16 %v3202_v58, %v3201_v57  ;;  %v2798_v61 = vpop.f32.mrb[164].mxu1 }
 0x6bd   :  { %v2800_v62 = vpop.f32.mrb[165].mxu1  ;;  %5285 = vmatpush3.bf16.msra.mxu0 %v5975_v46 }
 0x6be   :  { %v2801_v63 = vpop.f32.mrb[166].mxu1  ;;  %5222 = vmatprep.mubr.bf16.mxu1 %v3263_v60  ;;  %5286 = vmatprep.subr.bf16.mxu0 %v5976_v47  ;;  %v5978_v62 = vld [vmem:[#allocation10 + $0x20] sm:$0xff]  }
 0x6bf   :  { %v2836_v1 = vpack.c.bf16 %v2801_v63, %v2798_v61  ;;  %v2803_v2 = vpop.f32.mrb[167].mxu1  ;;  %5223 = vmatmul.mubr.bf16.gmra.mrb[172].mxu1 %v3264_v59 }
 0x6c0   :  { %v5980_v2 = vld [vmem:[#allocation10 + $0x30] sm:$0xff]  }
 0x6c1   :  { %5199 = vmatmul.mubr.bf16.gmra.mrb[212].mxu0 %v2836_v1  ;;  %v5979_v1 = vld [vmem:[#allocation10 + $0x28] sm:$0xff]  }
 0x6c2   :  { %5287 = vmatpush3.bf16.msra.mxu0 %v5976_v47 }
 0x6c3   :  { %5288 = vmatprep.subr.bf16.mxu0 %v5977_v55 }
 0x6c4   :  { %v5148_v3 = vpop.f32.mrb[160].mxu0 }
 0x6c5   :  { %v2983_v4 = vadd.f32 %v5148_v3, %v6602_v19  ;;  %v2974_v5 = vpop.f32.mrb[161].mxu0 }
 0x6c6   :  { %v2975_v6 = vadd.f32 %v6602_v19, %v2974_v5  ;;  %v5149_v7 = vpop.f32.mrb[162].mxu0  ;;  %5289 = vmatpush3.bf16.msra.mxu0 %v5977_v55 }
 0x6c7   :  { %v2986_v8 = vadd.f32 %v5149_v7, %v6602_v19  ;;  %v2977_v9 = vpop.f32.mrb[163].mxu0  ;;  %v3207_v11 = vmax.f32 %v2983_v4, 0.0  ;;  %5290 = vmatprep.subr.bf16.mxu0 %v5978_v62 }
 0x6c8   :  { %v2978_v10 = vadd.f32 %v6602_v19, %v2977_v9  ;;  %v3205_v13 = vmax.f32 %v2975_v6, 0.0 }
 0x6c9   :  { %v3208_v12 = vmax.f32 %v2986_v8, 0.0 }
 0x6ca   :  { %v3206_v15 = vmax.f32 %v2978_v10, 0.0  ;;  %5291 = vmatpush3.bf16.msra.mxu0 %v5978_v62  ;;  %v5981_v10 = vld [vmem:[#allocation10 + $0x38] sm:$0xff]  }
 0x6cb   :  { %v3266_v16 = vpack.c.bf16 %v3208_v12, %v3207_v11  ;;  %5292 = vmatprep.subr.bf16.mxu0 %v5979_v1 }
 0x6cc   :  { %v3265_v17 = vpack.c.bf16 %v3206_v15, %v3205_v13 }
 0x6ce   :  { %5226 = vmatprep.mubr.bf16.mxu1 %v3265_v17  ;;  %5293 = vmatpush3.bf16.msra.mxu0 %v5979_v1 }
 0x6cf   :  { %5227 = vmatmul.mubr.bf16.gmra.mrb[176].mxu1 %v3266_v16  ;;  %5294 = vmatprep.subr.bf16.mxu0 %v5980_v2 }
 0x6d2   :  { %5295 = vmatpush3.bf16.msra.mxu0 %v5980_v2 }
 0x6d3   :  { %5296 = vmatprep.subr.bf16.mxu0 %v5981_v10 }
 0x6d4   :  { %v5152_v18 = vpop.f32.mrb[164].mxu0 }
 0x6d5   :  { %v2999_v20 = vadd.f32 %v5152_v18, %v6602_v19  ;;  %v2990_v21 = vpop.f32.mrb[165].mxu0 }
 0x6d6   :  { %v2991_v22 = vadd.f32 %v6602_v19, %v2990_v21  ;;  %v5153_v23 = vpop.f32.mrb[166].mxu0  ;;  %5297 = vmatpush3.bf16.msra.mxu0 %v5981_v10 }
 0x6d7   :  { %v3002_v24 = vadd.f32 %v5153_v23, %v6602_v19  ;;  %v2993_v25 = vpop.f32.mrb[167].mxu0  ;;  %v3211_v14 = vmax.f32 %v2999_v20, 0.0 }
 0x6d8   :  { %v2994_v26 = vadd.f32 %v6602_v19, %v2993_v25  ;;  %v3209_v28 = vmax.f32 %v2991_v22, 0.0 }
 0x6d9   :  { %v3212_v27 = vmax.f32 %v3002_v24, 0.0 }
 0x6da   :  { %v3210_v29 = vmax.f32 %v2994_v26, 0.0 }
 0x6db   :  { %v3268_v30 = vpack.c.bf16 %v3212_v27, %v3211_v14 }
 0x6dc   :  { %v3267_v31 = vpack.c.bf16 %v3210_v29, %v3209_v28 }
 0x6de   :  { %5230 = vmatprep.mubr.bf16.mxu1 %v3267_v31 }
 0x6df   :  { %5231 = vmatmul.mubr.bf16.gmra.mrb[180].mxu1 %v3268_v30 }
 0x6e4   :  { %v5156_v0 = vpop.f32.mrb[168].mxu0 }
 0x6e5   :  { %v3015_v32 = vadd.f32 %v5156_v0, %v6602_v19  ;;  %v3006_v33 = vpop.f32.mrb[169].mxu0 }
 0x6e6   :  { %v3007_v34 = vadd.f32 %v6602_v19, %v3006_v33  ;;  %v5157_v35 = vpop.f32.mrb[170].mxu0 }
 0x6e7   :  { %v3018_v36 = vadd.f32 %v5157_v35, %v6602_v19  ;;  %v3009_v37 = vpop.f32.mrb[171].mxu0  ;;  %v3215_v39 = vmax.f32 %v3015_v32, 0.0 }
 0x6e8   :  { %v3010_v38 = vadd.f32 %v6602_v19, %v3009_v37  ;;  %v3213_v41 = vmax.f32 %v3007_v34, 0.0 }
 0x6e9   :  { %v3216_v40 = vmax.f32 %v3018_v36, 0.0 }
 0x6ea   :  { %v3214_v42 = vmax.f32 %v3010_v38, 0.0 }
 0x6eb   :  { %v3270_v43 = vpack.c.bf16 %v3216_v40, %v3215_v39 }
 0x6ec   :  { %v3269_v45 = vpack.c.bf16 %v3214_v42, %v3213_v41 }
 0x6ee   :  { %5234 = vmatprep.mubr.bf16.mxu1 %v3269_v45 }
 0x6ef   :  { %5235 = vmatmul.mubr.bf16.gmra.mrb[184].mxu1 %v3270_v43 }
 0x6f4   :  { %v5160_v48 = vpop.f32.mrb[172].mxu0 }
 0x6f5   :  { %v3031_v49 = vadd.f32 %v5160_v48, %v6602_v19  ;;  %v3022_v50 = vpop.f32.mrb[173].mxu0 }
 0x6f6   :  { %v3023_v51 = vadd.f32 %v6602_v19, %v3022_v50  ;;  %v5161_v52 = vpop.f32.mrb[174].mxu0 }
 0x6f7   :  { %v3034_v53 = vadd.f32 %v5161_v52, %v6602_v19  ;;  %v3025_v54 = vpop.f32.mrb[175].mxu0  ;;  %v3219_v57 = vmax.f32 %v3031_v49, 0.0 }
 0x6f8   :  { %v3026_v56 = vadd.f32 %v6602_v19, %v3025_v54  ;;  %v3217_v59 = vmax.f32 %v3023_v51, 0.0 }
 0x6f9   :  { %v3220_v58 = vmax.f32 %v3034_v53, 0.0 }
 0x6fa   :  { %v3218_v60 = vmax.f32 %v3026_v56, 0.0 }
 0x6fb   :  { %v3272_v61 = vpack.c.bf16 %v3220_v58, %v3219_v57 }
 0x6fc   :  { %v3271_v63 = vpack.c.bf16 %v3218_v60, %v3217_v59 }
 0x6fe   :  { %5238 = vmatprep.mubr.bf16.mxu1 %v3271_v63 }
 0x6ff   :  { %5239 = vmatmul.mubr.bf16.gmra.mrb[188].mxu1 %v3272_v61 }
 0x704   :  { %v5164_v3 = vpop.f32.mrb[176].mxu0 }
 0x705   :  { %v3047_v4 = vadd.f32 %v5164_v3, %v6602_v19  ;;  %v3038_v5 = vpop.f32.mrb[177].mxu0 }
 0x706   :  { %v3039_v6 = vadd.f32 %v6602_v19, %v3038_v5  ;;  %v5165_v7 = vpop.f32.mrb[178].mxu0 }
 0x707   :  { %v3050_v8 = vadd.f32 %v5165_v7, %v6602_v19  ;;  %v3041_v9 = vpop.f32.mrb[179].mxu0  ;;  %v3223_v12 = vmax.f32 %v3047_v4, 0.0 }
 0x708   :  { %v3042_v11 = vadd.f32 %v6602_v19, %v3041_v9  ;;  %v3221_v15 = vmax.f32 %v3039_v6, 0.0 }
 0x709   :  { %v3224_v13 = vmax.f32 %v3050_v8, 0.0 }
 0x70a   :  { %v3222_v16 = vmax.f32 %v3042_v11, 0.0 }
 0x70b   :  { %v3274_v17 = vpack.c.bf16 %v3224_v13, %v3223_v12 }
 0x70c   :  { %v3273_v18 = vpack.c.bf16 %v3222_v16, %v3221_v15 }
 0x70e   :  { %5242 = vmatprep.mubr.bf16.mxu1 %v3273_v18 }
 0x70f   :  { %5243 = vmatmul.mubr.bf16.gmra.mrb[192].mxu1 %v3274_v17 }
 0x714   :  { %v5168_v20 = vpop.f32.mrb[180].mxu0 }
 0x715   :  { %v3063_v21 = vadd.f32 %v5168_v20, %v6602_v19  ;;  %v3054_v22 = vpop.f32.mrb[181].mxu0 }
 0x716   :  { %v3055_v23 = vadd.f32 %v6602_v19, %v3054_v22  ;;  %v5169_v24 = vpop.f32.mrb[182].mxu0 }
 0x717   :  { %v3066_v25 = vadd.f32 %v5169_v24, %v6602_v19  ;;  %v3057_v26 = vpop.f32.mrb[183].mxu0  ;;  %v3227_v27 = vmax.f32 %v3063_v21, 0.0 }
 0x718   :  { %v3058_v14 = vadd.f32 %v6602_v19, %v3057_v26  ;;  %v3225_v29 = vmax.f32 %v3055_v23, 0.0 }
 0x719   :  { %v3228_v28 = vmax.f32 %v3066_v25, 0.0 }
 0x71a   :  { %v3226_v30 = vmax.f32 %v3058_v14, 0.0 }
 0x71b   :  { %v3276_v31 = vpack.c.bf16 %v3228_v28, %v3227_v27 }
 0x71c   :  { %v3275_v0 = vpack.c.bf16 %v3226_v30, %v3225_v29 }
 0x71e   :  { %5246 = vmatprep.mubr.bf16.mxu1 %v3275_v0 }
 0x71f   :  { %5247 = vmatmul.mubr.bf16.gmra.mrb[196].mxu1 %v3276_v31 }
 0x724   :  { %v5172_v32 = vpop.f32.mrb[184].mxu0 }
 0x725   :  { %v3079_v33 = vadd.f32 %v5172_v32, %v6602_v19  ;;  %v3070_v34 = vpop.f32.mrb[185].mxu0 }
 0x726   :  { %v3071_v35 = vadd.f32 %v6602_v19, %v3070_v34  ;;  %v5173_v36 = vpop.f32.mrb[186].mxu0 }
 0x727   :  { %v3082_v37 = vadd.f32 %v5173_v36, %v6602_v19  ;;  %v3073_v38 = vpop.f32.mrb[187].mxu0  ;;  %v3231_v40 = vmax.f32 %v3079_v33, 0.0 }
 0x728   :  { %v3074_v39 = vadd.f32 %v6602_v19, %v3073_v38  ;;  %v3229_v42 = vmax.f32 %v3071_v35, 0.0 }
 0x729   :  { %v3232_v41 = vmax.f32 %v3082_v37, 0.0 }
 0x72a   :  { %v3230_v43 = vmax.f32 %v3074_v39, 0.0 }
 0x72b   :  { %v3278_v44 = vpack.c.bf16 %v3232_v41, %v3231_v40 }
 0x72c   :  { %v3277_v45 = vpack.c.bf16 %v3230_v43, %v3229_v42 }
 0x72e   :  { %5250 = vmatprep.mubr.bf16.mxu1 %v3277_v45 }
 0x72f   :  { %5251 = vmatmul.mubr.bf16.gmra.mrb[200].mxu1 %v3278_v44 }
 0x734   :  { %v5176_v46 = vpop.f32.mrb[188].mxu0 }
 0x735   :  { %v3095_v47 = vadd.f32 %v5176_v46, %v6602_v19  ;;  %v3086_v48 = vpop.f32.mrb[189].mxu0 }
 0x736   :  { %v3087_v49 = vadd.f32 %v6602_v19, %v3086_v48  ;;  %v5177_v50 = vpop.f32.mrb[190].mxu0 }
 0x737   :  { %v3098_v51 = vadd.f32 %v5177_v50, %v6602_v19  ;;  %v3089_v52 = vpop.f32.mrb[191].mxu0  ;;  %v3235_v54 = vmax.f32 %v3095_v47, 0.0 }
 0x738   :  { %v3090_v53 = vadd.f32 %v6602_v19, %v3089_v52  ;;  %v3233_v56 = vmax.f32 %v3087_v49, 0.0 }
 0x739   :  { %v3236_v55 = vmax.f32 %v3098_v51, 0.0 }
 0x73a   :  { %v3234_v57 = vmax.f32 %v3090_v53, 0.0  ;;  %v6663_v53 = vld [vmem:[%s7074_s7] ss:$0 sm:$0xff] }
 0x73b   :  { %v3280_v58 = vpack.c.bf16 %v3236_v55, %v3235_v54 }
 0x73c   :  { %v3279_v59 = vpack.c.bf16 %v3234_v57, %v3233_v56 }
 0x73e   :  { %5254 = vmatprep.mubr.bf16.mxu1 %v3279_v59 }
 0x73f   :  { %5255 = vmatmul.mubr.bf16.gmra.mrb[204].mxu1 %v3280_v58 }
 0x744   :  { %v5180_v60 = vpop.f32.mrb[192].mxu0 }
 0x745   :  { %v3111_v61 = vadd.f32 %v5180_v60, %v6602_v19  ;;  %v3102_v62 = vpop.f32.mrb[193].mxu0 }
 0x746   :  { %v3103_v63 = vadd.f32 %v6602_v19, %v3102_v62  ;;  %v5181_v1 = vpop.f32.mrb[194].mxu0 }
 0x747   :  { %v3114_v2 = vadd.f32 %v5181_v1, %v6602_v19  ;;  %v3105_v3 = vpop.f32.mrb[195].mxu0  ;;  %v3239_v5 = vmax.f32 %v3111_v61, 0.0 }
 0x748   :  { %v3106_v4 = vadd.f32 %v6602_v19, %v3105_v3  ;;  %v3237_v7 = vmax.f32 %v3103_v63, 0.0 }
 0x749   :  { %v3240_v6 = vmax.f32 %v3114_v2, 0.0 }
 0x74a   :  { %v3238_v8 = vmax.f32 %v3106_v4, 0.0 }
 0x74b   :  { %v3282_v9 = vpack.c.bf16 %v3240_v6, %v3239_v5 }
 0x74c   :  { %v3281_v10 = vpack.c.bf16 %v3238_v8, %v3237_v7 }
 0x74e   :  { %5258 = vmatprep.mubr.bf16.mxu1 %v3281_v10 }
 0x74f   :  { %5259 = vmatmul.mubr.bf16.gmra.mrb[208].mxu1 %v3282_v9 }
 0x754   :  { %v5184_v11 = vpop.f32.mrb[196].mxu0 }
 0x755   :  { %v3127_v12 = vadd.f32 %v5184_v11, %v6602_v19  ;;  %v3118_v13 = vpop.f32.mrb[197].mxu0 }
 0x756   :  { %v3119_v15 = vadd.f32 %v6602_v19, %v3118_v13  ;;  %v5185_v16 = vpop.f32.mrb[198].mxu0 }
 0x757   :  { %v3130_v17 = vadd.f32 %v5185_v16, %v6602_v19  ;;  %v3121_v18 = vpop.f32.mrb[199].mxu0  ;;  %v3243_v21 = vmax.f32 %v3127_v12, 0.0 }
 0x758   :  { %v3122_v20 = vadd.f32 %v6602_v19, %v3121_v18  ;;  %v3241_v23 = vmax.f32 %v3119_v15, 0.0 }
 0x759   :  { %v3244_v22 = vmax.f32 %v3130_v17, 0.0 }
 0x75a   :  { %v3242_v24 = vmax.f32 %v3122_v20, 0.0 }
 0x75b   :  { %v3284_v25 = vpack.c.bf16 %v3244_v22, %v3243_v21 }
 0x75c   :  { %v3283_v26 = vpack.c.bf16 %v3242_v24, %v3241_v23 }
 0x75e   :  { %5262 = vmatprep.mubr.bf16.mxu1 %v3283_v26 }
 0x75f   :  { %5263 = vmatmul.mubr.bf16.gmra.mrb[212].mxu1 %v3284_v25 }
 0x764   :  { %v5188_v14 = vpop.f32.mrb[200].mxu0 }
 0x765   :  { %v3143_v27 = vadd.f32 %v5188_v14, %v6602_v19  ;;  %v3134_v28 = vpop.f32.mrb[201].mxu0 }
 0x766   :  { %v3135_v29 = vadd.f32 %v6602_v19, %v3134_v28  ;;  %v5189_v30 = vpop.f32.mrb[202].mxu0 }
 0x767   :  { %v3146_v31 = vadd.f32 %v5189_v30, %v6602_v19  ;;  %v3137_v0 = vpop.f32.mrb[203].mxu0  ;;  %v3247_v33 = vmax.f32 %v3143_v27, 0.0 }
 0x768   :  { %v3138_v32 = vadd.f32 %v6602_v19, %v3137_v0  ;;  %v3245_v35 = vmax.f32 %v3135_v29, 0.0 }
 0x769   :  { %v3248_v34 = vmax.f32 %v3146_v31, 0.0 }
 0x76a   :  { %v3246_v36 = vmax.f32 %v3138_v32, 0.0 }
 0x76b   :  { %v3286_v37 = vpack.c.bf16 %v3248_v34, %v3247_v33 }
 0x76c   :  { %v3285_v38 = vpack.c.bf16 %v3246_v36, %v3245_v35 }
 0x76e   :  { %5266 = vmatprep.mubr.bf16.mxu1 %v3285_v38 }
 0x76f   :  { %5267 = vmatmul.mubr.bf16.gmra.mrb[216].mxu1 %v3286_v37 }
 0x774   :  { %v5192_v39 = vpop.f32.mrb[204].mxu0 }
 0x775   :  { %v3159_v40 = vadd.f32 %v5192_v39, %v6602_v19  ;;  %v3150_v41 = vpop.f32.mrb[205].mxu0 }
 0x776   :  { %v3151_v42 = vadd.f32 %v6602_v19, %v3150_v41  ;;  %v5193_v43 = vpop.f32.mrb[206].mxu0 }
 0x777   :  { %v3162_v44 = vadd.f32 %v5193_v43, %v6602_v19  ;;  %v3153_v45 = vpop.f32.mrb[207].mxu0  ;;  %v3251_v47 = vmax.f32 %v3159_v40, 0.0 }
 0x778   :  { %v3154_v46 = vadd.f32 %v6602_v19, %v3153_v45  ;;  %v3249_v49 = vmax.f32 %v3151_v42, 0.0 }
 0x779   :  { %v3252_v48 = vmax.f32 %v3162_v44, 0.0 }
 0x77a   :  { %v3250_v50 = vmax.f32 %v3154_v46, 0.0 }
 0x77b   :  { %v3288_v51 = vpack.c.bf16 %v3252_v48, %v3251_v47 }
 0x77c   :  { %v3287_v52 = vpack.c.bf16 %v3250_v50, %v3249_v49 }
 0x77e   :  { %5270 = vmatprep.mubr.bf16.mxu1 %v3287_v52 }
 0x77f   :  { %5271 = vmatmul.mubr.bf16.gmra.mrb[220].mxu1 %v3288_v51 }
 0x782   :  { %v5220_v54 = vpop.f32.mrb[168].mxu1 }
 0x783   :  { %v3407_v55 = vadd.f32 %v5220_v54, %v6663_v53  ;;  %v3398_v56 = vpop.f32.mrb[169].mxu1 }
 0x784   :  { %v3399_v57 = vadd.f32 %v6663_v53, %v3398_v56  ;;  %v5196_v58 = vpop.f32.mrb[208].mxu0  ;;  %v5221_v59 = vpop.f32.mrb[170].mxu1 }
 0x785   :  { %v3175_v60 = vadd.f32 %v5196_v58, %v6602_v19  ;;  %v3410_v61 = vadd.f32 %v5221_v59, %v6663_v53  ;;  %v3166_v62 = vpop.f32.mrb[209].mxu0  ;;  %v3401_v63 = vpop.f32.mrb[171].mxu1  ;;  %v3655_v4 = vmax.f32 %v3407_v55, 0.0 }
 0x786   :  { %v3167_v1 = vadd.f32 %v6602_v19, %v3166_v62  ;;  %v3402_v2 = vadd.f32 %v6663_v53, %v3401_v63  ;;  %v5197_v3 = vpop.f32.mrb[210].mxu0  ;;  %v3653_v8 = vmax.f32 %v3399_v57, 0.0 }
 0x787   :  { %v3656_v5 = vmax.f32 %v3410_v61, 0.0  ;;  %v3178_v6 = vadd.f32 %v5197_v3, %v6602_v19  ;;  %v3169_v7 = vpop.f32.mrb[211].mxu0  ;;  %v3255_v11 = vmax.f32 %v3175_v60, 0.0 }
 0x788   :  { %v3654_v9 = vmax.f32 %v3402_v2, 0.0  ;;  %v3170_v10 = vadd.f32 %v6602_v19, %v3169_v7  ;;  %v3253_v15 = vmax.f32 %v3167_v1, 0.0 }
 0x789   :  { %v3718_v12 = vpack.c.bf16 %v3656_v5, %v3655_v4  ;;  %v3256_v13 = vmax.f32 %v3178_v6, 0.0 }
 0x78a   :  { %v3717_v16 = vpack.c.bf16 %v3654_v9, %v3653_v8  ;;  %v3254_v17 = vmax.f32 %v3170_v10, 0.0 }
 0x78b   :  { %v3290_v18 = vpack.c.bf16 %v3256_v13, %v3255_v11 }
 0x78c   :  { %v3289_v20 = vpack.c.bf16 %v3254_v17, %v3253_v15  ;;  %5298 = vmatprep.mubr.bf16.mxu0 %v3717_v16 }
 0x78d   :  { %5299 = vmatmul.mubr.bf16.vlgmr.msra.gmra.mrb[216].mxu0 %v3718_v12 }
 0x78e   :  { %5274 = vmatprep.mubr.bf16.mxu1 %v3289_v20 }
 0x78f   :  { %5275 = vmatmul.mubr.bf16.gmra.mrb[224].mxu1 %v3290_v18 }
 0x792   :  { %v5224_v21 = vpop.f32.mrb[172].mxu1 }
 0x793   :  { %v3423_v22 = vadd.f32 %v5224_v21, %v6663_v53  ;;  %v3414_v23 = vpop.f32.mrb[173].mxu1 }
 0x794   :  { %v3415_v24 = vadd.f32 %v6663_v53, %v3414_v23  ;;  %v5200_v25 = vpop.f32.mrb[212].mxu0  ;;  %v5225_v26 = vpop.f32.mrb[174].mxu1 }
 0x795   :  { %v3191_v14 = vadd.f32 %v5200_v25, %v6602_v19  ;;  %v3426_v27 = vadd.f32 %v5225_v26, %v6663_v53  ;;  %v3182_v28 = vpop.f32.mrb[213].mxu0  ;;  %v3417_v29 = vpop.f32.mrb[175].mxu1  ;;  %v3659_v32 = vmax.f32 %v3423_v22, 0.0 }
 0x796   :  { %v3183_v30 = vadd.f32 %v6602_v19, %v3182_v28  ;;  %v3418_v31 = vadd.f32 %v6663_v53, %v3417_v29  ;;  %v5201_v0 = vpop.f32.mrb[214].mxu0  ;;  %v3657_v36 = vmax.f32 %v3415_v24, 0.0  ;;  %v5983_v28 = vld [vmem:[#allocation12 + $0x8] sm:$0xff]   ;;  %v5984_v29 = vld [vmem:[#allocation12 + $0x10] sm:$0xff]  }
 0x797   :  { %v3660_v33 = vmax.f32 %v3426_v27, 0.0  ;;  %v3194_v34 = vadd.f32 %v5201_v0, %v6602_v19  ;;  %v3185_v35 = vpop.f32.mrb[215].mxu0  ;;  %v3259_v39 = vmax.f32 %v3191_v14, 0.0  ;;  %v5982_v14 = vld [vmem:[#allocation12] sm:$0xff]  }
 0x798   :  { %v3658_v37 = vmax.f32 %v3418_v31, 0.0  ;;  %v3186_v38 = vadd.f32 %v6602_v19, %v3185_v35  ;;  %v3257_v42 = vmax.f32 %v3183_v30, 0.0  ;;  %5362 = vmatprep.subr.bf16.mxu1 %v5982_v14 }
 0x799   :  { %v3720_v40 = vpack.c.bf16 %v3660_v33, %v3659_v32  ;;  %v3260_v41 = vmax.f32 %v3194_v34, 0.0  ;;  %5363 = vmatpush3.bf16.msra.mxu1 %v5982_v14 }
 0x79a   :  { %v3719_v43 = vpack.c.bf16 %v3658_v37, %v3657_v36  ;;  %v3258_v44 = vmax.f32 %v3186_v38, 0.0  ;;  %5364 = vmatprep.subr.bf16.mxu1 %v5983_v28  ;;  %v5985_v36 = vld [vmem:[#allocation12 + $0x18] sm:$0xff]  }
 0x79b   :  { %v3292_v45 = vpack.c.bf16 %v3260_v41, %v3259_v39 }
 0x79c   :  { %v3291_v46 = vpack.c.bf16 %v3258_v44, %v3257_v42  ;;  %5302 = vmatprep.mubr.bf16.mxu0 %v3719_v43  ;;  %v5986_v43 = vld [vmem:[#allocation12 + $0x20] sm:$0xff]  }
 0x79d   :  { %5303 = vmatmul.mubr.bf16.gmra.mrb[220].mxu0 %v3720_v40  ;;  %5365 = vmatpush3.bf16.msra.mxu1 %v5983_v28 }
 0x79e   :  { %5278 = vmatprep.mubr.bf16.mxu1 %v3291_v46  ;;  %5366 = vmatprep.subr.bf16.mxu1 %v5984_v29  ;;  %v5988_v46 = vld [vmem:[#allocation12 + $0x30] sm:$0xff]  }
 0x79f   :  { %5279 = vmatmul.mubr.bf16.gmra.mrb[228].mxu1 %v3292_v45  ;;  %v5987_v45 = vld [vmem:[#allocation12 + $0x28] sm:$0xff]  }
 0x7a1   :  { %5367 = vmatpush3.bf16.msra.mxu1 %v5984_v29 }
 0x7a2   :  { %v5228_v47 = vpop.f32.mrb[176].mxu1  ;;  %5368 = vmatprep.subr.bf16.mxu1 %v5985_v36 }
 0x7a3   :  { %v3439_v48 = vadd.f32 %v5228_v47, %v6663_v53  ;;  %v3430_v49 = vpop.f32.mrb[177].mxu1 }
 0x7a4   :  { %v3431_v50 = vadd.f32 %v6663_v53, %v3430_v49  ;;  %v5229_v51 = vpop.f32.mrb[178].mxu1 }
 0x7a5   :  { %v3442_v19 = vadd.f32 %v5229_v51, %v6663_v53  ;;  %v3433_v52 = vpop.f32.mrb[179].mxu1  ;;  %v3663_v55 = vmax.f32 %v3439_v48, 0.0  ;;  %5369 = vmatpush3.bf16.msra.mxu1 %v5985_v36 }
 0x7a6   :  { %v3434_v54 = vadd.f32 %v6663_v53, %v3433_v52  ;;  %v3661_v57 = vmax.f32 %v3431_v50, 0.0  ;;  %5370 = vmatprep.subr.bf16.mxu1 %v5986_v43 }
 0x7a7   :  { %v3664_v56 = vmax.f32 %v3442_v19, 0.0 }
 0x7a8   :  { %v3662_v58 = vmax.f32 %v3434_v54, 0.0  ;;  %v5989_v54 = vld [vmem:[#allocation12 + $0x38] sm:$0xff]  }
 0x7a9   :  { %v3722_v59 = vpack.c.bf16 %v3664_v56, %v3663_v55  ;;  %5371 = vmatpush3.bf16.msra.mxu1 %v5986_v43 }
 0x7aa   :  { %v3721_v60 = vpack.c.bf16 %v3662_v58, %v3661_v57  ;;  %5372 = vmatprep.subr.bf16.mxu1 %v5987_v45 }
 0x7ac   :  { %5306 = vmatprep.mubr.bf16.mxu0 %v3721_v60 }
 0x7ad   :  { %5307 = vmatmul.mubr.bf16.gmra.mrb[224].mxu0 %v3722_v59  ;;  %5373 = vmatpush3.bf16.msra.mxu1 %v5987_v45 }
 0x7ae   :  { %5374 = vmatprep.subr.bf16.mxu1 %v5988_v46 }
 0x7b1   :  { %5375 = vmatpush3.bf16.msra.mxu1 %v5988_v46 }
 0x7b2   :  { %v5232_v61 = vpop.f32.mrb[180].mxu1  ;;  %5376 = vmatprep.subr.bf16.mxu1 %v5989_v54 }
 0x7b3   :  { %v3455_v62 = vadd.f32 %v5232_v61, %v6663_v53  ;;  %v3446_v63 = vpop.f32.mrb[181].mxu1 }
 0x7b4   :  { %v3447_v1 = vadd.f32 %v6663_v53, %v3446_v63  ;;  %v5233_v2 = vpop.f32.mrb[182].mxu1 }
 0x7b5   :  { %v3458_v3 = vadd.f32 %v5233_v2, %v6663_v53  ;;  %v3449_v4 = vpop.f32.mrb[183].mxu1  ;;  %v3667_v6 = vmax.f32 %v3455_v62, 0.0  ;;  %5377 = vmatpush3.bf16.msra.mxu1 %v5989_v54 }
 0x7b6   :  { %v3450_v5 = vadd.f32 %v6663_v53, %v3449_v4  ;;  %v3665_v8 = vmax.f32 %v3447_v1, 0.0 }
 0x7b7   :  { %v3668_v7 = vmax.f32 %v3458_v3, 0.0 }
 0x7b8   :  { %v3666_v9 = vmax.f32 %v3450_v5, 0.0 }
 0x7b9   :  { %v3724_v10 = vpack.c.bf16 %v3668_v7, %v3667_v6 }
 0x7ba   :  { %v3723_v11 = vpack.c.bf16 %v3666_v9, %v3665_v8 }
 0x7bc   :  { %5310 = vmatprep.mubr.bf16.mxu0 %v3723_v11 }
 0x7bd   :  { %5311 = vmatmul.mubr.bf16.gmra.mrb[228].mxu0 %v3724_v10 }
 0x7c2   :  { %v5236_v12 = vpop.f32.mrb[184].mxu1 }
 0x7c3   :  { %v3471_v13 = vadd.f32 %v5236_v12, %v6663_v53  ;;  %v3462_v15 = vpop.f32.mrb[185].mxu1 }
 0x7c4   :  { %v3463_v16 = vadd.f32 %v6663_v53, %v3462_v15  ;;  %v5237_v17 = vpop.f32.mrb[186].mxu1 }
 0x7c5   :  { %v3474_v18 = vadd.f32 %v5237_v17, %v6663_v53  ;;  %v3465_v20 = vpop.f32.mrb[187].mxu1  ;;  %v3671_v22 = vmax.f32 %v3471_v13, 0.0 }
 0x7c6   :  { %v3466_v21 = vadd.f32 %v6663_v53, %v3465_v20  ;;  %v3669_v24 = vmax.f32 %v3463_v16, 0.0 }
 0x7c7   :  { %v3672_v23 = vmax.f32 %v3474_v18, 0.0 }
 0x7c8   :  { %v3670_v25 = vmax.f32 %v3466_v21, 0.0 }
 0x7c9   :  { %v3726_v26 = vpack.c.bf16 %v3672_v23, %v3671_v22 }
 0x7ca   :  { %v3725_v27 = vpack.c.bf16 %v3670_v25, %v3669_v24 }
 0x7cc   :  { %5314 = vmatprep.mubr.bf16.mxu0 %v3725_v27 }
 0x7cd   :  { %5315 = vmatmul.mubr.bf16.gmra.mrb[232].mxu0 %v3726_v26 }
 0x7d2   :  { %v5240_v30 = vpop.f32.mrb[188].mxu1 }
 0x7d3   :  { %v3487_v31 = vadd.f32 %v5240_v30, %v6663_v53  ;;  %v3478_v0 = vpop.f32.mrb[189].mxu1 }
 0x7d4   :  { %v3479_v32 = vadd.f32 %v6663_v53, %v3478_v0  ;;  %v5241_v33 = vpop.f32.mrb[190].mxu1 }
 0x7d5   :  { %v3490_v34 = vadd.f32 %v5241_v33, %v6663_v53  ;;  %v3481_v35 = vpop.f32.mrb[191].mxu1  ;;  %v3675_v38 = vmax.f32 %v3487_v31, 0.0 }
 0x7d6   :  { %v3482_v37 = vadd.f32 %v6663_v53, %v3481_v35  ;;  %v3673_v40 = vmax.f32 %v3479_v32, 0.0 }
 0x7d7   :  { %v3676_v39 = vmax.f32 %v3490_v34, 0.0 }
 0x7d8   :  { %v3674_v41 = vmax.f32 %v3482_v37, 0.0 }
 0x7d9   :  { %v3728_v42 = vpack.c.bf16 %v3676_v39, %v3675_v38 }
 0x7da   :  { %v3727_v44 = vpack.c.bf16 %v3674_v41, %v3673_v40 }
 0x7dc   :  { %5318 = vmatprep.mubr.bf16.mxu0 %v3727_v44 }
 0x7dd   :  { %5319 = vmatmul.mubr.bf16.gmra.mrb[236].mxu0 %v3728_v42 }
 0x7e2   :  { %v5244_v47 = vpop.f32.mrb[192].mxu1 }
 0x7e3   :  { %v3503_v48 = vadd.f32 %v5244_v47, %v6663_v53  ;;  %v3494_v49 = vpop.f32.mrb[193].mxu1 }
 0x7e4   :  { %v3495_v50 = vadd.f32 %v6663_v53, %v3494_v49  ;;  %v5245_v51 = vpop.f32.mrb[194].mxu1 }
 0x7e5   :  { %v3506_v19 = vadd.f32 %v5245_v51, %v6663_v53  ;;  %v3497_v52 = vpop.f32.mrb[195].mxu1  ;;  %v3679_v56 = vmax.f32 %v3503_v48, 0.0 }
 0x7e6   :  { %v3498_v55 = vadd.f32 %v6663_v53, %v3497_v52  ;;  %v3677_v58 = vmax.f32 %v3495_v50, 0.0 }
 0x7e7   :  { %v3680_v57 = vmax.f32 %v3506_v19, 0.0 }
 0x7e8   :  { %v3678_v59 = vmax.f32 %v3498_v55, 0.0 }
 0x7e9   :  { %v3730_v60 = vpack.c.bf16 %v3680_v57, %v3679_v56 }
 0x7ea   :  { %v3729_v61 = vpack.c.bf16 %v3678_v59, %v3677_v58 }
 0x7ec   :  { %5322 = vmatprep.mubr.bf16.mxu0 %v3729_v61 }
 0x7ed   :  { %5323 = vmatmul.mubr.bf16.gmra.mrb[240].mxu0 %v3730_v60 }
 0x7f2   :  { %v5248_v62 = vpop.f32.mrb[196].mxu1 }
 0x7f3   :  { %v3519_v63 = vadd.f32 %v5248_v62, %v6663_v53  ;;  %v3510_v1 = vpop.f32.mrb[197].mxu1 }
 0x7f4   :  { %v3511_v2 = vadd.f32 %v6663_v53, %v3510_v1  ;;  %v5249_v3 = vpop.f32.mrb[198].mxu1 }
 0x7f5   :  { %v3522_v4 = vadd.f32 %v5249_v3, %v6663_v53  ;;  %v3513_v5 = vpop.f32.mrb[199].mxu1  ;;  %v3683_v7 = vmax.f32 %v3519_v63, 0.0 }
 0x7f6   :  { %v3514_v6 = vadd.f32 %v6663_v53, %v3513_v5  ;;  %v3681_v9 = vmax.f32 %v3511_v2, 0.0 }
 0x7f7   :  { %v3684_v8 = vmax.f32 %v3522_v4, 0.0 }
 0x7f8   :  { %v3682_v10 = vmax.f32 %v3514_v6, 0.0 }
 0x7f9   :  { %v3732_v11 = vpack.c.bf16 %v3684_v8, %v3683_v7 }
 0x7fa   :  { %v3731_v12 = vpack.c.bf16 %v3682_v10, %v3681_v9 }
 0x7fc   :  { %5326 = vmatprep.mubr.bf16.mxu0 %v3731_v12 }
 0x7fd   :  { %5327 = vmatmul.mubr.bf16.gmra.mrb[244].mxu0 %v3732_v11 }
 0x802   :  { %v5252_v13 = vpop.f32.mrb[200].mxu1 }
 0x803   :  { %v3535_v15 = vadd.f32 %v5252_v13, %v6663_v53  ;;  %v3526_v16 = vpop.f32.mrb[201].mxu1 }
 0x804   :  { %v3527_v17 = vadd.f32 %v6663_v53, %v3526_v16  ;;  %v5253_v18 = vpop.f32.mrb[202].mxu1 }
 0x805   :  { %v3538_v20 = vadd.f32 %v5253_v18, %v6663_v53  ;;  %v3529_v21 = vpop.f32.mrb[203].mxu1  ;;  %v3687_v23 = vmax.f32 %v3535_v15, 0.0 }
 0x806   :  { %v3530_v22 = vadd.f32 %v6663_v53, %v3529_v21  ;;  %v3685_v25 = vmax.f32 %v3527_v17, 0.0 }
 0x807   :  { %v3688_v24 = vmax.f32 %v3538_v20, 0.0 }
 0x808   :  { %v3686_v26 = vmax.f32 %v3530_v22, 0.0 }
 0x809   :  { %v3734_v14 = vpack.c.bf16 %v3688_v24, %v3687_v23 }
 0x80a   :  { %v3733_v27 = vpack.c.bf16 %v3686_v26, %v3685_v25 }
 0x80c   :  { %5330 = vmatprep.mubr.bf16.mxu0 %v3733_v27 }
 0x80d   :  { %5331 = vmatmul.mubr.bf16.gmra.mrb[248].mxu0 %v3734_v14 }
 0x812   :  { %v5256_v28 = vpop.f32.mrb[204].mxu1 }
 0x813   :  { %v3551_v29 = vadd.f32 %v5256_v28, %v6663_v53  ;;  %v3542_v30 = vpop.f32.mrb[205].mxu1 }
 0x814   :  { %v3543_v31 = vadd.f32 %v6663_v53, %v3542_v30  ;;  %v5257_v0 = vpop.f32.mrb[206].mxu1 }
 0x815   :  { %v3554_v32 = vadd.f32 %v5257_v0, %v6663_v53  ;;  %v3545_v33 = vpop.f32.mrb[207].mxu1  ;;  %v3691_v35 = vmax.f32 %v3551_v29, 0.0 }
 0x816   :  { %v3546_v34 = vadd.f32 %v6663_v53, %v3545_v33  ;;  %v3689_v37 = vmax.f32 %v3543_v31, 0.0 }
 0x817   :  { %v3692_v36 = vmax.f32 %v3554_v32, 0.0 }
 0x818   :  { %v3690_v38 = vmax.f32 %v3546_v34, 0.0  ;;  %v6732_v34 = vld [vmem:[%s7076_s9] ss:$0 sm:$0xff] }
 0x819   :  { %v3736_v39 = vpack.c.bf16 %v3692_v36, %v3691_v35 }
 0x81a   :  { %v3735_v40 = vpack.c.bf16 %v3690_v38, %v3689_v37 }
 0x81c   :  { %5334 = vmatprep.mubr.bf16.mxu0 %v3735_v40 }
 0x81d   :  { %5335 = vmatmul.mubr.bf16.gmra.mrb[252].mxu0 %v3736_v39 }
 0x822   :  { %v5260_v41 = vpop.f32.mrb[208].mxu1 }
 0x823   :  { %v3567_v42 = vadd.f32 %v5260_v41, %v6663_v53  ;;  %v3558_v43 = vpop.f32.mrb[209].mxu1 }
 0x824   :  { %v3559_v44 = vadd.f32 %v6663_v53, %v3558_v43  ;;  %v5261_v45 = vpop.f32.mrb[210].mxu1 }
 0x825   :  { %v3570_v46 = vadd.f32 %v5261_v45, %v6663_v53  ;;  %v3561_v47 = vpop.f32.mrb[211].mxu1  ;;  %v3695_v49 = vmax.f32 %v3567_v42, 0.0 }
 0x826   :  { %v3562_v48 = vadd.f32 %v6663_v53, %v3561_v47  ;;  %v3693_v51 = vmax.f32 %v3559_v44, 0.0 }
 0x827   :  { %v3696_v50 = vmax.f32 %v3570_v46, 0.0 }
 0x828   :  { %v3694_v19 = vmax.f32 %v3562_v48, 0.0 }
 0x829   :  { %v3738_v52 = vpack.c.bf16 %v3696_v50, %v3695_v49 }
 0x82a   :  { %v3737_v54 = vpack.c.bf16 %v3694_v19, %v3693_v51 }
 0x82c   :  { %5338 = vmatprep.mubr.bf16.mxu0 %v3737_v54 }
 0x82d   :  { %5339 = vmatmul.mubr.bf16.gmra.mrb[0].mxu0 %v3738_v52 }
 0x832   :  { %v5264_v55 = vpop.f32.mrb[212].mxu1 }
 0x833   :  { %v3583_v56 = vadd.f32 %v5264_v55, %v6663_v53  ;;  %v3574_v57 = vpop.f32.mrb[213].mxu1 }
 0x834   :  { %v3575_v58 = vadd.f32 %v6663_v53, %v3574_v57  ;;  %v5265_v59 = vpop.f32.mrb[214].mxu1 }
 0x835   :  { %v3586_v60 = vadd.f32 %v5265_v59, %v6663_v53  ;;  %v3577_v61 = vpop.f32.mrb[215].mxu1  ;;  %v3699_v63 = vmax.f32 %v3583_v56, 0.0 }
 0x836   :  { %v3578_v62 = vadd.f32 %v6663_v53, %v3577_v61  ;;  %v3697_v2 = vmax.f32 %v3575_v58, 0.0 }
 0x837   :  { %v3700_v1 = vmax.f32 %v3586_v60, 0.0 }
 0x838   :  { %v3698_v3 = vmax.f32 %v3578_v62, 0.0 }
 0x839   :  { %v3740_v4 = vpack.c.bf16 %v3700_v1, %v3699_v63 }
 0x83a   :  { %v3739_v5 = vpack.c.bf16 %v3698_v3, %v3697_v2 }
 0x83c   :  { %5342 = vmatprep.mubr.bf16.mxu0 %v3739_v5 }
 0x83d   :  { %5343 = vmatmul.mubr.bf16.gmra.mrb[4].mxu0 %v3740_v4 }
 0x842   :  { %v5268_v6 = vpop.f32.mrb[216].mxu1 }
 0x843   :  { %v3599_v7 = vadd.f32 %v5268_v6, %v6663_v53  ;;  %v3590_v8 = vpop.f32.mrb[217].mxu1 }
 0x844   :  { %v3591_v9 = vadd.f32 %v6663_v53, %v3590_v8  ;;  %v5269_v10 = vpop.f32.mrb[218].mxu1 }
 0x845   :  { %v3602_v11 = vadd.f32 %v5269_v10, %v6663_v53  ;;  %v3593_v12 = vpop.f32.mrb[219].mxu1  ;;  %v3703_v15 = vmax.f32 %v3599_v7, 0.0 }
 0x846   :  { %v3594_v13 = vadd.f32 %v6663_v53, %v3593_v12  ;;  %v3701_v17 = vmax.f32 %v3591_v9, 0.0 }
 0x847   :  { %v3704_v16 = vmax.f32 %v3602_v11, 0.0 }
 0x848   :  { %v3702_v18 = vmax.f32 %v3594_v13, 0.0 }
 0x849   :  { %v3742_v20 = vpack.c.bf16 %v3704_v16, %v3703_v15 }
 0x84a   :  { %v3741_v21 = vpack.c.bf16 %v3702_v18, %v3701_v17 }
 0x84c   :  { %5346 = vmatprep.mubr.bf16.mxu0 %v3741_v21 }
 0x84d   :  { %5347 = vmatmul.mubr.bf16.gmra.mrb[8].mxu0 %v3742_v20 }
 0x852   :  { %v5272_v22 = vpop.f32.mrb[220].mxu1 }
 0x853   :  { %v3615_v23 = vadd.f32 %v5272_v22, %v6663_v53  ;;  %v3606_v24 = vpop.f32.mrb[221].mxu1 }
 0x854   :  { %v3607_v25 = vadd.f32 %v6663_v53, %v3606_v24  ;;  %v5273_v26 = vpop.f32.mrb[222].mxu1 }
 0x855   :  { %v3618_v14 = vadd.f32 %v5273_v26, %v6663_v53  ;;  %v3609_v27 = vpop.f32.mrb[223].mxu1  ;;  %v3707_v29 = vmax.f32 %v3615_v23, 0.0 }
 0x856   :  { %v3610_v28 = vadd.f32 %v6663_v53, %v3609_v27  ;;  %v3705_v31 = vmax.f32 %v3607_v25, 0.0 }
 0x857   :  { %v3708_v30 = vmax.f32 %v3618_v14, 0.0 }
 0x858   :  { %v3706_v0 = vmax.f32 %v3610_v28, 0.0 }
 0x859   :  { %v3744_v32 = vpack.c.bf16 %v3708_v30, %v3707_v29 }
 0x85a   :  { %v3743_v33 = vpack.c.bf16 %v3706_v0, %v3705_v31 }
 0x85c   :  { %5350 = vmatprep.mubr.bf16.mxu0 %v3743_v33 }
 0x85d   :  { %5351 = vmatmul.mubr.bf16.gmra.mrb[12].mxu0 %v3744_v32 }
 0x860   :  { %v5300_v35 = vpop.f32.mrb[216].mxu0 }
 0x861   :  { %v3863_v36 = vadd.f32 %v5300_v35, %v6732_v34  ;;  %v3854_v37 = vpop.f32.mrb[217].mxu0 }
 0x862   :  { %v3855_v38 = vadd.f32 %v6732_v34, %v3854_v37  ;;  %v5276_v39 = vpop.f32.mrb[224].mxu1  ;;  %v5301_v40 = vpop.f32.mrb[218].mxu0 }
 0x863   :  { %v3631_v41 = vadd.f32 %v5276_v39, %v6663_v53  ;;  %v3866_v42 = vadd.f32 %v5301_v40, %v6732_v34  ;;  %v3622_v43 = vpop.f32.mrb[225].mxu1  ;;  %v3857_v44 = vpop.f32.mrb[219].mxu0  ;;  %v4111_v48 = vmax.f32 %v3863_v36, 0.0 }
 0x864   :  { %v3623_v45 = vadd.f32 %v6663_v53, %v3622_v43  ;;  %v3858_v46 = vadd.f32 %v6732_v34, %v3857_v44  ;;  %v5277_v47 = vpop.f32.mrb[226].mxu1  ;;  %v4109_v19 = vmax.f32 %v3855_v38, 0.0 }
 0x865   :  { %v4112_v49 = vmax.f32 %v3866_v42, 0.0  ;;  %v3634_v50 = vadd.f32 %v5277_v47, %v6663_v53  ;;  %v3625_v51 = vpop.f32.mrb[227].mxu1  ;;  %v3711_v55 = vmax.f32 %v3631_v41, 0.0 }
 0x866   :  { %v4110_v52 = vmax.f32 %v3858_v46, 0.0  ;;  %v3626_v54 = vadd.f32 %v6663_v53, %v3625_v51  ;;  %v3709_v58 = vmax.f32 %v3623_v45, 0.0 }
 0x867   :  { %v4174_v56 = vpack.c.bf16 %v4112_v49, %v4111_v48  ;;  %v3712_v57 = vmax.f32 %v3634_v50, 0.0 }
 0x868   :  { %v4173_v59 = vpack.c.bf16 %v4110_v52, %v4109_v19  ;;  %v3710_v60 = vmax.f32 %v3626_v54, 0.0 }
 0x869   :  { %v3746_v61 = vpack.c.bf16 %v3712_v57, %v3711_v55 }
 0x86a   :  { %v3745_v62 = vpack.c.bf16 %v3710_v60, %v3709_v58  ;;  %5378 = vmatprep.mubr.bf16.mxu1 %v4173_v59 }
 0x86b   :  { %5379 = vmatmul.mubr.bf16.vlgmr.msra.gmra.mrb[232].mxu1 %v4174_v56 }
 0x86c   :  { %5354 = vmatprep.mubr.bf16.mxu0 %v3745_v62 }
 0x86d   :  { %5355 = vmatmul.mubr.bf16.gmra.mrb[16].mxu0 %v3746_v61 }
 0x870   :  { %v5304_v63 = vpop.f32.mrb[220].mxu0 }
 0x871   :  { %v3879_v1 = vadd.f32 %v5304_v63, %v6732_v34  ;;  %v3870_v2 = vpop.f32.mrb[221].mxu0 }
 0x872   :  { %v3871_v3 = vadd.f32 %v6732_v34, %v3870_v2  ;;  %v5280_v4 = vpop.f32.mrb[228].mxu1  ;;  %v5305_v5 = vpop.f32.mrb[222].mxu0 }
 0x873   :  { %v3647_v6 = vadd.f32 %v5280_v4, %v6663_v53  ;;  %v3882_v7 = vadd.f32 %v5305_v5, %v6732_v34  ;;  %v3638_v8 = vpop.f32.mrb[229].mxu1  ;;  %v3873_v9 = vpop.f32.mrb[223].mxu0  ;;  %v4115_v13 = vmax.f32 %v3879_v1, 0.0 }
 0x874   :  { %v3639_v10 = vadd.f32 %v6663_v53, %v3638_v8  ;;  %v3874_v11 = vadd.f32 %v6732_v34, %v3873_v9  ;;  %v5281_v12 = vpop.f32.mrb[230].mxu1  ;;  %v4113_v18 = vmax.f32 %v3871_v3, 0.0 }
 0x875   :  { %v4116_v15 = vmax.f32 %v3882_v7, 0.0  ;;  %v3650_v16 = vadd.f32 %v5281_v12, %v6663_v53  ;;  %v3641_v17 = vpop.f32.mrb[231].mxu1  ;;  %v3715_v22 = vmax.f32 %v3647_v6, 0.0 }
 0x876   :  { %v4114_v20 = vmax.f32 %v3874_v11, 0.0  ;;  %v3642_v21 = vadd.f32 %v6663_v53, %v3641_v17  ;;  %v3713_v25 = vmax.f32 %v3639_v10, 0.0 }
 0x877   :  { %v4176_v23 = vpack.c.bf16 %v4116_v15, %v4115_v13  ;;  %v3716_v24 = vmax.f32 %v3650_v16, 0.0 }
 0x878   :  { %v4175_v26 = vpack.c.bf16 %v4114_v20, %v4113_v18  ;;  %v3714_v14 = vmax.f32 %v3642_v21, 0.0 }
 0x879   :  { %v3748_v27 = vpack.c.bf16 %v3716_v24, %v3715_v22 }
 0x87a   :  { %v3747_v28 = vpack.c.bf16 %v3714_v14, %v3713_v25  ;;  %5382 = vmatprep.mubr.bf16.mxu1 %v4175_v26 }
 0x87b   :  { %5383 = vmatmul.mubr.bf16.gmra.mrb[236].mxu1 %v4176_v23 }
 0x87c   :  { %5358 = vmatprep.mubr.bf16.mxu0 %v3747_v28 }
 0x87d   :  { %5359 = vmatmul.mubr.bf16.gmra.mrb[20].mxu0 %v3748_v27 }
 0x880   :  { %v5308_v29 = vpop.f32.mrb[224].mxu0 }
 0x881   :  { %v3895_v30 = vadd.f32 %v5308_v29, %v6732_v34  ;;  %v3886_v31 = vpop.f32.mrb[225].mxu0 }
 0x882   :  { %v3887_v0 = vadd.f32 %v6732_v34, %v3886_v31  ;;  %v5309_v32 = vpop.f32.mrb[226].mxu0 }
 0x883   :  { %v3898_v53 = vadd.f32 %v5309_v32, %v6732_v34  ;;  %v3889_v33 = vpop.f32.mrb[227].mxu0  ;;  %v4119_v36 = vmax.f32 %v3895_v30, 0.0 }
 0x884   :  { %v3890_v35 = vadd.f32 %v6732_v34, %v3889_v33  ;;  %v4117_v38 = vmax.f32 %v3887_v0, 0.0 }
 0x885   :  { %v4120_v37 = vmax.f32 %v3898_v53, 0.0 }
 0x886   :  { %v4118_v39 = vmax.f32 %v3890_v35, 0.0 }
 0x887   :  { %v4178_v40 = vpack.c.bf16 %v4120_v37, %v4119_v36 }
 0x888   :  { %v4177_v41 = vpack.c.bf16 %v4118_v39, %v4117_v38 }
 0x88a   :  { %5386 = vmatprep.mubr.bf16.mxu1 %v4177_v41 }
 0x88b   :  { %5387 = vmatmul.mubr.bf16.gmra.mrb[240].mxu1 %v4178_v40 }
 0x890   :  { %v5312_v42 = vpop.f32.mrb[228].mxu0 }
 0x891   :  { %v3911_v43 = vadd.f32 %v5312_v42, %v6732_v34  ;;  %v3902_v44 = vpop.f32.mrb[229].mxu0 }
 0x892   :  { %v3903_v45 = vadd.f32 %v6732_v34, %v3902_v44  ;;  %v5313_v46 = vpop.f32.mrb[230].mxu0 }
 0x893   :  { %v3914_v47 = vadd.f32 %v5313_v46, %v6732_v34  ;;  %v3905_v48 = vpop.f32.mrb[231].mxu0  ;;  %v4123_v50 = vmax.f32 %v3911_v43, 0.0 }
 0x894   :  { %v3906_v49 = vadd.f32 %v6732_v34, %v3905_v48  ;;  %v4121_v19 = vmax.f32 %v3903_v45, 0.0 }
 0x895   :  { %v4124_v51 = vmax.f32 %v3914_v47, 0.0 }
 0x896   :  { %v4122_v52 = vmax.f32 %v3906_v49, 0.0 }
 0x897   :  { %v4180_v54 = vpack.c.bf16 %v4124_v51, %v4123_v50 }
 0x898   :  { %v4179_v55 = vpack.c.bf16 %v4122_v52, %v4121_v19 }
 0x89a   :  { %5390 = vmatprep.mubr.bf16.mxu1 %v4179_v55 }
 0x89b   :  { %5391 = vmatmul.mubr.bf16.gmra.mrb[244].mxu1 %v4180_v54 }
 0x8a0   :  { %v5316_v56 = vpop.f32.mrb[232].mxu0 }
 0x8a1   :  { %v3927_v57 = vadd.f32 %v5316_v56, %v6732_v34  ;;  %v3918_v58 = vpop.f32.mrb[233].mxu0 }
 0x8a2   :  { %v3919_v59 = vadd.f32 %v6732_v34, %v3918_v58  ;;  %v5317_v60 = vpop.f32.mrb[234].mxu0 }
 0x8a3   :  { %v3930_v61 = vadd.f32 %v5317_v60, %v6732_v34  ;;  %v3921_v62 = vpop.f32.mrb[235].mxu0  ;;  %v4127_v1 = vmax.f32 %v3927_v57, 0.0 }
 0x8a4   :  { %v3922_v63 = vadd.f32 %v6732_v34, %v3921_v62  ;;  %v4125_v3 = vmax.f32 %v3919_v59, 0.0 }
 0x8a5   :  { %v4128_v2 = vmax.f32 %v3930_v61, 0.0 }
 0x8a6   :  { %v4126_v4 = vmax.f32 %v3922_v63, 0.0 }
 0x8a7   :  { %v4182_v5 = vpack.c.bf16 %v4128_v2, %v4127_v1 }
 0x8a8   :  { %v4181_v6 = vpack.c.bf16 %v4126_v4, %v4125_v3 }
 0x8aa   :  { %5394 = vmatprep.mubr.bf16.mxu1 %v4181_v6 }
 0x8ab   :  { %5395 = vmatmul.mubr.bf16.gmra.mrb[248].mxu1 %v4182_v5 }
 0x8b0   :  { %v5320_v7 = vpop.f32.mrb[236].mxu0 }
 0x8b1   :  { %v3943_v8 = vadd.f32 %v5320_v7, %v6732_v34  ;;  %v3934_v9 = vpop.f32.mrb[237].mxu0 }
 0x8b2   :  { %v3935_v10 = vadd.f32 %v6732_v34, %v3934_v9  ;;  %v5321_v11 = vpop.f32.mrb[238].mxu0 }
 0x8b3   :  { %v3946_v12 = vadd.f32 %v5321_v11, %v6732_v34  ;;  %v3937_v13 = vpop.f32.mrb[239].mxu0  ;;  %v4131_v16 = vmax.f32 %v3943_v8, 0.0 }
 0x8b4   :  { %v3938_v15 = vadd.f32 %v6732_v34, %v3937_v13  ;;  %v4129_v18 = vmax.f32 %v3935_v10, 0.0 }
 0x8b5   :  { %v4132_v17 = vmax.f32 %v3946_v12, 0.0 }
 0x8b6   :  { %v4130_v20 = vmax.f32 %v3938_v15, 0.0 }
 0x8b7   :  { %v4184_v21 = vpack.c.bf16 %v4132_v17, %v4131_v16 }
 0x8b8   :  { %v4183_v22 = vpack.c.bf16 %v4130_v20, %v4129_v18 }
 0x8ba   :  { %5398 = vmatprep.mubr.bf16.mxu1 %v4183_v22 }
 0x8bb   :  { %5399 = vmatmul.mubr.bf16.gmra.mrb[252].mxu1 %v4184_v21 }
 0x8c0   :  { %v5324_v23 = vpop.f32.mrb[240].mxu0 }
 0x8c1   :  { %v3959_v24 = vadd.f32 %v5324_v23, %v6732_v34  ;;  %v3950_v25 = vpop.f32.mrb[241].mxu0 }
 0x8c2   :  { %v3951_v26 = vadd.f32 %v6732_v34, %v3950_v25  ;;  %v5325_v14 = vpop.f32.mrb[242].mxu0 }
 0x8c3   :  { %v3962_v27 = vadd.f32 %v5325_v14, %v6732_v34  ;;  %v3953_v28 = vpop.f32.mrb[243].mxu0  ;;  %v4135_v30 = vmax.f32 %v3959_v24, 0.0 }
 0x8c4   :  { %v3954_v29 = vadd.f32 %v6732_v34, %v3953_v28  ;;  %v4133_v0 = vmax.f32 %v3951_v26, 0.0 }
 0x8c5   :  { %v4136_v31 = vmax.f32 %v3962_v27, 0.0 }
 0x8c6   :  { %v4134_v32 = vmax.f32 %v3954_v29, 0.0 }
 0x8c7   :  { %v4186_v53 = vpack.c.bf16 %v4136_v31, %v4135_v30 }
 0x8c8   :  { %v4185_v33 = vpack.c.bf16 %v4134_v32, %v4133_v0 }
 0x8ca   :  { %5402 = vmatprep.mubr.bf16.mxu1 %v4185_v33 }
 0x8cb   :  { %5403 = vmatmul.mubr.bf16.gmra.mrb[0].mxu1 %v4186_v53 }
 0x8d0   :  { %v5328_v35 = vpop.f32.mrb[244].mxu0 }
 0x8d1   :  { %v3975_v36 = vadd.f32 %v5328_v35, %v6732_v34  ;;  %v3966_v37 = vpop.f32.mrb[245].mxu0 }
 0x8d2   :  { %v3967_v38 = vadd.f32 %v6732_v34, %v3966_v37  ;;  %v5329_v39 = vpop.f32.mrb[246].mxu0 }
 0x8d3   :  { %v3978_v40 = vadd.f32 %v5329_v39, %v6732_v34  ;;  %v3969_v41 = vpop.f32.mrb[247].mxu0  ;;  %v4139_v43 = vmax.f32 %v3975_v36, 0.0 }
 0x8d4   :  { %v3970_v42 = vadd.f32 %v6732_v34, %v3969_v41  ;;  %v4137_v45 = vmax.f32 %v3967_v38, 0.0 }
 0x8d5   :  { %v4140_v44 = vmax.f32 %v3978_v40, 0.0 }
 0x8d6   :  { %v4138_v46 = vmax.f32 %v3970_v42, 0.0 }
 0x8d7   :  { %v4188_v47 = vpack.c.bf16 %v4140_v44, %v4139_v43 }
 0x8d8   :  { %v4187_v48 = vpack.c.bf16 %v4138_v46, %v4137_v45 }
 0x8da   :  { %5406 = vmatprep.mubr.bf16.mxu1 %v4187_v48 }
 0x8db   :  { %5407 = vmatmul.mubr.bf16.gmra.mrb[4].mxu1 %v4188_v47 }
 0x8e0   :  { %v5332_v49 = vpop.f32.mrb[248].mxu0 }
 0x8e1   :  { %v3991_v50 = vadd.f32 %v5332_v49, %v6732_v34  ;;  %v3982_v51 = vpop.f32.mrb[249].mxu0 }
 0x8e2   :  { %v3983_v19 = vadd.f32 %v6732_v34, %v3982_v51  ;;  %v5333_v52 = vpop.f32.mrb[250].mxu0 }
 0x8e3   :  { %v3994_v54 = vadd.f32 %v5333_v52, %v6732_v34  ;;  %v3985_v55 = vpop.f32.mrb[251].mxu0  ;;  %v4143_v57 = vmax.f32 %v3991_v50, 0.0 }
 0x8e4   :  { %v3986_v56 = vadd.f32 %v6732_v34, %v3985_v55  ;;  %v4141_v59 = vmax.f32 %v3983_v19, 0.0 }
 0x8e5   :  { %v4144_v58 = vmax.f32 %v3994_v54, 0.0 }
 0x8e6   :  { %v4142_v60 = vmax.f32 %v3986_v56, 0.0 }
 0x8e7   :  { %v4190_v61 = vpack.c.bf16 %v4144_v58, %v4143_v57 }
 0x8e8   :  { %v4189_v62 = vpack.c.bf16 %v4142_v60, %v4141_v59 }
 0x8ea   :  { %5410 = vmatprep.mubr.bf16.mxu1 %v4189_v62 }
 0x8eb   :  { %5411 = vmatmul.mubr.bf16.gmra.mrb[8].mxu1 %v4190_v61 }
 0x8f0   :  { %v5336_v63 = vpop.f32.mrb[252].mxu0 }
 0x8f1   :  { %v4007_v1 = vadd.f32 %v5336_v63, %v6732_v34  ;;  %v3998_v2 = vpop.f32.mrb[253].mxu0 }
 0x8f2   :  { %v3999_v3 = vadd.f32 %v6732_v34, %v3998_v2  ;;  %v5337_v4 = vpop.f32.mrb[254].mxu0 }
 0x8f3   :  { %v4010_v5 = vadd.f32 %v5337_v4, %v6732_v34  ;;  %v4001_v6 = vpop.f32.mrb[255].mxu0  ;;  %v4147_v8 = vmax.f32 %v4007_v1, 0.0 }
 0x8f4   :  { %v4002_v7 = vadd.f32 %v6732_v34, %v4001_v6  ;;  %v4145_v10 = vmax.f32 %v3999_v3, 0.0 }
 0x8f5   :  { %v4148_v9 = vmax.f32 %v4010_v5, 0.0 }
 0x8f6   :  { %v4146_v11 = vmax.f32 %v4002_v7, 0.0  ;;  %v6801_v7 = vld [vmem:[%s7078_s11] ss:$0 sm:$0xff] }
 0x8f7   :  { %v4192_v12 = vpack.c.bf16 %v4148_v9, %v4147_v8 }
 0x8f8   :  { %v4191_v13 = vpack.c.bf16 %v4146_v11, %v4145_v10 }
 0x8fa   :  { %5414 = vmatprep.mubr.bf16.mxu1 %v4191_v13 }
 0x8fb   :  { %5415 = vmatmul.mubr.bf16.gmra.mrb[12].mxu1 %v4192_v12 }
 0x900   :  { %v5340_v15 = vpop.f32.mrb[0].mxu0 }
 0x901   :  { %v4023_v16 = vadd.f32 %v5340_v15, %v6732_v34  ;;  %v4014_v17 = vpop.f32.mrb[1].mxu0 }
 0x902   :  { %v4015_v18 = vadd.f32 %v6732_v34, %v4014_v17  ;;  %v5341_v20 = vpop.f32.mrb[2].mxu0 }
 0x903   :  { %v4026_v21 = vadd.f32 %v5341_v20, %v6732_v34  ;;  %v4017_v22 = vpop.f32.mrb[3].mxu0  ;;  %v4151_v24 = vmax.f32 %v4023_v16, 0.0 }
 0x904   :  { %v4018_v23 = vadd.f32 %v6732_v34, %v4017_v22  ;;  %v4149_v26 = vmax.f32 %v4015_v18, 0.0 }
 0x905   :  { %v4152_v25 = vmax.f32 %v4026_v21, 0.0 }
 0x906   :  { %v4150_v14 = vmax.f32 %v4018_v23, 0.0 }
 0x907   :  { %v4194_v27 = vpack.c.bf16 %v4152_v25, %v4151_v24 }
 0x908   :  { %v4193_v28 = vpack.c.bf16 %v4150_v14, %v4149_v26 }
 0x90a   :  { %5418 = vmatprep.mubr.bf16.mxu1 %v4193_v28 }
 0x90b   :  { %5419 = vmatmul.mubr.bf16.gmra.mrb[16].mxu1 %v4194_v27 }
 0x910   :  { %v5344_v29 = vpop.f32.mrb[4].mxu0 }
 0x911   :  { %v4039_v30 = vadd.f32 %v5344_v29, %v6732_v34  ;;  %v4030_v31 = vpop.f32.mrb[5].mxu0 }
 0x912   :  { %v4031_v0 = vadd.f32 %v6732_v34, %v4030_v31  ;;  %v5345_v32 = vpop.f32.mrb[6].mxu0 }
 0x913   :  { %v4042_v53 = vadd.f32 %v5345_v32, %v6732_v34  ;;  %v4033_v33 = vpop.f32.mrb[7].mxu0  ;;  %v4155_v36 = vmax.f32 %v4039_v30, 0.0 }
 0x914   :  { %v4034_v35 = vadd.f32 %v6732_v34, %v4033_v33  ;;  %v4153_v38 = vmax.f32 %v4031_v0, 0.0 }
 0x915   :  { %v4156_v37 = vmax.f32 %v4042_v53, 0.0 }
 0x916   :  { %v4154_v39 = vmax.f32 %v4034_v35, 0.0 }
 0x917   :  { %v4196_v40 = vpack.c.bf16 %v4156_v37, %v4155_v36 }
 0x918   :  { %v4195_v41 = vpack.c.bf16 %v4154_v39, %v4153_v38 }
 0x91a   :  { %5422 = vmatprep.mubr.bf16.mxu1 %v4195_v41 }
 0x91b   :  { %5423 = vmatmul.mubr.bf16.gmra.mrb[20].mxu1 %v4196_v40 }
 0x920   :  { %v5348_v42 = vpop.f32.mrb[8].mxu0 }
 0x921   :  { %v4055_v43 = vadd.f32 %v5348_v42, %v6732_v34  ;;  %v4046_v44 = vpop.f32.mrb[9].mxu0 }
 0x922   :  { %v4047_v45 = vadd.f32 %v6732_v34, %v4046_v44  ;;  %v5349_v46 = vpop.f32.mrb[10].mxu0 }
 0x923   :  { %v4058_v47 = vadd.f32 %v5349_v46, %v6732_v34  ;;  %v4049_v48 = vpop.f32.mrb[11].mxu0  ;;  %v4159_v50 = vmax.f32 %v4055_v43, 0.0 }
 0x924   :  { %v4050_v49 = vadd.f32 %v6732_v34, %v4049_v48  ;;  %v4157_v19 = vmax.f32 %v4047_v45, 0.0 }
 0x925   :  { %v4160_v51 = vmax.f32 %v4058_v47, 0.0 }
 0x926   :  { %v4158_v52 = vmax.f32 %v4050_v49, 0.0 }
 0x927   :  { %v4198_v54 = vpack.c.bf16 %v4160_v51, %v4159_v50 }
 0x928   :  { %v4197_v55 = vpack.c.bf16 %v4158_v52, %v4157_v19 }
 0x92a   :  { %5426 = vmatprep.mubr.bf16.mxu1 %v4197_v55 }
 0x92b   :  { %5427 = vmatmul.mubr.bf16.gmra.mrb[24].mxu1 %v4198_v54 }
 0x930   :  { %v5352_v56 = vpop.f32.mrb[12].mxu0 }
 0x931   :  { %v4071_v57 = vadd.f32 %v5352_v56, %v6732_v34  ;;  %v4062_v58 = vpop.f32.mrb[13].mxu0 }
 0x932   :  { %v4063_v59 = vadd.f32 %v6732_v34, %v4062_v58  ;;  %v5353_v60 = vpop.f32.mrb[14].mxu0 }
 0x933   :  { %v4074_v61 = vadd.f32 %v5353_v60, %v6732_v34  ;;  %v4065_v62 = vpop.f32.mrb[15].mxu0  ;;  %v4163_v1 = vmax.f32 %v4071_v57, 0.0 }
 0x934   :  { %v4066_v63 = vadd.f32 %v6732_v34, %v4065_v62  ;;  %v4161_v3 = vmax.f32 %v4063_v59, 0.0 }
 0x935   :  { %v4164_v2 = vmax.f32 %v4074_v61, 0.0 }
 0x936   :  { %v4162_v4 = vmax.f32 %v4066_v63, 0.0 }
 0x937   :  { %v4200_v5 = vpack.c.bf16 %v4164_v2, %v4163_v1 }
 0x938   :  { %v4199_v6 = vpack.c.bf16 %v4162_v4, %v4161_v3 }
 0x93a   :  { %5430 = vmatprep.mubr.bf16.mxu1 %v4199_v6 }
 0x93b   :  { %5431 = vmatmul.mubr.bf16.gmra.mrb[28].mxu1 %v4200_v5 }
 0x93e   :  { %v5380_v8 = vpop.f32.mrb[232].mxu1 }
 0x93f   :  { %v4319_v9 = vadd.f32 %v5380_v8, %v6801_v7  ;;  %v4310_v10 = vpop.f32.mrb[233].mxu1 }
 0x940   :  { %v4311_v11 = vadd.f32 %v6801_v7, %v4310_v10  ;;  %v5356_v12 = vpop.f32.mrb[16].mxu0  ;;  %v5381_v13 = vpop.f32.mrb[234].mxu1 }
 0x941   :  { %4567 = vst [vmem:[%s7079_s12 + $0x10] sm:$0xff] %v4319_v9  ;;  %v4087_v15 = vadd.f32 %v5356_v12, %v6732_v34  ;;  %v4322_v16 = vadd.f32 %v5381_v13, %v6801_v7  ;;  %v4078_v17 = vpop.f32.mrb[17].mxu0  ;;  %v4313_v18 = vpop.f32.mrb[235].mxu1 }
 0x942   :  { %4565 = vst [vmem:[%s7079_s12] sm:$0xff] %v4311_v11  ;;  %v4079_v20 = vadd.f32 %v6732_v34, %v4078_v17  ;;  %v4314_v21 = vadd.f32 %v6801_v7, %v4313_v18  ;;  %v5357_v22 = vpop.f32.mrb[18].mxu0 }
 0x943   :  { %4568 = vst [vmem:[%s7079_s12 + $0x18] sm:$0xff] %v4322_v16  ;;  %v4090_v23 = vadd.f32 %v5357_v22, %v6732_v34  ;;  %v4081_v24 = vpop.f32.mrb[19].mxu0  ;;  %v4167_v26 = vmax.f32 %v4087_v15, 0.0 }
 0x944   :  { %4566 = vst [vmem:[%s7079_s12 + $0x8] sm:$0xff] %v4314_v21  ;;  %v4082_v25 = vadd.f32 %v6732_v34, %v4081_v24  ;;  %v4165_v27 = vmax.f32 %v4079_v20, 0.0 }
 0x945   :  { %v4168_v14 = vmax.f32 %v4090_v23, 0.0 }
 0x946   :  { %v4166_v28 = vmax.f32 %v4082_v25, 0.0 }
 0x947   :  { %v4202_v29 = vpack.c.bf16 %v4168_v14, %v4167_v26 }
 0x948   :  { %v4201_v30 = vpack.c.bf16 %v4166_v28, %v4165_v27 }
 0x94a   :  { %5434 = vmatprep.mubr.bf16.mxu1 %v4201_v30 }
 0x94b   :  { %5435 = vmatmul.mubr.bf16.gmra.mrb[32].mxu1 %v4202_v29 }
 0x94e   :  { %v5384_v31 = vpop.f32.mrb[236].mxu1 }
 0x94f   :  { %v4335_v0 = vadd.f32 %v5384_v31, %v6801_v7  ;;  %v4326_v32 = vpop.f32.mrb[237].mxu1 }
 0x950   :  { %v4327_v53 = vadd.f32 %v6801_v7, %v4326_v32  ;;  %v5360_v33 = vpop.f32.mrb[20].mxu0  ;;  %v5385_v35 = vpop.f32.mrb[238].mxu1 }
 0x951   :  { %4571 = vst [vmem:[%s7079_s12 + $0x30] sm:$0xff] %v4335_v0  ;;  %v4103_v36 = vadd.f32 %v5360_v33, %v6732_v34  ;;  %v4338_v37 = vadd.f32 %v5385_v35, %v6801_v7  ;;  %v4094_v38 = vpop.f32.mrb[21].mxu0  ;;  %v4329_v39 = vpop.f32.mrb[239].mxu1 }
 0x952   :  { %4569 = vst [vmem:[%s7079_s12 + $0x20] sm:$0xff] %v4327_v53  ;;  %v4095_v40 = vadd.f32 %v6732_v34, %v4094_v38  ;;  %v4330_v41 = vadd.f32 %v6801_v7, %v4329_v39  ;;  %v5361_v42 = vpop.f32.mrb[22].mxu0 }
 0x953   :  { %4572 = vst [vmem:[%s7079_s12 + $0x38] sm:$0xff] %v4338_v37  ;;  %v4106_v43 = vadd.f32 %v5361_v42, %v6732_v34  ;;  %v4097_v44 = vpop.f32.mrb[23].mxu0  ;;  %v4171_v46 = vmax.f32 %v4103_v36, 0.0 }
 0x954   :  { %4570 = vst [vmem:[%s7079_s12 + $0x28] sm:$0xff] %v4330_v41  ;;  %v4098_v45 = vadd.f32 %v6732_v34, %v4097_v44  ;;  %v4169_v48 = vmax.f32 %v4095_v40, 0.0 }
 0x955   :  { %v4172_v47 = vmax.f32 %v4106_v43, 0.0 }
 0x956   :  { %v4170_v49 = vmax.f32 %v4098_v45, 0.0 }
 0x957   :  { %v4204_v50 = vpack.c.bf16 %v4172_v47, %v4171_v46 }
 0x958   :  { %v4203_v51 = vpack.c.bf16 %v4170_v49, %v4169_v48 }
 0x95a   :  { %5438 = vmatprep.mubr.bf16.mxu1 %v4203_v51 }
 0x95b   :  { %5439 = vmatmul.mubr.bf16.gmra.mrb[36].mxu1 %v4204_v50 }
 0x95e   :  { %v5388_v19 = vpop.f32.mrb[240].mxu1 }
 0x95f   :  { %v4351_v52 = vadd.f32 %v5388_v19, %v6801_v7  ;;  %v4342_v54 = vpop.f32.mrb[241].mxu1 }
 0x960   :  { %v4343_v55 = vadd.f32 %v6801_v7, %v4342_v54  ;;  %v5389_v56 = vpop.f32.mrb[242].mxu1 }
 0x961   :  { %4575 = vst [vmem:[%s7079_s12 + $0x50] sm:$0xff] %v4351_v52  ;;  %v4354_v34 = vadd.f32 %v5389_v56, %v6801_v7  ;;  %v4345_v57 = vpop.f32.mrb[243].mxu1 }
 0x962   :  { %4573 = vst [vmem:[%s7079_s12 + $0x40] sm:$0xff] %v4343_v55  ;;  %v4346_v58 = vadd.f32 %v6801_v7, %v4345_v57 }
 0x963   :  { %4576 = vst [vmem:[%s7079_s12 + $0x58] sm:$0xff] %v4354_v34 }
 0x964   :  { %4574 = vst [vmem:[%s7079_s12 + $0x48] sm:$0xff] %v4346_v58 }
 0x96e   :  { %v5392_v59 = vpop.f32.mrb[244].mxu1 }
 0x96f   :  { %v4367_v60 = vadd.f32 %v5392_v59, %v6801_v7  ;;  %v4358_v61 = vpop.f32.mrb[245].mxu1 }
 0x970   :  { %v4359_v62 = vadd.f32 %v6801_v7, %v4358_v61  ;;  %v5393_v63 = vpop.f32.mrb[246].mxu1 }
 0x971   :  { %4579 = vst [vmem:[%s7079_s12 + $0x70] sm:$0xff] %v4367_v60  ;;  %v4370_v1 = vadd.f32 %v5393_v63, %v6801_v7  ;;  %v4361_v2 = vpop.f32.mrb[247].mxu1 }
 0x972   :  { %4577 = vst [vmem:[%s7079_s12 + $0x60] sm:$0xff] %v4359_v62  ;;  %v4362_v3 = vadd.f32 %v6801_v7, %v4361_v2 }
 0x973   :  { %4580 = vst [vmem:[%s7079_s12 + $0x78] sm:$0xff] %v4370_v1 }
 0x974   :  { %4578 = vst [vmem:[%s7079_s12 + $0x68] sm:$0xff] %v4362_v3 }
 0x97e   :  { %v5396_v4 = vpop.f32.mrb[248].mxu1 }
 0x97f   :  { %v4383_v5 = vadd.f32 %v5396_v4, %v6801_v7  ;;  %v4374_v6 = vpop.f32.mrb[249].mxu1 }
 0x980   :  { %v4375_v8 = vadd.f32 %v6801_v7, %v4374_v6  ;;  %v5397_v9 = vpop.f32.mrb[250].mxu1 }
 0x981   :  { %4583 = vst [vmem:[%s7079_s12 + $0x90] sm:$0xff] %v4383_v5  ;;  %v4386_v10 = vadd.f32 %v5397_v9, %v6801_v7  ;;  %v4377_v11 = vpop.f32.mrb[251].mxu1 }
 0x982   :  { %4581 = vst [vmem:[%s7079_s12 + $0x80] sm:$0xff] %v4375_v8  ;;  %v4378_v12 = vadd.f32 %v6801_v7, %v4377_v11 }
 0x983   :  { %4584 = vst [vmem:[%s7079_s12 + $0x98] sm:$0xff] %v4386_v10 }
 0x984   :  { %4582 = vst [vmem:[%s7079_s12 + $0x88] sm:$0xff] %v4378_v12 }
 0x98e   :  { %v5400_v13 = vpop.f32.mrb[252].mxu1 }
 0x98f   :  { %v4399_v15 = vadd.f32 %v5400_v13, %v6801_v7  ;;  %v4390_v16 = vpop.f32.mrb[253].mxu1 }
 0x990   :  { %v4391_v17 = vadd.f32 %v6801_v7, %v4390_v16  ;;  %v5401_v18 = vpop.f32.mrb[254].mxu1 }
 0x991   :  { %4587 = vst [vmem:[%s7079_s12 + $0xb0] sm:$0xff] %v4399_v15  ;;  %v4402_v20 = vadd.f32 %v5401_v18, %v6801_v7  ;;  %v4393_v21 = vpop.f32.mrb[255].mxu1 }
 0x992   :  { %4585 = vst [vmem:[%s7079_s12 + $0xa0] sm:$0xff] %v4391_v17  ;;  %v4394_v22 = vadd.f32 %v6801_v7, %v4393_v21 }
 0x993   :  { %4588 = vst [vmem:[%s7079_s12 + $0xb8] sm:$0xff] %v4402_v20 }
 0x994   :  { %4586 = vst [vmem:[%s7079_s12 + $0xa8] sm:$0xff] %v4394_v22 }
 0x99e   :  { %v5404_v23 = vpop.f32.mrb[0].mxu1 }
 0x99f   :  { %v4415_v24 = vadd.f32 %v5404_v23, %v6801_v7  ;;  %v4406_v25 = vpop.f32.mrb[1].mxu1 }
 0x9a0   :  { %v4407_v26 = vadd.f32 %v6801_v7, %v4406_v25  ;;  %v5405_v14 = vpop.f32.mrb[2].mxu1 }
 0x9a1   :  { %4591 = vst [vmem:[%s7079_s12 + $0xd0] sm:$0xff] %v4415_v24  ;;  %v4418_v27 = vadd.f32 %v5405_v14, %v6801_v7  ;;  %v4409_v28 = vpop.f32.mrb[3].mxu1 }
 0x9a2   :  { %4589 = vst [vmem:[%s7079_s12 + $0xc0] sm:$0xff] %v4407_v26  ;;  %v4410_v29 = vadd.f32 %v6801_v7, %v4409_v28 }
 0x9a3   :  { %4592 = vst [vmem:[%s7079_s12 + $0xd8] sm:$0xff] %v4418_v27 }
 0x9a4   :  { %4590 = vst [vmem:[%s7079_s12 + $0xc8] sm:$0xff] %v4410_v29 }
 0x9ae   :  { %v5408_v30 = vpop.f32.mrb[4].mxu1 }
 0x9af   :  { %v4431_v31 = vadd.f32 %v5408_v30, %v6801_v7  ;;  %v4422_v0 = vpop.f32.mrb[5].mxu1 }
 0x9b0   :  { %v4423_v32 = vadd.f32 %v6801_v7, %v4422_v0  ;;  %v5409_v53 = vpop.f32.mrb[6].mxu1 }
 0x9b1   :  { %4595 = vst [vmem:[%s7079_s12 + $0xf0] sm:$0xff] %v4431_v31  ;;  %v4434_v33 = vadd.f32 %v5409_v53, %v6801_v7  ;;  %v4425_v35 = vpop.f32.mrb[7].mxu1 }
 0x9b2   :  { %4593 = vst [vmem:[%s7079_s12 + $0xe0] sm:$0xff] %v4423_v32  ;;  %v4426_v36 = vadd.f32 %v6801_v7, %v4425_v35 }
 0x9b3   :  { %4596 = vst [vmem:[%s7079_s12 + $0xf8] sm:$0xff] %v4434_v33 }
 0x9b4   :  { %4594 = vst [vmem:[%s7079_s12 + $0xe8] sm:$0xff] %v4426_v36 }
 0x9be   :  { %v5412_v37 = vpop.f32.mrb[8].mxu1 }
 0x9bf   :  { %v4447_v38 = vadd.f32 %v5412_v37, %v6801_v7  ;;  %v4438_v39 = vpop.f32.mrb[9].mxu1 }
 0x9c0   :  { %v4439_v40 = vadd.f32 %v6801_v7, %v4438_v39  ;;  %v5413_v41 = vpop.f32.mrb[10].mxu1 }
 0x9c1   :  { %4599 = vst [vmem:[%s7079_s12 + $0x110] sm:$0xff] %v4447_v38  ;;  %v4450_v42 = vadd.f32 %v5413_v41, %v6801_v7  ;;  %v4441_v43 = vpop.f32.mrb[11].mxu1 }
 0x9c2   :  { %4597 = vst [vmem:[%s7079_s12 + $0x100] sm:$0xff] %v4439_v40  ;;  %v4442_v44 = vadd.f32 %v6801_v7, %v4441_v43 }
 0x9c3   :  { %4600 = vst [vmem:[%s7079_s12 + $0x118] sm:$0xff] %v4450_v42 }
 0x9c4   :  { %4598 = vst [vmem:[%s7079_s12 + $0x108] sm:$0xff] %v4442_v44 }
 0x9ce   :  { %v5416_v45 = vpop.f32.mrb[12].mxu1 }
 0x9cf   :  { %v4463_v46 = vadd.f32 %v5416_v45, %v6801_v7  ;;  %v4454_v47 = vpop.f32.mrb[13].mxu1 }
 0x9d0   :  { %v4455_v48 = vadd.f32 %v6801_v7, %v4454_v47  ;;  %v5417_v49 = vpop.f32.mrb[14].mxu1 }
 0x9d1   :  { %4603 = vst [vmem:[%s7079_s12 + $0x130] sm:$0xff] %v4463_v46  ;;  %v4466_v50 = vadd.f32 %v5417_v49, %v6801_v7  ;;  %v4457_v51 = vpop.f32.mrb[15].mxu1 }
 0x9d2   :  { %4601 = vst [vmem:[%s7079_s12 + $0x120] sm:$0xff] %v4455_v48  ;;  %v4458_v19 = vadd.f32 %v6801_v7, %v4457_v51 }
 0x9d3   :  { %4604 = vst [vmem:[%s7079_s12 + $0x138] sm:$0xff] %v4466_v50 }
 0x9d4   :  { %4602 = vst [vmem:[%s7079_s12 + $0x128] sm:$0xff] %v4458_v19 }
 0x9de   :  { %v5420_v52 = vpop.f32.mrb[16].mxu1 }
 0x9df   :  { %v4479_v54 = vadd.f32 %v5420_v52, %v6801_v7  ;;  %v4470_v55 = vpop.f32.mrb[17].mxu1 }
 0x9e0   :  { %v4471_v56 = vadd.f32 %v6801_v7, %v4470_v55  ;;  %v5421_v34 = vpop.f32.mrb[18].mxu1 }
 0x9e1   :  { %4607 = vst [vmem:[%s7079_s12 + $0x150] sm:$0xff] %v4479_v54  ;;  %v4482_v57 = vadd.f32 %v5421_v34, %v6801_v7  ;;  %v4473_v58 = vpop.f32.mrb[19].mxu1 }
 0x9e2   :  { %4605 = vst [vmem:[%s7079_s12 + $0x140] sm:$0xff] %v4471_v56  ;;  %v4474_v59 = vadd.f32 %v6801_v7, %v4473_v58 }
 0x9e3   :  { %4608 = vst [vmem:[%s7079_s12 + $0x158] sm:$0xff] %v4482_v57 }
 0x9e4   :  { %4606 = vst [vmem:[%s7079_s12 + $0x148] sm:$0xff] %v4474_v59 }
 0x9ee   :  { %v5424_v60 = vpop.f32.mrb[20].mxu1 }
 0x9ef   :  { %v4495_v61 = vadd.f32 %v5424_v60, %v6801_v7  ;;  %v4486_v62 = vpop.f32.mrb[21].mxu1 }
 0x9f0   :  { %v4487_v63 = vadd.f32 %v6801_v7, %v4486_v62  ;;  %v5425_v1 = vpop.f32.mrb[22].mxu1 }
 0x9f1   :  { %4611 = vst [vmem:[%s7079_s12 + $0x170] sm:$0xff] %v4495_v61  ;;  %v4498_v2 = vadd.f32 %v5425_v1, %v6801_v7  ;;  %v4489_v3 = vpop.f32.mrb[23].mxu1 }
 0x9f2   :  { %4609 = vst [vmem:[%s7079_s12 + $0x160] sm:$0xff] %v4487_v63  ;;  %v4490_v4 = vadd.f32 %v6801_v7, %v4489_v3 }
 0x9f3   :  { %4612 = vst [vmem:[%s7079_s12 + $0x178] sm:$0xff] %v4498_v2 }
 0x9f4   :  { %4610 = vst [vmem:[%s7079_s12 + $0x168] sm:$0xff] %v4490_v4 }
 0x9fe   :  { %v5428_v5 = vpop.f32.mrb[24].mxu1 }
 0x9ff   :  { %v4511_v6 = vadd.f32 %v5428_v5, %v6801_v7  ;;  %v4502_v8 = vpop.f32.mrb[25].mxu1 }
 0xa00   :  { %v4503_v9 = vadd.f32 %v6801_v7, %v4502_v8  ;;  %v5429_v10 = vpop.f32.mrb[26].mxu1 }
 0xa01   :  { %4615 = vst [vmem:[%s7079_s12 + $0x190] sm:$0xff] %v4511_v6  ;;  %v4514_v11 = vadd.f32 %v5429_v10, %v6801_v7  ;;  %v4505_v12 = vpop.f32.mrb[27].mxu1 }
 0xa02   :  { %4613 = vst [vmem:[%s7079_s12 + $0x180] sm:$0xff] %v4503_v9  ;;  %v4506_v13 = vadd.f32 %v6801_v7, %v4505_v12 }
 0xa03   :  { %4616 = vst [vmem:[%s7079_s12 + $0x198] sm:$0xff] %v4514_v11 }
 0xa04   :  { %4614 = vst [vmem:[%s7079_s12 + $0x188] sm:$0xff] %v4506_v13 }
 0xa0e   :  { %v5432_v15 = vpop.f32.mrb[28].mxu1 }
 0xa0f   :  { %v4527_v16 = vadd.f32 %v5432_v15, %v6801_v7  ;;  %v4518_v17 = vpop.f32.mrb[29].mxu1 }
 0xa10   :  { %v4519_v18 = vadd.f32 %v6801_v7, %v4518_v17  ;;  %v5433_v20 = vpop.f32.mrb[30].mxu1 }
 0xa11   :  { %4619 = vst [vmem:[%s7079_s12 + $0x1b0] sm:$0xff] %v4527_v16  ;;  %v4530_v21 = vadd.f32 %v5433_v20, %v6801_v7  ;;  %v4521_v22 = vpop.f32.mrb[31].mxu1 }
 0xa12   :  { %4617 = vst [vmem:[%s7079_s12 + $0x1a0] sm:$0xff] %v4519_v18  ;;  %v4522_v23 = vadd.f32 %v6801_v7, %v4521_v22 }
 0xa13   :  { %4620 = vst [vmem:[%s7079_s12 + $0x1b8] sm:$0xff] %v4530_v21 }
 0xa14   :  { %4618 = vst [vmem:[%s7079_s12 + $0x1a8] sm:$0xff] %v4522_v23 }
 0xa1e   :  { %v5436_v24 = vpop.f32.mrb[32].mxu1 }
 0xa1f   :  { %v4543_v25 = vadd.f32 %v5436_v24, %v6801_v7  ;;  %v4534_v26 = vpop.f32.mrb[33].mxu1 }
 0xa20   :  { %v4535_v14 = vadd.f32 %v6801_v7, %v4534_v26  ;;  %v5437_v27 = vpop.f32.mrb[34].mxu1 }
 0xa21   :  { %4623 = vst [vmem:[%s7079_s12 + $0x1d0] sm:$0xff] %v4543_v25  ;;  %v4546_v28 = vadd.f32 %v5437_v27, %v6801_v7  ;;  %v4537_v29 = vpop.f32.mrb[35].mxu1 }
 0xa22   :  { %4621 = vst [vmem:[%s7079_s12 + $0x1c0] sm:$0xff] %v4535_v14  ;;  %v4538_v30 = vadd.f32 %v6801_v7, %v4537_v29 }
 0xa23   :  { %4624 = vst [vmem:[%s7079_s12 + $0x1d8] sm:$0xff] %v4546_v28 }
 0xa24   :  { %4622 = vst [vmem:[%s7079_s12 + $0x1c8] sm:$0xff] %v4538_v30 }
 0xa2e   :  { %v5440_v31 = vpop.f32.mrb[36].mxu1 }
 0xa2f   :  { %v4559_v0 = vadd.f32 %v5440_v31, %v6801_v7  ;;  %v4550_v32 = vpop.f32.mrb[37].mxu1 }
 0xa30   :  { %v4551_v53 = vadd.f32 %v6801_v7, %v4550_v32  ;;  %v5441_v33 = vpop.f32.mrb[38].mxu1 }
 0xa31   :  { %4627 = vst [vmem:[%s7079_s12 + $0x1f0] sm:$0xff] %v4559_v0  ;;  %v4562_v35 = vadd.f32 %v5441_v33, %v6801_v7  ;;  %v4553_v36 = vpop.f32.mrb[39].mxu1 }
 0xa32   :  { %4625 = vst [vmem:[%s7079_s12 + $0x1e0] sm:$0xff] %v4551_v53  ;;  %v4554_v37 = vadd.f32 %v6801_v7, %v4553_v36 }
 0xa33   :  { %4628 = vst [vmem:[%s7079_s12 + $0x1f8] sm:$0xff] %v4562_v35 }
 0xa34   :  { %4626 = vst [vmem:[%s7079_s12 + $0x1e8] sm:$0xff] %v4554_v37 }
 0xa35   :  { %4633 = vsyncpa [#allocation3], 1 }
 0xa36   :  { %4634 = vsyncpa [#allocation5], 1 }
 0xa37   :  { %4635 = vsyncpa [#allocation8], 1 }
 0xa38   :  { %4636 = vsyncpa [#allocation11], 1 }

</bundles_post_ra>
